<compile_context>
chip_gen: v7x
topology: tpu7x:2x2x1
jax: 0.10.0
libtpu: 0.0.40
codegen_flags: <defaults>
</compile_context>

<pallas_src>
from functools import partial

import jax
import jax.numpy as jnp
from jax import lax
from jax.experimental import pallas as pl
from jax.experimental.pallas import tpu as pltpu

# Problem geometry (fixed by the module / input size 16x16).
_H = _W = 16              # conv1 / conv3 output spatial size (== input spatial size)
_HP = _WP = 20            # padded spatial size (pad = 2 per side)
_NPIX = _HP * _WP         # 400  flattened padded grid
_TW = _NPIX - (4 * _WP + 4)   # 316  im2col / matmul N width per image
_BAND = _TW + 4           # 320  per-ki band width (covers kj = 0..4)
_OUTW = _H * _WP          # 320  per-image output slab width (16 rows @ stride 20)
_K1 = 4 * 25              # 100  conv1 im2col depth (4 in-channels x 25 taps)
_K3 = 8 * 25              # 200  conv3 im2col depth (8 in-channels x 25 taps)


def _dama_kernel(x_ref, mask_ref, w1_ref, b1_ref, w2_ref, b2_ref, w3_ref, b3_ref,
                 o_ref, p1_ref, xp3_ref, p3_ref):
    nb = x_ref.shape[0]                                  # images folded into this step
    interior = mask_ref[...] > 0.5                       # (1, 316): col % 20 < 16

    # ---- conv1: 4 -> 16, 5x5, pad 2 (im2col -> single MXU matmul) -----------------
    # Input arrives pre-padded as the flat 20x20 grid.  One band load per kernel row
    # ki; the 5 kj variants are static lane-shifted slices of that band.
    for b in range(nb):
        for ki in range(5):
            band = x_ref[b, :, ki * _WP: ki * _WP + _BAND]          # (4, 320)
            for kj in range(5):
                t = 5 * ki + kj
                p1_ref[4 * t:4 * t + 4, b * _TW:(b + 1) * _TW] = band[:, kj:kj + _TW]
    y1 = jnp.dot(w1_ref[...], p1_ref[...], preferred_element_type=jnp.float32)
    y1 = jnp.maximum(y1 + b1_ref[...], 0.0)                         # (16, nb*316)

    # ---- conv2: 16 -> 8, 1x1, pad 2 ------------------------------------------------
    # Interior is a plain matmul; the padded ring of its 20x20 output is relu(b2).
    ring = jnp.maximum(b2_ref[...], 0.0)                            # (8, 1)
    ring_b = jnp.broadcast_to(ring, (8, _TW))
    y2 = jnp.dot(w2_ref[...], y1, preferred_element_type=jnp.float32)
    y2 = jnp.maximum(y2 + b2_ref[...], 0.0)                         # (8, nb*316)
    xp3_ref[...] = jnp.broadcast_to(ring, xp3_ref.shape)            # fill ring once
    for b in range(nb):
        # One wide shifted store per image: junk columns (w in 16..19) land exactly
        # on ring positions, so the select restores the constant there.
        xp3_ref[:, b * _NPIX + 42: b * _NPIX + 42 + _TW] = jnp.where(
            interior, y2[:, b * _TW:(b + 1) * _TW], ring_b)

    # ---- conv3: 8 -> 4, 5x5, pad 0 (im2col -> single MXU matmul) ------------------
    for b in range(nb):
        for ki in range(5):
            band = xp3_ref[:, b * _NPIX + ki * _WP: b * _NPIX + ki * _WP + _BAND]
            for kj in range(5):
                t = 5 * ki + kj
                p3_ref[8 * t:8 * t + 8, b * _TW:(b + 1) * _TW] = band[:, kj:kj + _TW]
    y3 = jnp.dot(w3_ref[...], p3_ref[...], preferred_element_type=jnp.float32)
    y3 = jnp.maximum(y3 + b3_ref[...], 0.0)                         # (4, nb*316)

    # ---- one lane-dense 316-wide output store per image (rows at padded stride 20;
    # the wrapper compacts stride 20 -> 16; the 4 trailing lanes per image are junk).
    for b in range(nb):
        o_ref[0, :, b * _OUTW: b * _OUTW + _TW] = y3[:, b * _TW:(b + 1) * _TW]


@partial(jax.jit, static_argnames=("nb",))
def _dama_forward_impl(x_nchw, prep, nb):
    N, C, H, W = x_nchw.shape
    g = N // nb
    # Pre-pad to the flat 20x20 grid (tiny wrapper-side op; replaces the in-kernel
    # per-row pad scatter).
    xpad = jnp.pad(x_nchw, ((0, 0), (0, 0), (2, 2), (2, 2))).reshape(N, C, _NPIX)

    out_flat = pl.pallas_call(
        _dama_kernel,
        out_shape=jax.ShapeDtypeStruct((g, 4, nb * _OUTW), jnp.float32),
        grid=(g,),
        in_specs=[
            pl.BlockSpec((nb, C, _NPIX), lambda i: (i, 0, 0)),   # padded input
            pl.BlockSpec((1, _TW), lambda i: (0, 0)),            # interior mask
            pl.BlockSpec((16, _K1), lambda i: (0, 0)),           # w1m
            pl.BlockSpec((16, 1), lambda i: (0, 0)),             # b1
            pl.BlockSpec((8, 16), lambda i: (0, 0)),             # w2m
            pl.BlockSpec((8, 1), lambda i: (0, 0)),              # b2
            pl.BlockSpec((4, _K3), lambda i: (0, 0)),            # w3m
            pl.BlockSpec((4, 1), lambda i: (0, 0)),              # b3
        ],
        out_specs=pl.BlockSpec((1, 4, nb * _OUTW), lambda i: (i, 0, 0)),
        scratch_shapes=[
            pltpu.VMEM((_K1, nb * _TW), jnp.float32),   # p1 : conv1 im2col patches
            pltpu.VMEM((8, nb * _NPIX), jnp.float32),   # xp3: conv2 20x20 output
            pltpu.VMEM((_K3, nb * _TW), jnp.float32),   # p3 : conv3 im2col patches
        ],
        compiler_params=pltpu.CompilerParams(
            dimension_semantics=("parallel",)),
    )(xpad, prep["mask"], prep["w1m"], prep["b1"], prep["w2m"], prep["b2"],
      prep["w3m"], prep["b3"])

    # stride-20 -> 16 compaction of the lane-dense slab, then back to NCHW.
    out = out_flat.reshape(g, 4, nb, _H, _WP)[..., :_W]
    out = jnp.transpose(out, (0, 2, 1, 3, 4)).reshape(N, 4, _H, _W)
    return out


def _pick_nb(n):
    """Images per grid step: fold the batch on 1-TC chips, keep 1/step on v7x."""
    kind = ""
    try:
        kind = jax.devices()[0].device_kind.lower()
    except Exception:
        pass
    if ("v7" in kind or "7x" in kind) and n % 2 == 0:
        return 1                      # 2 TensorCores -> keep grid=(N,) "parallel"
    if n in (1, 2):
        return n
    return 2 if n % 2 == 0 else 1


def dama_forward(x_nchw, prep):
    """x_nchw: (N, 4, 16, 16) float32 -> (N, 4, 16, 16) float32."""
    return _dama_forward_impl(x_nchw, prep, nb=_pick_nb(x_nchw.shape[0]))


def init_params(key):
    """Deterministic synthetic params, PyTorch OIHW layout + default Conv2d init."""
    def conv_init(k, cout, cin, kh, kw):
        wk, bk = jax.random.split(k)
        bound = (cin * kh * kw) ** -0.5
        w = jax.random.uniform(wk, (cout, cin, kh, kw), jnp.float32, -bound, bound)
        b = jax.random.uniform(bk, (cout,), jnp.float32, -bound, bound)
        return w, b

    k1, k2, k3 = jax.random.split(key, 3)
    w1, b1 = conv_init(k1, 16, 4, 5, 5)
    w2, b2 = conv_init(k2, 8, 16, 1, 1)
    w3, b3 = conv_init(k3, 4, 8, 5, 5)
    return dict(w1=w1, b1=b1, w2=w2, b2=b2, w3=w3, b3=b3)


def prepare_params(params):
    """Pre-pack OIHW conv weights into matmul-ready matrices (done once, host side)."""
    w1, b1 = params["w1"], params["b1"]            # (16,4,5,5), (16,)
    w2, b2 = params["w2"], params["b2"]            # (8,16,1,1), (8,)
    w3, b3 = params["w3"], params["b3"]            # (4,8,5,5),  (4,)
    # conv1: column = 4*(5*ki+kj) + ci  (matches 4 rows per tap in the patch matrix)
    w1m = jnp.transpose(w1, (0, 2, 3, 1)).reshape(16, _K1)    # (16,100)
    w2m = w2[:, :, 0, 0]                                      # (8,16)
    # conv3: column = 8*(5*ki+kj) + ci
    w3m = jnp.transpose(w3, (0, 2, 3, 1)).reshape(4, _K3)     # (4,200)
    # interior-column mask on the flattened padded grid: col % 20 < 16
    cols = jnp.arange(_TW, dtype=jnp.int32)
    mask = ((cols % _WP) < _W).astype(jnp.float32).reshape(1, _TW)
    return dict(w1m=w1m, b1=b1.reshape(16, 1),
                w2m=w2m, b2=b2.reshape(8, 1),
                w3m=w3m, b3=b3.reshape(4, 1),
                mask=mask)


def _ref_forward(x_nchw, params):
    """Pure-XLA reference (matches PyTorch Conv2d semantics exactly)."""
    def conv_relu(x, w, b, pad):
        y = lax.conv_general_dilated(
            x, w, window_strides=(1, 1),
            padding=[(pad, pad), (pad, pad)],
            dimension_numbers=("NCHW", "OIHW", "NCHW"))
        return jnp.maximum(y + b[None, :, None, None], 0.0)

    x = conv_relu(x_nchw, params["w1"], params["b1"], 2)
    x = conv_relu(x, params["w2"], params["b2"], 2)
    x = conv_relu(x, params["w3"], params["b3"], 0)
    return x


if __name__ == "__main__":
    key = jax.random.PRNGKey(0)
    pkey, xkey = jax.random.split(key)
    params = init_params(pkey)
    prep = prepare_params(params)

    # Small input consistent with the module: NCHW (batch=2, channels=4, 16x16).
    x = jax.random.normal(xkey, (2, 4, 16, 16), jnp.float32)

    out = jax.block_until_ready(dama_forward(x, prep))
    assert out.shape == (2, 4, 16, 16), out.shape

    ref = _ref_forward(x, params)
    assert jnp.allclose(out, ref, atol=1e-3, rtol=1e-3), "mismatch vs XLA conv reference"

    print("KERNEL_OK")
</pallas_src>

<mosaic_0001>
module attributes {stable_mosaic.version = 11 : i64} {
  func.func @_dama_kernel(%arg0: i32, %arg1: memref<2x4x400xf32, #tpu.memory_space<vmem>>, %arg2: memref<1x316xf32, #tpu.memory_space<vmem>>, %arg3: memref<16x100xf32, #tpu.memory_space<vmem>>, %arg4: memref<16x1xf32, #tpu.memory_space<vmem>>, %arg5: memref<8x16xf32, #tpu.memory_space<vmem>>, %arg6: memref<8x1xf32, #tpu.memory_space<vmem>>, %arg7: memref<4x200xf32, #tpu.memory_space<vmem>>, %arg8: memref<4x1xf32, #tpu.memory_space<vmem>>, %arg9: memref<1x4x640xf32, #tpu.memory_space<vmem>>, %arg10: memref<100x632xf32, #tpu.memory_space<vmem>>, %arg11: memref<8x800xf32, #tpu.memory_space<vmem>>, %arg12: memref<200x632xf32, #tpu.memory_space<vmem>>) attributes {dimension_semantics = [#tpu.dimension_semantics<parallel>], iteration_bounds = array<i64: 1>, scalar_prefetch = 0 : i64, scratch_operands = 3 : i64, tpu.core_type = #tpu.core_type<tc>, window_params = [{transform_indices = @transform_0, window_bounds = array<i64: 2, 4, 400>}, {pipeline_mode = #tpu.pipeline_mode<synchronous>, transform_indices = @transform_1, window_bounds = array<i64: 1, 316>}, {pipeline_mode = #tpu.pipeline_mode<synchronous>, transform_indices = @transform_2, window_bounds = array<i64: 16, 100>}, {pipeline_mode = #tpu.pipeline_mode<synchronous>, transform_indices = @transform_3, window_bounds = array<i64: 16, 1>}, {pipeline_mode = #tpu.pipeline_mode<synchronous>, transform_indices = @transform_4, window_bounds = array<i64: 8, 16>}, {pipeline_mode = #tpu.pipeline_mode<synchronous>, transform_indices = @transform_5, window_bounds = array<i64: 8, 1>}, {pipeline_mode = #tpu.pipeline_mode<synchronous>, transform_indices = @transform_6, window_bounds = array<i64: 4, 200>}, {pipeline_mode = #tpu.pipeline_mode<synchronous>, transform_indices = @transform_7, window_bounds = array<i64: 4, 1>}, {transform_indices = @transform_8, window_bounds = array<i64: 1, 4, 640>}]} {
    %c0 = arith.constant 0 : index
    %c0_0 = arith.constant 0 : index
    %0 = vector.load %arg2[%c0, %c0_0] : memref<1x316xf32, #tpu.memory_space<vmem>>, vector<1x316xf32>
    %cst = arith.constant 5.000000e-01 : f32
    %1 = vector.broadcast %cst : f32 to vector<1x316xf32>
    %2 = arith.cmpf ogt, %0, %1 : vector<1x316xf32>
    %c0_1 = arith.constant 0 : index
    %c0_2 = arith.constant 0 : index
    %c0_3 = arith.constant 0 : index
    %3 = vector.load %arg1[%c0_1, %c0_2, %c0_3] : memref<2x4x400xf32, #tpu.memory_space<vmem>>, vector<1x4x320xf32>
    %4 = vector.shape_cast %3 : vector<1x4x320xf32> to vector<4x320xf32>
    %5 = vector.extract_strided_slice %4 {offsets = [0, 0], sizes = [4, 316], strides = [1, 1]} : vector<4x320xf32> to vector<4x316xf32>
    %c0_4 = arith.constant 0 : index
    %c0_5 = arith.constant 0 : index
    %6 = vector.load %arg10[%c0_4, %c0_5] : memref<100x632xf32, #tpu.memory_space<vmem>>, vector<4x316xf32>
    tpu.vector_store %arg10[%c0_4, %c0_5], %5 {strides = array<i32>} : memref<100x632xf32, #tpu.memory_space<vmem>>, vector<4x316xf32>,
    %7 = vector.extract_strided_slice %4 {offsets = [0, 1], sizes = [4, 316], strides = [1, 1]} : vector<4x320xf32> to vector<4x316xf32>
    %c4 = arith.constant 4 : index
    %c0_6 = arith.constant 0 : index
    %8 = vector.load %arg10[%c4, %c0_6] : memref<100x632xf32, #tpu.memory_space<vmem>>, vector<4x316xf32>
    tpu.vector_store %arg10[%c4, %c0_6], %7 {strides = array<i32>} : memref<100x632xf32, #tpu.memory_space<vmem>>, vector<4x316xf32>,
    %9 = vector.extract_strided_slice %4 {offsets = [0, 2], sizes = [4, 316], strides = [1, 1]} : vector<4x320xf32> to vector<4x316xf32>
    %c8 = arith.constant 8 : index
    %c0_7 = arith.constant 0 : index
    %10 = vector.load %arg10[%c8, %c0_7] : memref<100x632xf32, #tpu.memory_space<vmem>>, vector<4x316xf32>
    tpu.vector_store %arg10[%c8, %c0_7], %9 {strides = array<i32>} : memref<100x632xf32, #tpu.memory_space<vmem>>, vector<4x316xf32>,
    %11 = vector.extract_strided_slice %4 {offsets = [0, 3], sizes = [4, 316], strides = [1, 1]} : vector<4x320xf32> to vector<4x316xf32>
    %c12 = arith.constant 12 : index
    %c0_8 = arith.constant 0 : index
    %12 = vector.load %arg10[%c12, %c0_8] : memref<100x632xf32, #tpu.memory_space<vmem>>, vector<4x316xf32>
    tpu.vector_store %arg10[%c12, %c0_8], %11 {strides = array<i32>} : memref<100x632xf32, #tpu.memory_space<vmem>>, vector<4x316xf32>,
    %13 = vector.extract_strided_slice %4 {offsets = [0, 4], sizes = [4, 316], strides = [1, 1]} : vector<4x320xf32> to vector<4x316xf32>
    %c16 = arith.constant 16 : index
    %c0_9 = arith.constant 0 : index
    %14 = vector.load %arg10[%c16, %c0_9] : memref<100x632xf32, #tpu.memory_space<vmem>>, vector<4x316xf32>
    tpu.vector_store %arg10[%c16, %c0_9], %13 {strides = array<i32>} : memref<100x632xf32, #tpu.memory_space<vmem>>, vector<4x316xf32>,
    %c0_10 = arith.constant 0 : index
    %c0_11 = arith.constant 0 : index
    %c20 = arith.constant 20 : index
    %15 = vector.load %arg1[%c0_10, %c0_11, %c20] : memref<2x4x400xf32, #tpu.memory_space<vmem>>, vector<1x4x320xf32>
    %16 = vector.shape_cast %15 : vector<1x4x320xf32> to vector<4x320xf32>
    %17 = vector.extract_strided_slice %16 {offsets = [0, 0], sizes = [4, 316], strides = [1, 1]} : vector<4x320xf32> to vector<4x316xf32>
    %c20_12 = arith.constant 20 : index
    %c0_13 = arith.constant 0 : index
    %18 = vector.load %arg10[%c20_12, %c0_13] : memref<100x632xf32, #tpu.memory_space<vmem>>, vector<4x316xf32>
    tpu.vector_store %arg10[%c20_12, %c0_13], %17 {strides = array<i32>} : memref<100x632xf32, #tpu.memory_space<vmem>>, vector<4x316xf32>,
    %19 = vector.extract_strided_slice %16 {offsets = [0, 1], sizes = [4, 316], strides = [1, 1]} : vector<4x320xf32> to vector<4x316xf32>
    %c24 = arith.constant 24 : index
    %c0_14 = arith.constant 0 : index
    %20 = vector.load %arg10[%c24, %c0_14] : memref<100x632xf32, #tpu.memory_space<vmem>>, vector<4x316xf32>
    tpu.vector_store %arg10[%c24, %c0_14], %19 {strides = array<i32>} : memref<100x632xf32, #tpu.memory_space<vmem>>, vector<4x316xf32>,
    %21 = vector.extract_strided_slice %16 {offsets = [0, 2], sizes = [4, 316], strides = [1, 1]} : vector<4x320xf32> to vector<4x316xf32>
    %c28 = arith.constant 28 : index
    %c0_15 = arith.constant 0 : index
    %22 = vector.load %arg10[%c28, %c0_15] : memref<100x632xf32, #tpu.memory_space<vmem>>, vector<4x316xf32>
    tpu.vector_store %arg10[%c28, %c0_15], %21 {strides = array<i32>} : memref<100x632xf32, #tpu.memory_space<vmem>>, vector<4x316xf32>,
    %23 = vector.extract_strided_slice %16 {offsets = [0, 3], sizes = [4, 316], strides = [1, 1]} : vector<4x320xf32> to vector<4x316xf32>
    %c32 = arith.constant 32 : index
    %c0_16 = arith.constant 0 : index
    %24 = vector.load %arg10[%c32, %c0_16] : memref<100x632xf32, #tpu.memory_space<vmem>>, vector<4x316xf32>
    tpu.vector_store %arg10[%c32, %c0_16], %23 {strides = array<i32>} : memref<100x632xf32, #tpu.memory_space<vmem>>, vector<4x316xf32>,
    %25 = vector.extract_strided_slice %16 {offsets = [0, 4], sizes = [4, 316], strides = [1, 1]} : vector<4x320xf32> to vector<4x316xf32>
    %c36 = arith.constant 36 : index
    %c0_17 = arith.constant 0 : index
    %26 = vector.load %arg10[%c36, %c0_17] : memref<100x632xf32, #tpu.memory_space<vmem>>, vector<4x316xf32>
    tpu.vector_store %arg10[%c36, %c0_17], %25 {strides = array<i32>} : memref<100x632xf32, #tpu.memory_space<vmem>>, vector<4x316xf32>,
    %c0_18 = arith.constant 0 : index
    %c0_19 = arith.constant 0 : index
    %c40 = arith.constant 40 : index
    %27 = vector.load %arg1[%c0_18, %c0_19, %c40] : memref<2x4x400xf32, #tpu.memory_space<vmem>>, vector<1x4x320xf32>
    %28 = vector.shape_cast %27 : vector<1x4x320xf32> to vector<4x320xf32>
    %29 = vector.extract_strided_slice %28 {offsets = [0, 0], sizes = [4, 316], strides = [1, 1]} : vector<4x320xf32> to vector<4x316xf32>
    %c40_20 = arith.constant 40 : index
    %c0_21 = arith.constant 0 : index
    %30 = vector.load %arg10[%c40_20, %c0_21] : memref<100x632xf32, #tpu.memory_space<vmem>>, vector<4x316xf32>
    tpu.vector_store %arg10[%c40_20, %c0_21], %29 {strides = array<i32>} : memref<100x632xf32, #tpu.memory_space<vmem>>, vector<4x316xf32>,
    %31 = vector.extract_strided_slice %28 {offsets = [0, 1], sizes = [4, 316], strides = [1, 1]} : vector<4x320xf32> to vector<4x316xf32>
    %c44 = arith.constant 44 : index
    %c0_22 = arith.constant 0 : index
    %32 = vector.load %arg10[%c44, %c0_22] : memref<100x632xf32, #tpu.memory_space<vmem>>, vector<4x316xf32>
    tpu.vector_store %arg10[%c44, %c0_22], %31 {strides = array<i32>} : memref<100x632xf32, #tpu.memory_space<vmem>>, vector<4x316xf32>,
    %33 = vector.extract_strided_slice %28 {offsets = [0, 2], sizes = [4, 316], strides = [1, 1]} : vector<4x320xf32> to vector<4x316xf32>
    %c48 = arith.constant 48 : index
    %c0_23 = arith.constant 0 : index
    %34 = vector.load %arg10[%c48, %c0_23] : memref<100x632xf32, #tpu.memory_space<vmem>>, vector<4x316xf32>
    tpu.vector_store %arg10[%c48, %c0_23], %33 {strides = array<i32>} : memref<100x632xf32, #tpu.memory_space<vmem>>, vector<4x316xf32>,
    %35 = vector.extract_strided_slice %28 {offsets = [0, 3], sizes = [4, 316], strides = [1, 1]} : vector<4x320xf32> to vector<4x316xf32>
    %c52 = arith.constant 52 : index
    %c0_24 = arith.constant 0 : index
    %36 = vector.load %arg10[%c52, %c0_24] : memref<100x632xf32, #tpu.memory_space<vmem>>, vector<4x316xf32>
    tpu.vector_store %arg10[%c52, %c0_24], %35 {strides = array<i32>} : memref<100x632xf32, #tpu.memory_space<vmem>>, vector<4x316xf32>,
    %37 = vector.extract_strided_slice %28 {offsets = [0, 4], sizes = [4, 316], strides = [1, 1]} : vector<4x320xf32> to vector<4x316xf32>
    %c56 = arith.constant 56 : index
    %c0_25 = arith.constant 0 : index
    %38 = vector.load %arg10[%c56, %c0_25] : memref<100x632xf32, #tpu.memory_space<vmem>>, vector<4x316xf32>
    tpu.vector_store %arg10[%c56, %c0_25], %37 {strides = array<i32>} : memref<100x632xf32, #tpu.memory_space<vmem>>, vector<4x316xf32>,
    %c0_26 = arith.constant 0 : index
    %c0_27 = arith.constant 0 : index
    %c60 = arith.constant 60 : index
    %39 = vector.load %arg1[%c0_26, %c0_27, %c60] : memref<2x4x400xf32, #tpu.memory_space<vmem>>, vector<1x4x320xf32>
    %40 = vector.shape_cast %39 : vector<1x4x320xf32> to vector<4x320xf32>
    %41 = vector.extract_strided_slice %40 {offsets = [0, 0], sizes = [4, 316], strides = [1, 1]} : vector<4x320xf32> to vector<4x316xf32>
    %c60_28 = arith.constant 60 : index
    %c0_29 = arith.constant 0 : index
    %42 = vector.load %arg10[%c60_28, %c0_29] : memref<100x632xf32, #tpu.memory_space<vmem>>, vector<4x316xf32>
    tpu.vector_store %arg10[%c60_28, %c0_29], %41 {strides = array<i32>} : memref<100x632xf32, #tpu.memory_space<vmem>>, vector<4x316xf32>,
    %43 = vector.extract_strided_slice %40 {offsets = [0, 1], sizes = [4, 316], strides = [1, 1]} : vector<4x320xf32> to vector<4x316xf32>
    %c64 = arith.constant 64 : index
    %c0_30 = arith.constant 0 : index
    %44 = vector.load %arg10[%c64, %c0_30] : memref<100x632xf32, #tpu.memory_space<vmem>>, vector<4x316xf32>
    tpu.vector_store %arg10[%c64, %c0_30], %43 {strides = array<i32>} : memref<100x632xf32, #tpu.memory_space<vmem>>, vector<4x316xf32>,
    %45 = vector.extract_strided_slice %40 {offsets = [0, 2], sizes = [4, 316], strides = [1, 1]} : vector<4x320xf32> to vector<4x316xf32>
    %c68 = arith.constant 68 : index
    %c0_31 = arith.constant 0 : index
    %46 = vector.load %arg10[%c68, %c0_31] : memref<100x632xf32, #tpu.memory_space<vmem>>, vector<4x316xf32>
    tpu.vector_store %arg10[%c68, %c0_31], %45 {strides = array<i32>} : memref<100x632xf32, #tpu.memory_space<vmem>>, vector<4x316xf32>,
    %47 = vector.extract_strided_slice %40 {offsets = [0, 3], sizes = [4, 316], strides = [1, 1]} : vector<4x320xf32> to vector<4x316xf32>
    %c72 = arith.constant 72 : index
    %c0_32 = arith.constant 0 : index
    %48 = vector.load %arg10[%c72, %c0_32] : memref<100x632xf32, #tpu.memory_space<vmem>>, vector<4x316xf32>
    tpu.vector_store %arg10[%c72, %c0_32], %47 {strides = array<i32>} : memref<100x632xf32, #tpu.memory_space<vmem>>, vector<4x316xf32>,
    %49 = vector.extract_strided_slice %40 {offsets = [0, 4], sizes = [4, 316], strides = [1, 1]} : vector<4x320xf32> to vector<4x316xf32>
    %c76 = arith.constant 76 : index
    %c0_33 = arith.constant 0 : index
    %50 = vector.load %arg10[%c76, %c0_33] : memref<100x632xf32, #tpu.memory_space<vmem>>, vector<4x316xf32>
    tpu.vector_store %arg10[%c76, %c0_33], %49 {strides = array<i32>} : memref<100x632xf32, #tpu.memory_space<vmem>>, vector<4x316xf32>,
    %c0_34 = arith.constant 0 : index
    %c0_35 = arith.constant 0 : index
    %c80 = arith.constant 80 : index
    %51 = vector.load %arg1[%c0_34, %c0_35, %c80] : memref<2x4x400xf32, #tpu.memory_space<vmem>>, vector<1x4x320xf32>
    %52 = vector.shape_cast %51 : vector<1x4x320xf32> to vector<4x320xf32>
    %53 = vector.extract_strided_slice %52 {offsets = [0, 0], sizes = [4, 316], strides = [1, 1]} : vector<4x320xf32> to vector<4x316xf32>
    %c80_36 = arith.constant 80 : index
    %c0_37 = arith.constant 0 : index
    %54 = vector.load %arg10[%c80_36, %c0_37] : memref<100x632xf32, #tpu.memory_space<vmem>>, vector<4x316xf32>
    tpu.vector_store %arg10[%c80_36, %c0_37], %53 {strides = array<i32>} : memref<100x632xf32, #tpu.memory_space<vmem>>, vector<4x316xf32>,
    %55 = vector.extract_strided_slice %52 {offsets = [0, 1], sizes = [4, 316], strides = [1, 1]} : vector<4x320xf32> to vector<4x316xf32>
    %c84 = arith.constant 84 : index
    %c0_38 = arith.constant 0 : index
    %56 = vector.load %arg10[%c84, %c0_38] : memref<100x632xf32, #tpu.memory_space<vmem>>, vector<4x316xf32>
    tpu.vector_store %arg10[%c84, %c0_38], %55 {strides = array<i32>} : memref<100x632xf32, #tpu.memory_space<vmem>>, vector<4x316xf32>,
    %57 = vector.extract_strided_slice %52 {offsets = [0, 2], sizes = [4, 316], strides = [1, 1]} : vector<4x320xf32> to vector<4x316xf32>
    %c88 = arith.constant 88 : index
    %c0_39 = arith.constant 0 : index
    %58 = vector.load %arg10[%c88, %c0_39] : memref<100x632xf32, #tpu.memory_space<vmem>>, vector<4x316xf32>
    tpu.vector_store %arg10[%c88, %c0_39], %57 {strides = array<i32>} : memref<100x632xf32, #tpu.memory_space<vmem>>, vector<4x316xf32>,
    %59 = vector.extract_strided_slice %52 {offsets = [0, 3], sizes = [4, 316], strides = [1, 1]} : vector<4x320xf32> to vector<4x316xf32>
    %c92 = arith.constant 92 : index
    %c0_40 = arith.constant 0 : index
    %60 = vector.load %arg10[%c92, %c0_40] : memref<100x632xf32, #tpu.memory_space<vmem>>, vector<4x316xf32>
    tpu.vector_store %arg10[%c92, %c0_40], %59 {strides = array<i32>} : memref<100x632xf32, #tpu.memory_space<vmem>>, vector<4x316xf32>,
    %61 = vector.extract_strided_slice %52 {offsets = [0, 4], sizes = [4, 316], strides = [1, 1]} : vector<4x320xf32> to vector<4x316xf32>
    %c96 = arith.constant 96 : index
    %c0_41 = arith.constant 0 : index
    %62 = vector.load %arg10[%c96, %c0_41] : memref<100x632xf32, #tpu.memory_space<vmem>>, vector<4x316xf32>
    tpu.vector_store %arg10[%c96, %c0_41], %61 {strides = array<i32>} : memref<100x632xf32, #tpu.memory_space<vmem>>, vector<4x316xf32>,
    %c1 = arith.constant 1 : index
    %c0_42 = arith.constant 0 : index
    %c0_43 = arith.constant 0 : index
    %63 = vector.load %arg1[%c1, %c0_42, %c0_43] : memref<2x4x400xf32, #tpu.memory_space<vmem>>, vector<1x4x320xf32>
    %64 = vector.shape_cast %63 : vector<1x4x320xf32> to vector<4x320xf32>
    %65 = vector.extract_strided_slice %64 {offsets = [0, 0], sizes = [4, 316], strides = [1, 1]} : vector<4x320xf32> to vector<4x316xf32>
    %c0_44 = arith.constant 0 : index
    %c316 = arith.constant 316 : index
    %66 = vector.load %arg10[%c0_44, %c316] : memref<100x632xf32, #tpu.memory_space<vmem>>, vector<4x316xf32>
    tpu.vector_store %arg10[%c0_44, %c316], %65 {strides = array<i32>} : memref<100x632xf32, #tpu.memory_space<vmem>>, vector<4x316xf32>,
    %67 = vector.extract_strided_slice %64 {offsets = [0, 1], sizes = [4, 316], strides = [1, 1]} : vector<4x320xf32> to vector<4x316xf32>
    %c4_45 = arith.constant 4 : index
    %c316_46 = arith.constant 316 : index
    %68 = vector.load %arg10[%c4_45, %c316_46] : memref<100x632xf32, #tpu.memory_space<vmem>>, vector<4x316xf32>
    tpu.vector_store %arg10[%c4_45, %c316_46], %67 {strides = array<i32>} : memref<100x632xf32, #tpu.memory_space<vmem>>, vector<4x316xf32>,
    %69 = vector.extract_strided_slice %64 {offsets = [0, 2], sizes = [4, 316], strides = [1, 1]} : vector<4x320xf32> to vector<4x316xf32>
    %c8_47 = arith.constant 8 : index
    %c316_48 = arith.constant 316 : index
    %70 = vector.load %arg10[%c8_47, %c316_48] : memref<100x632xf32, #tpu.memory_space<vmem>>, vector<4x316xf32>
    tpu.vector_store %arg10[%c8_47, %c316_48], %69 {strides = array<i32>} : memref<100x632xf32, #tpu.memory_space<vmem>>, vector<4x316xf32>,
    %71 = vector.extract_strided_slice %64 {offsets = [0, 3], sizes = [4, 316], strides = [1, 1]} : vector<4x320xf32> to vector<4x316xf32>
    %c12_49 = arith.constant 12 : index
    %c316_50 = arith.constant 316 : index
    %72 = vector.load %arg10[%c12_49, %c316_50] : memref<100x632xf32, #tpu.memory_space<vmem>>, vector<4x316xf32>
    tpu.vector_store %arg10[%c12_49, %c316_50], %71 {strides = array<i32>} : memref<100x632xf32, #tpu.memory_space<vmem>>, vector<4x316xf32>,
    %73 = vector.extract_strided_slice %64 {offsets = [0, 4], sizes = [4, 316], strides = [1, 1]} : vector<4x320xf32> to vector<4x316xf32>
    %c16_51 = arith.constant 16 : index
    %c316_52 = arith.constant 316 : index
    %74 = vector.load %arg10[%c16_51, %c316_52] : memref<100x632xf32, #tpu.memory_space<vmem>>, vector<4x316xf32>
    tpu.vector_store %arg10[%c16_51, %c316_52], %73 {strides = array<i32>} : memref<100x632xf32, #tpu.memory_space<vmem>>, vector<4x316xf32>,
    %c1_53 = arith.constant 1 : index
    %c0_54 = arith.constant 0 : index
    %c20_55 = arith.constant 20 : index
    %75 = vector.load %arg1[%c1_53, %c0_54, %c20_55] : memref<2x4x400xf32, #tpu.memory_space<vmem>>, vector<1x4x320xf32>
    %76 = vector.shape_cast %75 : vector<1x4x320xf32> to vector<4x320xf32>
    %77 = vector.extract_strided_slice %76 {offsets = [0, 0], sizes = [4, 316], strides = [1, 1]} : vector<4x320xf32> to vector<4x316xf32>
    %c20_56 = arith.constant 20 : index
    %c316_57 = arith.constant 316 : index
    %78 = vector.load %arg10[%c20_56, %c316_57] : memref<100x632xf32, #tpu.memory_space<vmem>>, vector<4x316xf32>
    tpu.vector_store %arg10[%c20_56, %c316_57], %77 {strides = array<i32>} : memref<100x632xf32, #tpu.memory_space<vmem>>, vector<4x316xf32>,
    %79 = vector.extract_strided_slice %76 {offsets = [0, 1], sizes = [4, 316], strides = [1, 1]} : vector<4x320xf32> to vector<4x316xf32>
    %c24_58 = arith.constant 24 : index
    %c316_59 = arith.constant 316 : index
    %80 = vector.load %arg10[%c24_58, %c316_59] : memref<100x632xf32, #tpu.memory_space<vmem>>, vector<4x316xf32>
    tpu.vector_store %arg10[%c24_58, %c316_59], %79 {strides = array<i32>} : memref<100x632xf32, #tpu.memory_space<vmem>>, vector<4x316xf32>,
    %81 = vector.extract_strided_slice %76 {offsets = [0, 2], sizes = [4, 316], strides = [1, 1]} : vector<4x320xf32> to vector<4x316xf32>
    %c28_60 = arith.constant 28 : index
    %c316_61 = arith.constant 316 : index
    %82 = vector.load %arg10[%c28_60, %c316_61] : memref<100x632xf32, #tpu.memory_space<vmem>>, vector<4x316xf32>
    tpu.vector_store %arg10[%c28_60, %c316_61], %81 {strides = array<i32>} : memref<100x632xf32, #tpu.memory_space<vmem>>, vector<4x316xf32>,
    %83 = vector.extract_strided_slice %76 {offsets = [0, 3], sizes = [4, 316], strides = [1, 1]} : vector<4x320xf32> to vector<4x316xf32>
    %c32_62 = arith.constant 32 : index
    %c316_63 = arith.constant 316 : index
    %84 = vector.load %arg10[%c32_62, %c316_63] : memref<100x632xf32, #tpu.memory_space<vmem>>, vector<4x316xf32>
    tpu.vector_store %arg10[%c32_62, %c316_63], %83 {strides = array<i32>} : memref<100x632xf32, #tpu.memory_space<vmem>>, vector<4x316xf32>,
    %85 = vector.extract_strided_slice %76 {offsets = [0, 4], sizes = [4, 316], strides = [1, 1]} : vector<4x320xf32> to vector<4x316xf32>
    %c36_64 = arith.constant 36 : index
    %c316_65 = arith.constant 316 : index
    %86 = vector.load %arg10[%c36_64, %c316_65] : memref<100x632xf32, #tpu.memory_space<vmem>>, vector<4x316xf32>
    tpu.vector_store %arg10[%c36_64, %c316_65], %85 {strides = array<i32>} : memref<100x632xf32, #tpu.memory_space<vmem>>, vector<4x316xf32>,
    %c1_66 = arith.constant 1 : index
    %c0_67 = arith.constant 0 : index
    %c40_68 = arith.constant 40 : index
    %87 = vector.load %arg1[%c1_66, %c0_67, %c40_68] : memref<2x4x400xf32, #tpu.memory_space<vmem>>, vector<1x4x320xf32>
    %88 = vector.shape_cast %87 : vector<1x4x320xf32> to vector<4x320xf32>
    %89 = vector.extract_strided_slice %88 {offsets = [0, 0], sizes = [4, 316], strides = [1, 1]} : vector<4x320xf32> to vector<4x316xf32>
    %c40_69 = arith.constant 40 : index
    %c316_70 = arith.constant 316 : index
    %90 = vector.load %arg10[%c40_69, %c316_70] : memref<100x632xf32, #tpu.memory_space<vmem>>, vector<4x316xf32>
    tpu.vector_store %arg10[%c40_69, %c316_70], %89 {strides = array<i32>} : memref<100x632xf32, #tpu.memory_space<vmem>>, vector<4x316xf32>,
    %91 = vector.extract_strided_slice %88 {offsets = [0, 1], sizes = [4, 316], strides = [1, 1]} : vector<4x320xf32> to vector<4x316xf32>
    %c44_71 = arith.constant 44 : index
    %c316_72 = arith.constant 316 : index
    %92 = vector.load %arg10[%c44_71, %c316_72] : memref<100x632xf32, #tpu.memory_space<vmem>>, vector<4x316xf32>
    tpu.vector_store %arg10[%c44_71, %c316_72], %91 {strides = array<i32>} : memref<100x632xf32, #tpu.memory_space<vmem>>, vector<4x316xf32>,
    %93 = vector.extract_strided_slice %88 {offsets = [0, 2], sizes = [4, 316], strides = [1, 1]} : vector<4x320xf32> to vector<4x316xf32>
    %c48_73 = arith.constant 48 : index
    %c316_74 = arith.constant 316 : index
    %94 = vector.load %arg10[%c48_73, %c316_74] : memref<100x632xf32, #tpu.memory_space<vmem>>, vector<4x316xf32>
    tpu.vector_store %arg10[%c48_73, %c316_74], %93 {strides = array<i32>} : memref<100x632xf32, #tpu.memory_space<vmem>>, vector<4x316xf32>,
    %95 = vector.extract_strided_slice %88 {offsets = [0, 3], sizes = [4, 316], strides = [1, 1]} : vector<4x320xf32> to vector<4x316xf32>
    %c52_75 = arith.constant 52 : index
    %c316_76 = arith.constant 316 : index
    %96 = vector.load %arg10[%c52_75, %c316_76] : memref<100x632xf32, #tpu.memory_space<vmem>>, vector<4x316xf32>
    tpu.vector_store %arg10[%c52_75, %c316_76], %95 {strides = array<i32>} : memref<100x632xf32, #tpu.memory_space<vmem>>, vector<4x316xf32>,
    %97 = vector.extract_strided_slice %88 {offsets = [0, 4], sizes = [4, 316], strides = [1, 1]} : vector<4x320xf32> to vector<4x316xf32>
    %c56_77 = arith.constant 56 : index
    %c316_78 = arith.constant 316 : index
    %98 = vector.load %arg10[%c56_77, %c316_78] : memref<100x632xf32, #tpu.memory_space<vmem>>, vector<4x316xf32>
    tpu.vector_store %arg10[%c56_77, %c316_78], %97 {strides = array<i32>} : memref<100x632xf32, #tpu.memory_space<vmem>>, vector<4x316xf32>,
    %c1_79 = arith.constant 1 : index
    %c0_80 = arith.constant 0 : index
    %c60_81 = arith.constant 60 : index
    %99 = vector.load %arg1[%c1_79, %c0_80, %c60_81] : memref<2x4x400xf32, #tpu.memory_space<vmem>>, vector<1x4x320xf32>
    %100 = vector.shape_cast %99 : vector<1x4x320xf32> to vector<4x320xf32>
    %101 = vector.extract_strided_slice %100 {offsets = [0, 0], sizes = [4, 316], strides = [1, 1]} : vector<4x320xf32> to vector<4x316xf32>
    %c60_82 = arith.constant 60 : index
    %c316_83 = arith.constant 316 : index
    %102 = vector.load %arg10[%c60_82, %c316_83] : memref<100x632xf32, #tpu.memory_space<vmem>>, vector<4x316xf32>
    tpu.vector_store %arg10[%c60_82, %c316_83], %101 {strides = array<i32>} : memref<100x632xf32, #tpu.memory_space<vmem>>, vector<4x316xf32>,
    %103 = vector.extract_strided_slice %100 {offsets = [0, 1], sizes = [4, 316], strides = [1, 1]} : vector<4x320xf32> to vector<4x316xf32>
    %c64_84 = arith.constant 64 : index
    %c316_85 = arith.constant 316 : index
    %104 = vector.load %arg10[%c64_84, %c316_85] : memref<100x632xf32, #tpu.memory_space<vmem>>, vector<4x316xf32>
    tpu.vector_store %arg10[%c64_84, %c316_85], %103 {strides = array<i32>} : memref<100x632xf32, #tpu.memory_space<vmem>>, vector<4x316xf32>,
    %105 = vector.extract_strided_slice %100 {offsets = [0, 2], sizes = [4, 316], strides = [1, 1]} : vector<4x320xf32> to vector<4x316xf32>
    %c68_86 = arith.constant 68 : index
    %c316_87 = arith.constant 316 : index
    %106 = vector.load %arg10[%c68_86, %c316_87] : memref<100x632xf32, #tpu.memory_space<vmem>>, vector<4x316xf32>
    tpu.vector_store %arg10[%c68_86, %c316_87], %105 {strides = array<i32>} : memref<100x632xf32, #tpu.memory_space<vmem>>, vector<4x316xf32>,
    %107 = vector.extract_strided_slice %100 {offsets = [0, 3], sizes = [4, 316], strides = [1, 1]} : vector<4x320xf32> to vector<4x316xf32>
    %c72_88 = arith.constant 72 : index
    %c316_89 = arith.constant 316 : index
    %108 = vector.load %arg10[%c72_88, %c316_89] : memref<100x632xf32, #tpu.memory_space<vmem>>, vector<4x316xf32>
    tpu.vector_store %arg10[%c72_88, %c316_89], %107 {strides = array<i32>} : memref<100x632xf32, #tpu.memory_space<vmem>>, vector<4x316xf32>,
    %109 = vector.extract_strided_slice %100 {offsets = [0, 4], sizes = [4, 316], strides = [1, 1]} : vector<4x320xf32> to vector<4x316xf32>
    %c76_90 = arith.constant 76 : index
    %c316_91 = arith.constant 316 : index
    %110 = vector.load %arg10[%c76_90, %c316_91] : memref<100x632xf32, #tpu.memory_space<vmem>>, vector<4x316xf32>
    tpu.vector_store %arg10[%c76_90, %c316_91], %109 {strides = array<i32>} : memref<100x632xf32, #tpu.memory_space<vmem>>, vector<4x316xf32>,
    %c1_92 = arith.constant 1 : index
    %c0_93 = arith.constant 0 : index
    %c80_94 = arith.constant 80 : index
    %111 = vector.load %arg1[%c1_92, %c0_93, %c80_94] : memref<2x4x400xf32, #tpu.memory_space<vmem>>, vector<1x4x320xf32>
    %112 = vector.shape_cast %111 : vector<1x4x320xf32> to vector<4x320xf32>
    %113 = vector.extract_strided_slice %112 {offsets = [0, 0], sizes = [4, 316], strides = [1, 1]} : vector<4x320xf32> to vector<4x316xf32>
    %c80_95 = arith.constant 80 : index
    %c316_96 = arith.constant 316 : index
    %114 = vector.load %arg10[%c80_95, %c316_96] : memref<100x632xf32, #tpu.memory_space<vmem>>, vector<4x316xf32>
    tpu.vector_store %arg10[%c80_95, %c316_96], %113 {strides = array<i32>} : memref<100x632xf32, #tpu.memory_space<vmem>>, vector<4x316xf32>,
    %115 = vector.extract_strided_slice %112 {offsets = [0, 1], sizes = [4, 316], strides = [1, 1]} : vector<4x320xf32> to vector<4x316xf32>
    %c84_97 = arith.constant 84 : index
    %c316_98 = arith.constant 316 : index
    %116 = vector.load %arg10[%c84_97, %c316_98] : memref<100x632xf32, #tpu.memory_space<vmem>>, vector<4x316xf32>
    tpu.vector_store %arg10[%c84_97, %c316_98], %115 {strides = array<i32>} : memref<100x632xf32, #tpu.memory_space<vmem>>, vector<4x316xf32>,
    %117 = vector.extract_strided_slice %112 {offsets = [0, 2], sizes = [4, 316], strides = [1, 1]} : vector<4x320xf32> to vector<4x316xf32>
    %c88_99 = arith.constant 88 : index
    %c316_100 = arith.constant 316 : index
    %118 = vector.load %arg10[%c88_99, %c316_100] : memref<100x632xf32, #tpu.memory_space<vmem>>, vector<4x316xf32>
    tpu.vector_store %arg10[%c88_99, %c316_100], %117 {strides = array<i32>} : memref<100x632xf32, #tpu.memory_space<vmem>>, vector<4x316xf32>,
    %119 = vector.extract_strided_slice %112 {offsets = [0, 3], sizes = [4, 316], strides = [1, 1]} : vector<4x320xf32> to vector<4x316xf32>
    %c92_101 = arith.constant 92 : index
    %c316_102 = arith.constant 316 : index
    %120 = vector.load %arg10[%c92_101, %c316_102] : memref<100x632xf32, #tpu.memory_space<vmem>>, vector<4x316xf32>
    tpu.vector_store %arg10[%c92_101, %c316_102], %119 {strides = array<i32>} : memref<100x632xf32, #tpu.memory_space<vmem>>, vector<4x316xf32>,
    %121 = vector.extract_strided_slice %112 {offsets = [0, 4], sizes = [4, 316], strides = [1, 1]} : vector<4x320xf32> to vector<4x316xf32>
    %c96_103 = arith.constant 96 : index
    %c316_104 = arith.constant 316 : index
    %122 = vector.load %arg10[%c96_103, %c316_104] : memref<100x632xf32, #tpu.memory_space<vmem>>, vector<4x316xf32>
    tpu.vector_store %arg10[%c96_103, %c316_104], %121 {strides = array<i32>} : memref<100x632xf32, #tpu.memory_space<vmem>>, vector<4x316xf32>,
    %c0_105 = arith.constant 0 : index
    %c0_106 = arith.constant 0 : index
    %123 = vector.load %arg3[%c0_105, %c0_106] : memref<16x100xf32, #tpu.memory_space<vmem>>, vector<16x100xf32>
    %c0_107 = arith.constant 0 : index
    %c0_108 = arith.constant 0 : index
    %124 = vector.load %arg10[%c0_107, %c0_108] : memref<100x632xf32, #tpu.memory_space<vmem>>, vector<100x632xf32>
    %cst_109 = arith.constant dense<0.000000e+00> : vector<16x632xf32>
    %125 = tpu.matmul %123, %124, %cst_109 {dimension_numbers = #tpu.dot_dimension_numbers<[1], [0], [0], [1], [0, 0, 1, 1], [], []>} : vector<16x100xf32>, vector<100x632xf32>, vector<16x632xf32> -> vector<16x632xf32>
    %c0_110 = arith.constant 0 : index
    %c0_111 = arith.constant 0 : index
    %126 = vector.load %arg4[%c0_110, %c0_111] : memref<16x1xf32, #tpu.memory_space<vmem>>, vector<16x1xf32>
    %127 = vector.broadcast %126 : vector<16x1xf32> to vector<16x632xf32>
    %128 = arith.addf %125, %127 : vector<16x632xf32>
    %cst_112 = arith.constant 0.000000e+00 : f32
    %129 = vector.broadcast %cst_112 : f32 to vector<16x632xf32>
    %130 = arith.maximumf %128, %129 : vector<16x632xf32>
    %c0_113 = arith.constant 0 : index
    %c0_114 = arith.constant 0 : index
    %131 = vector.load %arg6[%c0_113, %c0_114] : memref<8x1xf32, #tpu.memory_space<vmem>>, vector<8x1xf32>
    %cst_115 = arith.constant 0.000000e+00 : f32
    %132 = vector.broadcast %cst_115 : f32 to vector<8x1xf32>
    %133 = arith.maximumf %131, %132 : vector<8x1xf32>
    %134 = vector.shape_cast %133 : vector<8x1xf32> to vector<8x1xf32>
    %135 = vector.broadcast %134 : vector<8x1xf32> to vector<8x316xf32>
    %c0_116 = arith.constant 0 : index
    %c0_117 = arith.constant 0 : index
    %136 = vector.load %arg5[%c0_116, %c0_117] : memref<8x16xf32, #tpu.memory_space<vmem>>, vector<8x16xf32>
    %cst_118 = arith.constant dense<0.000000e+00> : vector<8x632xf32>
    %137 = tpu.matmul %136, %130, %cst_118 {dimension_numbers = #tpu.dot_dimension_numbers<[1], [0], [0], [1], [0, 0, 1, 1], [], []>} : vector<8x16xf32>, vector<16x632xf32>, vector<8x632xf32> -> vector<8x632xf32>
    %c0_119 = arith.constant 0 : index
    %c0_120 = arith.constant 0 : index
    %138 = vector.load %arg6[%c0_119, %c0_120] : memref<8x1xf32, #tpu.memory_space<vmem>>, vector<8x1xf32>
    %139 = vector.broadcast %138 : vector<8x1xf32> to vector<8x632xf32>
    %140 = arith.addf %137, %139 : vector<8x632xf32>
    %cst_121 = arith.constant 0.000000e+00 : f32
    %141 = vector.broadcast %cst_121 : f32 to vector<8x632xf32>
    %142 = arith.maximumf %140, %141 : vector<8x632xf32>
    %143 = vector.shape_cast %133 : vector<8x1xf32> to vector<8x1xf32>
    %144 = vector.broadcast %143 : vector<8x1xf32> to vector<8x800xf32>
    %c0_122 = arith.constant 0 : index
    %c0_123 = arith.constant 0 : index
    %145 = vector.load %arg11[%c0_122, %c0_123] : memref<8x800xf32, #tpu.memory_space<vmem>>, vector<8x800xf32>
    tpu.vector_store %arg11[%c0_122, %c0_123], %144 {strides = array<i32>} : memref<8x800xf32, #tpu.memory_space<vmem>>, vector<8x800xf32>,
    %146 = vector.extract_strided_slice %142 {offsets = [0, 0], sizes = [8, 316], strides = [1, 1]} : vector<8x632xf32> to vector<8x316xf32>
    %147 = vector.shape_cast %2 : vector<1x316xi1> to vector<1x316xi1>
    %148 = vector.broadcast %147 : vector<1x316xi1> to vector<8x316xi1>
    %149 = arith.select %148, %146, %135 : vector<8x316xi1>, vector<8x316xf32>
    %c0_124 = arith.constant 0 : index
    %c42 = arith.constant 42 : index
    %150 = vector.load %arg11[%c0_124, %c42] : memref<8x800xf32, #tpu.memory_space<vmem>>, vector<8x316xf32>
    tpu.vector_store %arg11[%c0_124, %c42], %149 {strides = array<i32>} : memref<8x800xf32, #tpu.memory_space<vmem>>, vector<8x316xf32>,
    %151 = vector.extract_strided_slice %142 {offsets = [0, 316], sizes = [8, 316], strides = [1, 1]} : vector<8x632xf32> to vector<8x316xf32>
    %152 = vector.shape_cast %2 : vector<1x316xi1> to vector<1x316xi1>
    %153 = vector.broadcast %152 : vector<1x316xi1> to vector<8x316xi1>
    %154 = arith.select %153, %151, %135 : vector<8x316xi1>, vector<8x316xf32>
    %c0_125 = arith.constant 0 : index
    %c442 = arith.constant 442 : index
    %155 = vector.load %arg11[%c0_125, %c442] : memref<8x800xf32, #tpu.memory_space<vmem>>, vector<8x316xf32>
    tpu.vector_store %arg11[%c0_125, %c442], %154 {strides = array<i32>} : memref<8x800xf32, #tpu.memory_space<vmem>>, vector<8x316xf32>,
    %c0_126 = arith.constant 0 : index
    %c0_127 = arith.constant 0 : index
    %156 = vector.load %arg11[%c0_126, %c0_127] : memref<8x800xf32, #tpu.memory_space<vmem>>, vector<8x320xf32>
    %157 = vector.extract_strided_slice %156 {offsets = [0, 0], sizes = [8, 316], strides = [1, 1]} : vector<8x320xf32> to vector<8x316xf32>
    %c0_128 = arith.constant 0 : index
    %c0_129 = arith.constant 0 : index
    %158 = vector.load %arg12[%c0_128, %c0_129] : memref<200x632xf32, #tpu.memory_space<vmem>>, vector<8x316xf32>
    tpu.vector_store %arg12[%c0_128, %c0_129], %157 {strides = array<i32>} : memref<200x632xf32, #tpu.memory_space<vmem>>, vector<8x316xf32>,
    %159 = vector.extract_strided_slice %156 {offsets = [0, 1], sizes = [8, 316], strides = [1, 1]} : vector<8x320xf32> to vector<8x316xf32>
    %c8_130 = arith.constant 8 : index
    %c0_131 = arith.constant 0 : index
    %160 = vector.load %arg12[%c8_130, %c0_131] : memref<200x632xf32, #tpu.memory_space<vmem>>, vector<8x316xf32>
    tpu.vector_store %arg12[%c8_130, %c0_131], %159 {strides = array<i32>} : memref<200x632xf32, #tpu.memory_space<vmem>>, vector<8x316xf32>,
    %161 = vector.extract_strided_slice %156 {offsets = [0, 2], sizes = [8, 316], strides = [1, 1]} : vector<8x320xf32> to vector<8x316xf32>
    %c16_132 = arith.constant 16 : index
    %c0_133 = arith.constant 0 : index
    %162 = vector.load %arg12[%c16_132, %c0_133] : memref<200x632xf32, #tpu.memory_space<vmem>>, vector<8x316xf32>
    tpu.vector_store %arg12[%c16_132, %c0_133], %161 {strides = array<i32>} : memref<200x632xf32, #tpu.memory_space<vmem>>, vector<8x316xf32>,
    %163 = vector.extract_strided_slice %156 {offsets = [0, 3], sizes = [8, 316], strides = [1, 1]} : vector<8x320xf32> to vector<8x316xf32>
    %c24_134 = arith.constant 24 : index
    %c0_135 = arith.constant 0 : index
    %164 = vector.load %arg12[%c24_134, %c0_135] : memref<200x632xf32, #tpu.memory_space<vmem>>, vector<8x316xf32>
    tpu.vector_store %arg12[%c24_134, %c0_135], %163 {strides = array<i32>} : memref<200x632xf32, #tpu.memory_space<vmem>>, vector<8x316xf32>,
    %165 = vector.extract_strided_slice %156 {offsets = [0, 4], sizes = [8, 316], strides = [1, 1]} : vector<8x320xf32> to vector<8x316xf32>
    %c32_136 = arith.constant 32 : index
    %c0_137 = arith.constant 0 : index
    %166 = vector.load %arg12[%c32_136, %c0_137] : memref<200x632xf32, #tpu.memory_space<vmem>>, vector<8x316xf32>
    tpu.vector_store %arg12[%c32_136, %c0_137], %165 {strides = array<i32>} : memref<200x632xf32, #tpu.memory_space<vmem>>, vector<8x316xf32>,
    %c0_138 = arith.constant 0 : index
    %c20_139 = arith.constant 20 : index
    %167 = vector.load %arg11[%c0_138, %c20_139] : memref<8x800xf32, #tpu.memory_space<vmem>>, vector<8x320xf32>
    %168 = vector.extract_strided_slice %167 {offsets = [0, 0], sizes = [8, 316], strides = [1, 1]} : vector<8x320xf32> to vector<8x316xf32>
    %c40_140 = arith.constant 40 : index
    %c0_141 = arith.constant 0 : index
    %169 = vector.load %arg12[%c40_140, %c0_141] : memref<200x632xf32, #tpu.memory_space<vmem>>, vector<8x316xf32>
    tpu.vector_store %arg12[%c40_140, %c0_141], %168 {strides = array<i32>} : memref<200x632xf32, #tpu.memory_space<vmem>>, vector<8x316xf32>,
    %170 = vector.extract_strided_slice %167 {offsets = [0, 1], sizes = [8, 316], strides = [1, 1]} : vector<8x320xf32> to vector<8x316xf32>
    %c48_142 = arith.constant 48 : index
    %c0_143 = arith.constant 0 : index
    %171 = vector.load %arg12[%c48_142, %c0_143] : memref<200x632xf32, #tpu.memory_space<vmem>>, vector<8x316xf32>
    tpu.vector_store %arg12[%c48_142, %c0_143], %170 {strides = array<i32>} : memref<200x632xf32, #tpu.memory_space<vmem>>, vector<8x316xf32>,
    %172 = vector.extract_strided_slice %167 {offsets = [0, 2], sizes = [8, 316], strides = [1, 1]} : vector<8x320xf32> to vector<8x316xf32>
    %c56_144 = arith.constant 56 : index
    %c0_145 = arith.constant 0 : index
    %173 = vector.load %arg12[%c56_144, %c0_145] : memref<200x632xf32, #tpu.memory_space<vmem>>, vector<8x316xf32>
    tpu.vector_store %arg12[%c56_144, %c0_145], %172 {strides = array<i32>} : memref<200x632xf32, #tpu.memory_space<vmem>>, vector<8x316xf32>,
    %174 = vector.extract_strided_slice %167 {offsets = [0, 3], sizes = [8, 316], strides = [1, 1]} : vector<8x320xf32> to vector<8x316xf32>
    %c64_146 = arith.constant 64 : index
    %c0_147 = arith.constant 0 : index
    %175 = vector.load %arg12[%c64_146, %c0_147] : memref<200x632xf32, #tpu.memory_space<vmem>>, vector<8x316xf32>
    tpu.vector_store %arg12[%c64_146, %c0_147], %174 {strides = array<i32>} : memref<200x632xf32, #tpu.memory_space<vmem>>, vector<8x316xf32>,
    %176 = vector.extract_strided_slice %167 {offsets = [0, 4], sizes = [8, 316], strides = [1, 1]} : vector<8x320xf32> to vector<8x316xf32>
    %c72_148 = arith.constant 72 : index
    %c0_149 = arith.constant 0 : index
    %177 = vector.load %arg12[%c72_148, %c0_149] : memref<200x632xf32, #tpu.memory_space<vmem>>, vector<8x316xf32>
    tpu.vector_store %arg12[%c72_148, %c0_149], %176 {strides = array<i32>} : memref<200x632xf32, #tpu.memory_space<vmem>>, vector<8x316xf32>,
    %c0_150 = arith.constant 0 : index
    %c40_151 = arith.constant 40 : index
    %178 = vector.load %arg11[%c0_150, %c40_151] : memref<8x800xf32, #tpu.memory_space<vmem>>, vector<8x320xf32>
    %179 = vector.extract_strided_slice %178 {offsets = [0, 0], sizes = [8, 316], strides = [1, 1]} : vector<8x320xf32> to vector<8x316xf32>
    %c80_152 = arith.constant 80 : index
    %c0_153 = arith.constant 0 : index
    %180 = vector.load %arg12[%c80_152, %c0_153] : memref<200x632xf32, #tpu.memory_space<vmem>>, vector<8x316xf32>
    tpu.vector_store %arg12[%c80_152, %c0_153], %179 {strides = array<i32>} : memref<200x632xf32, #tpu.memory_space<vmem>>, vector<8x316xf32>,
    %181 = vector.extract_strided_slice %178 {offsets = [0, 1], sizes = [8, 316], strides = [1, 1]} : vector<8x320xf32> to vector<8x316xf32>
    %c88_154 = arith.constant 88 : index
    %c0_155 = arith.constant 0 : index
    %182 = vector.load %arg12[%c88_154, %c0_155] : memref<200x632xf32, #tpu.memory_space<vmem>>, vector<8x316xf32>
    tpu.vector_store %arg12[%c88_154, %c0_155], %181 {strides = array<i32>} : memref<200x632xf32, #tpu.memory_space<vmem>>, vector<8x316xf32>,
    %183 = vector.extract_strided_slice %178 {offsets = [0, 2], sizes = [8, 316], strides = [1, 1]} : vector<8x320xf32> to vector<8x316xf32>
    %c96_156 = arith.constant 96 : index
    %c0_157 = arith.constant 0 : index
    %184 = vector.load %arg12[%c96_156, %c0_157] : memref<200x632xf32, #tpu.memory_space<vmem>>, vector<8x316xf32>
    tpu.vector_store %arg12[%c96_156, %c0_157], %183 {strides = array<i32>} : memref<200x632xf32, #tpu.memory_space<vmem>>, vector<8x316xf32>,
    %185 = vector.extract_strided_slice %178 {offsets = [0, 3], sizes = [8, 316], strides = [1, 1]} : vector<8x320xf32> to vector<8x316xf32>
    %c104 = arith.constant 104 : index
    %c0_158 = arith.constant 0 : index
    %186 = vector.load %arg12[%c104, %c0_158] : memref<200x632xf32, #tpu.memory_space<vmem>>, vector<8x316xf32>
    tpu.vector_store %arg12[%c104, %c0_158], %185 {strides = array<i32>} : memref<200x632xf32, #tpu.memory_space<vmem>>, vector<8x316xf32>,
    %187 = vector.extract_strided_slice %178 {offsets = [0, 4], sizes = [8, 316], strides = [1, 1]} : vector<8x320xf32> to vector<8x316xf32>
    %c112 = arith.constant 112 : index
    %c0_159 = arith.constant 0 : index
    %188 = vector.load %arg12[%c112, %c0_159] : memref<200x632xf32, #tpu.memory_space<vmem>>, vector<8x316xf32>
    tpu.vector_store %arg12[%c112, %c0_159], %187 {strides = array<i32>} : memref<200x632xf32, #tpu.memory_space<vmem>>, vector<8x316xf32>,
    %c0_160 = arith.constant 0 : index
    %c60_161 = arith.constant 60 : index
    %189 = vector.load %arg11[%c0_160, %c60_161] : memref<8x800xf32, #tpu.memory_space<vmem>>, vector<8x320xf32>
    %190 = vector.extract_strided_slice %189 {offsets = [0, 0], sizes = [8, 316], strides = [1, 1]} : vector<8x320xf32> to vector<8x316xf32>
    %c120 = arith.constant 120 : index
    %c0_162 = arith.constant 0 : index
    %191 = vector.load %arg12[%c120, %c0_162] : memref<200x632xf32, #tpu.memory_space<vmem>>, vector<8x316xf32>
    tpu.vector_store %arg12[%c120, %c0_162], %190 {strides = array<i32>} : memref<200x632xf32, #tpu.memory_space<vmem>>, vector<8x316xf32>,
    %192 = vector.extract_strided_slice %189 {offsets = [0, 1], sizes = [8, 316], strides = [1, 1]} : vector<8x320xf32> to vector<8x316xf32>
    %c128 = arith.constant 128 : index
    %c0_163 = arith.constant 0 : index
    %193 = vector.load %arg12[%c128, %c0_163] : memref<200x632xf32, #tpu.memory_space<vmem>>, vector<8x316xf32>
    tpu.vector_store %arg12[%c128, %c0_163], %192 {strides = array<i32>} : memref<200x632xf32, #tpu.memory_space<vmem>>, vector<8x316xf32>,
    %194 = vector.extract_strided_slice %189 {offsets = [0, 2], sizes = [8, 316], strides = [1, 1]} : vector<8x320xf32> to vector<8x316xf32>
    %c136 = arith.constant 136 : index
    %c0_164 = arith.constant 0 : index
    %195 = vector.load %arg12[%c136, %c0_164] : memref<200x632xf32, #tpu.memory_space<vmem>>, vector<8x316xf32>
    tpu.vector_store %arg12[%c136, %c0_164], %194 {strides = array<i32>} : memref<200x632xf32, #tpu.memory_space<vmem>>, vector<8x316xf32>,
    %196 = vector.extract_strided_slice %189 {offsets = [0, 3], sizes = [8, 316], strides = [1, 1]} : vector<8x320xf32> to vector<8x316xf32>
    %c144 = arith.constant 144 : index
    %c0_165 = arith.constant 0 : index
    %197 = vector.load %arg12[%c144, %c0_165] : memref<200x632xf32, #tpu.memory_space<vmem>>, vector<8x316xf32>
    tpu.vector_store %arg12[%c144, %c0_165], %196 {strides = array<i32>} : memref<200x632xf32, #tpu.memory_space<vmem>>, vector<8x316xf32>,
    %198 = vector.extract_strided_slice %189 {offsets = [0, 4], sizes = [8, 316], strides = [1, 1]} : vector<8x320xf32> to vector<8x316xf32>
    %c152 = arith.constant 152 : index
    %c0_166 = arith.constant 0 : index
    %199 = vector.load %arg12[%c152, %c0_166] : memref<200x632xf32, #tpu.memory_space<vmem>>, vector<8x316xf32>
    tpu.vector_store %arg12[%c152, %c0_166], %198 {strides = array<i32>} : memref<200x632xf32, #tpu.memory_space<vmem>>, vector<8x316xf32>,
    %c0_167 = arith.constant 0 : index
    %c80_168 = arith.constant 80 : index
    %200 = vector.load %arg11[%c0_167, %c80_168] : memref<8x800xf32, #tpu.memory_space<vmem>>, vector<8x320xf32>
    %201 = vector.extract_strided_slice %200 {offsets = [0, 0], sizes = [8, 316], strides = [1, 1]} : vector<8x320xf32> to vector<8x316xf32>
    %c160 = arith.constant 160 : index
    %c0_169 = arith.constant 0 : index
    %202 = vector.load %arg12[%c160, %c0_169] : memref<200x632xf32, #tpu.memory_space<vmem>>, vector<8x316xf32>
    tpu.vector_store %arg12[%c160, %c0_169], %201 {strides = array<i32>} : memref<200x632xf32, #tpu.memory_space<vmem>>, vector<8x316xf32>,
    %203 = vector.extract_strided_slice %200 {offsets = [0, 1], sizes = [8, 316], strides = [1, 1]} : vector<8x320xf32> to vector<8x316xf32>
    %c168 = arith.constant 168 : index
    %c0_170 = arith.constant 0 : index
    %204 = vector.load %arg12[%c168, %c0_170] : memref<200x632xf32, #tpu.memory_space<vmem>>, vector<8x316xf32>
    tpu.vector_store %arg12[%c168, %c0_170], %203 {strides = array<i32>} : memref<200x632xf32, #tpu.memory_space<vmem>>, vector<8x316xf32>,
    %205 = vector.extract_strided_slice %200 {offsets = [0, 2], sizes = [8, 316], strides = [1, 1]} : vector<8x320xf32> to vector<8x316xf32>
    %c176 = arith.constant 176 : index
    %c0_171 = arith.constant 0 : index
    %206 = vector.load %arg12[%c176, %c0_171] : memref<200x632xf32, #tpu.memory_space<vmem>>, vector<8x316xf32>
    tpu.vector_store %arg12[%c176, %c0_171], %205 {strides = array<i32>} : memref<200x632xf32, #tpu.memory_space<vmem>>, vector<8x316xf32>,
    %207 = vector.extract_strided_slice %200 {offsets = [0, 3], sizes = [8, 316], strides = [1, 1]} : vector<8x320xf32> to vector<8x316xf32>
    %c184 = arith.constant 184 : index
    %c0_172 = arith.constant 0 : index
    %208 = vector.load %arg12[%c184, %c0_172] : memref<200x632xf32, #tpu.memory_space<vmem>>, vector<8x316xf32>
    tpu.vector_store %arg12[%c184, %c0_172], %207 {strides = array<i32>} : memref<200x632xf32, #tpu.memory_space<vmem>>, vector<8x316xf32>,
    %209 = vector.extract_strided_slice %200 {offsets = [0, 4], sizes = [8, 316], strides = [1, 1]} : vector<8x320xf32> to vector<8x316xf32>
    %c192 = arith.constant 192 : index
    %c0_173 = arith.constant 0 : index
    %210 = vector.load %arg12[%c192, %c0_173] : memref<200x632xf32, #tpu.memory_space<vmem>>, vector<8x316xf32>
    tpu.vector_store %arg12[%c192, %c0_173], %209 {strides = array<i32>} : memref<200x632xf32, #tpu.memory_space<vmem>>, vector<8x316xf32>,
    %c0_174 = arith.constant 0 : index
    %c400 = arith.constant 400 : index
    %211 = vector.load %arg11[%c0_174, %c400] : memref<8x800xf32, #tpu.memory_space<vmem>>, vector<8x320xf32>
    %212 = vector.extract_strided_slice %211 {offsets = [0, 0], sizes = [8, 316], strides = [1, 1]} : vector<8x320xf32> to vector<8x316xf32>
    %c0_175 = arith.constant 0 : index
    %c316_176 = arith.constant 316 : index
    %213 = vector.load %arg12[%c0_175, %c316_176] : memref<200x632xf32, #tpu.memory_space<vmem>>, vector<8x316xf32>
    tpu.vector_store %arg12[%c0_175, %c316_176], %212 {strides = array<i32>} : memref<200x632xf32, #tpu.memory_space<vmem>>, vector<8x316xf32>,
    %214 = vector.extract_strided_slice %211 {offsets = [0, 1], sizes = [8, 316], strides = [1, 1]} : vector<8x320xf32> to vector<8x316xf32>
    %c8_177 = arith.constant 8 : index
    %c316_178 = arith.constant 316 : index
    %215 = vector.load %arg12[%c8_177, %c316_178] : memref<200x632xf32, #tpu.memory_space<vmem>>, vector<8x316xf32>
    tpu.vector_store %arg12[%c8_177, %c316_178], %214 {strides = array<i32>} : memref<200x632xf32, #tpu.memory_space<vmem>>, vector<8x316xf32>,
    %216 = vector.extract_strided_slice %211 {offsets = [0, 2], sizes = [8, 316], strides = [1, 1]} : vector<8x320xf32> to vector<8x316xf32>
    %c16_179 = arith.constant 16 : index
    %c316_180 = arith.constant 316 : index
    %217 = vector.load %arg12[%c16_179, %c316_180] : memref<200x632xf32, #tpu.memory_space<vmem>>, vector<8x316xf32>
    tpu.vector_store %arg12[%c16_179, %c316_180], %216 {strides = array<i32>} : memref<200x632xf32, #tpu.memory_space<vmem>>, vector<8x316xf32>,
    %218 = vector.extract_strided_slice %211 {offsets = [0, 3], sizes = [8, 316], strides = [1, 1]} : vector<8x320xf32> to vector<8x316xf32>
    %c24_181 = arith.constant 24 : index
    %c316_182 = arith.constant 316 : index
    %219 = vector.load %arg12[%c24_181, %c316_182] : memref<200x632xf32, #tpu.memory_space<vmem>>, vector<8x316xf32>
    tpu.vector_store %arg12[%c24_181, %c316_182], %218 {strides = array<i32>} : memref<200x632xf32, #tpu.memory_space<vmem>>, vector<8x316xf32>,
    %220 = vector.extract_strided_slice %211 {offsets = [0, 4], sizes = [8, 316], strides = [1, 1]} : vector<8x320xf32> to vector<8x316xf32>
    %c32_183 = arith.constant 32 : index
    %c316_184 = arith.constant 316 : index
    %221 = vector.load %arg12[%c32_183, %c316_184] : memref<200x632xf32, #tpu.memory_space<vmem>>, vector<8x316xf32>
    tpu.vector_store %arg12[%c32_183, %c316_184], %220 {strides = array<i32>} : memref<200x632xf32, #tpu.memory_space<vmem>>, vector<8x316xf32>,
    %c0_185 = arith.constant 0 : index
    %c420 = arith.constant 420 : index
    %222 = vector.load %arg11[%c0_185, %c420] : memref<8x800xf32, #tpu.memory_space<vmem>>, vector<8x320xf32>
    %223 = vector.extract_strided_slice %222 {offsets = [0, 0], sizes = [8, 316], strides = [1, 1]} : vector<8x320xf32> to vector<8x316xf32>
    %c40_186 = arith.constant 40 : index
    %c316_187 = arith.constant 316 : index
    %224 = vector.load %arg12[%c40_186, %c316_187] : memref<200x632xf32, #tpu.memory_space<vmem>>, vector<8x316xf32>
    tpu.vector_store %arg12[%c40_186, %c316_187], %223 {strides = array<i32>} : memref<200x632xf32, #tpu.memory_space<vmem>>, vector<8x316xf32>,
    %225 = vector.extract_strided_slice %222 {offsets = [0, 1], sizes = [8, 316], strides = [1, 1]} : vector<8x320xf32> to vector<8x316xf32>
    %c48_188 = arith.constant 48 : index
    %c316_189 = arith.constant 316 : index
    %226 = vector.load %arg12[%c48_188, %c316_189] : memref<200x632xf32, #tpu.memory_space<vmem>>, vector<8x316xf32>
    tpu.vector_store %arg12[%c48_188, %c316_189], %225 {strides = array<i32>} : memref<200x632xf32, #tpu.memory_space<vmem>>, vector<8x316xf32>,
    %227 = vector.extract_strided_slice %222 {offsets = [0, 2], sizes = [8, 316], strides = [1, 1]} : vector<8x320xf32> to vector<8x316xf32>
    %c56_190 = arith.constant 56 : index
    %c316_191 = arith.constant 316 : index
    %228 = vector.load %arg12[%c56_190, %c316_191] : memref<200x632xf32, #tpu.memory_space<vmem>>, vector<8x316xf32>
    tpu.vector_store %arg12[%c56_190, %c316_191], %227 {strides = array<i32>} : memref<200x632xf32, #tpu.memory_space<vmem>>, vector<8x316xf32>,
    %229 = vector.extract_strided_slice %222 {offsets = [0, 3], sizes = [8, 316], strides = [1, 1]} : vector<8x320xf32> to vector<8x316xf32>
    %c64_192 = arith.constant 64 : index
    %c316_193 = arith.constant 316 : index
    %230 = vector.load %arg12[%c64_192, %c316_193] : memref<200x632xf32, #tpu.memory_space<vmem>>, vector<8x316xf32>
    tpu.vector_store %arg12[%c64_192, %c316_193], %229 {strides = array<i32>} : memref<200x632xf32, #tpu.memory_space<vmem>>, vector<8x316xf32>,
    %231 = vector.extract_strided_slice %222 {offsets = [0, 4], sizes = [8, 316], strides = [1, 1]} : vector<8x320xf32> to vector<8x316xf32>
    %c72_194 = arith.constant 72 : index
    %c316_195 = arith.constant 316 : index
    %232 = vector.load %arg12[%c72_194, %c316_195] : memref<200x632xf32, #tpu.memory_space<vmem>>, vector<8x316xf32>
    tpu.vector_store %arg12[%c72_194, %c316_195], %231 {strides = array<i32>} : memref<200x632xf32, #tpu.memory_space<vmem>>, vector<8x316xf32>,
    %c0_196 = arith.constant 0 : index
    %c440 = arith.constant 440 : index
    %233 = vector.load %arg11[%c0_196, %c440] : memref<8x800xf32, #tpu.memory_space<vmem>>, vector<8x320xf32>
    %234 = vector.extract_strided_slice %233 {offsets = [0, 0], sizes = [8, 316], strides = [1, 1]} : vector<8x320xf32> to vector<8x316xf32>
    %c80_197 = arith.constant 80 : index
    %c316_198 = arith.constant 316 : index
    %235 = vector.load %arg12[%c80_197, %c316_198] : memref<200x632xf32, #tpu.memory_space<vmem>>, vector<8x316xf32>
    tpu.vector_store %arg12[%c80_197, %c316_198], %234 {strides = array<i32>} : memref<200x632xf32, #tpu.memory_space<vmem>>, vector<8x316xf32>,
    %236 = vector.extract_strided_slice %233 {offsets = [0, 1], sizes = [8, 316], strides = [1, 1]} : vector<8x320xf32> to vector<8x316xf32>
    %c88_199 = arith.constant 88 : index
    %c316_200 = arith.constant 316 : index
    %237 = vector.load %arg12[%c88_199, %c316_200] : memref<200x632xf32, #tpu.memory_space<vmem>>, vector<8x316xf32>
    tpu.vector_store %arg12[%c88_199, %c316_200], %236 {strides = array<i32>} : memref<200x632xf32, #tpu.memory_space<vmem>>, vector<8x316xf32>,
    %238 = vector.extract_strided_slice %233 {offsets = [0, 2], sizes = [8, 316], strides = [1, 1]} : vector<8x320xf32> to vector<8x316xf32>
    %c96_201 = arith.constant 96 : index
    %c316_202 = arith.constant 316 : index
    %239 = vector.load %arg12[%c96_201, %c316_202] : memref<200x632xf32, #tpu.memory_space<vmem>>, vector<8x316xf32>
    tpu.vector_store %arg12[%c96_201, %c316_202], %238 {strides = array<i32>} : memref<200x632xf32, #tpu.memory_space<vmem>>, vector<8x316xf32>,
    %240 = vector.extract_strided_slice %233 {offsets = [0, 3], sizes = [8, 316], strides = [1, 1]} : vector<8x320xf32> to vector<8x316xf32>
    %c104_203 = arith.constant 104 : index
    %c316_204 = arith.constant 316 : index
    %241 = vector.load %arg12[%c104_203, %c316_204] : memref<200x632xf32, #tpu.memory_space<vmem>>, vector<8x316xf32>
    tpu.vector_store %arg12[%c104_203, %c316_204], %240 {strides = array<i32>} : memref<200x632xf32, #tpu.memory_space<vmem>>, vector<8x316xf32>,
    %242 = vector.extract_strided_slice %233 {offsets = [0, 4], sizes = [8, 316], strides = [1, 1]} : vector<8x320xf32> to vector<8x316xf32>
    %c112_205 = arith.constant 112 : index
    %c316_206 = arith.constant 316 : index
    %243 = vector.load %arg12[%c112_205, %c316_206] : memref<200x632xf32, #tpu.memory_space<vmem>>, vector<8x316xf32>
    tpu.vector_store %arg12[%c112_205, %c316_206], %242 {strides = array<i32>} : memref<200x632xf32, #tpu.memory_space<vmem>>, vector<8x316xf32>,
    %c0_207 = arith.constant 0 : index
    %c460 = arith.constant 460 : index
    %244 = vector.load %arg11[%c0_207, %c460] : memref<8x800xf32, #tpu.memory_space<vmem>>, vector<8x320xf32>
    %245 = vector.extract_strided_slice %244 {offsets = [0, 0], sizes = [8, 316], strides = [1, 1]} : vector<8x320xf32> to vector<8x316xf32>
    %c120_208 = arith.constant 120 : index
    %c316_209 = arith.constant 316 : index
    %246 = vector.load %arg12[%c120_208, %c316_209] : memref<200x632xf32, #tpu.memory_space<vmem>>, vector<8x316xf32>
    tpu.vector_store %arg12[%c120_208, %c316_209], %245 {strides = array<i32>} : memref<200x632xf32, #tpu.memory_space<vmem>>, vector<8x316xf32>,
    %247 = vector.extract_strided_slice %244 {offsets = [0, 1], sizes = [8, 316], strides = [1, 1]} : vector<8x320xf32> to vector<8x316xf32>
    %c128_210 = arith.constant 128 : index
    %c316_211 = arith.constant 316 : index
    %248 = vector.load %arg12[%c128_210, %c316_211] : memref<200x632xf32, #tpu.memory_space<vmem>>, vector<8x316xf32>
    tpu.vector_store %arg12[%c128_210, %c316_211], %247 {strides = array<i32>} : memref<200x632xf32, #tpu.memory_space<vmem>>, vector<8x316xf32>,
    %249 = vector.extract_strided_slice %244 {offsets = [0, 2], sizes = [8, 316], strides = [1, 1]} : vector<8x320xf32> to vector<8x316xf32>
    %c136_212 = arith.constant 136 : index
    %c316_213 = arith.constant 316 : index
    %250 = vector.load %arg12[%c136_212, %c316_213] : memref<200x632xf32, #tpu.memory_space<vmem>>, vector<8x316xf32>
    tpu.vector_store %arg12[%c136_212, %c316_213], %249 {strides = array<i32>} : memref<200x632xf32, #tpu.memory_space<vmem>>, vector<8x316xf32>,
    %251 = vector.extract_strided_slice %244 {offsets = [0, 3], sizes = [8, 316], strides = [1, 1]} : vector<8x320xf32> to vector<8x316xf32>
    %c144_214 = arith.constant 144 : index
    %c316_215 = arith.constant 316 : index
    %252 = vector.load %arg12[%c144_214, %c316_215] : memref<200x632xf32, #tpu.memory_space<vmem>>, vector<8x316xf32>
    tpu.vector_store %arg12[%c144_214, %c316_215], %251 {strides = array<i32>} : memref<200x632xf32, #tpu.memory_space<vmem>>, vector<8x316xf32>,
    %253 = vector.extract_strided_slice %244 {offsets = [0, 4], sizes = [8, 316], strides = [1, 1]} : vector<8x320xf32> to vector<8x316xf32>
    %c152_216 = arith.constant 152 : index
    %c316_217 = arith.constant 316 : index
    %254 = vector.load %arg12[%c152_216, %c316_217] : memref<200x632xf32, #tpu.memory_space<vmem>>, vector<8x316xf32>
    tpu.vector_store %arg12[%c152_216, %c316_217], %253 {strides = array<i32>} : memref<200x632xf32, #tpu.memory_space<vmem>>, vector<8x316xf32>,
    %c0_218 = arith.constant 0 : index
    %c480 = arith.constant 480 : index
    %255 = vector.load %arg11[%c0_218, %c480] : memref<8x800xf32, #tpu.memory_space<vmem>>, vector<8x320xf32>
    %256 = vector.extract_strided_slice %255 {offsets = [0, 0], sizes = [8, 316], strides = [1, 1]} : vector<8x320xf32> to vector<8x316xf32>
    %c160_219 = arith.constant 160 : index
    %c316_220 = arith.constant 316 : index
    %257 = vector.load %arg12[%c160_219, %c316_220] : memref<200x632xf32, #tpu.memory_space<vmem>>, vector<8x316xf32>
    tpu.vector_store %arg12[%c160_219, %c316_220], %256 {strides = array<i32>} : memref<200x632xf32, #tpu.memory_space<vmem>>, vector<8x316xf32>,
    %258 = vector.extract_strided_slice %255 {offsets = [0, 1], sizes = [8, 316], strides = [1, 1]} : vector<8x320xf32> to vector<8x316xf32>
    %c168_221 = arith.constant 168 : index
    %c316_222 = arith.constant 316 : index
    %259 = vector.load %arg12[%c168_221, %c316_222] : memref<200x632xf32, #tpu.memory_space<vmem>>, vector<8x316xf32>
    tpu.vector_store %arg12[%c168_221, %c316_222], %258 {strides = array<i32>} : memref<200x632xf32, #tpu.memory_space<vmem>>, vector<8x316xf32>,
    %260 = vector.extract_strided_slice %255 {offsets = [0, 2], sizes = [8, 316], strides = [1, 1]} : vector<8x320xf32> to vector<8x316xf32>
    %c176_223 = arith.constant 176 : index
    %c316_224 = arith.constant 316 : index
    %261 = vector.load %arg12[%c176_223, %c316_224] : memref<200x632xf32, #tpu.memory_space<vmem>>, vector<8x316xf32>
    tpu.vector_store %arg12[%c176_223, %c316_224], %260 {strides = array<i32>} : memref<200x632xf32, #tpu.memory_space<vmem>>, vector<8x316xf32>,
    %262 = vector.extract_strided_slice %255 {offsets = [0, 3], sizes = [8, 316], strides = [1, 1]} : vector<8x320xf32> to vector<8x316xf32>
    %c184_225 = arith.constant 184 : index
    %c316_226 = arith.constant 316 : index
    %263 = vector.load %arg12[%c184_225, %c316_226] : memref<200x632xf32, #tpu.memory_space<vmem>>, vector<8x316xf32>
    tpu.vector_store %arg12[%c184_225, %c316_226], %262 {strides = array<i32>} : memref<200x632xf32, #tpu.memory_space<vmem>>, vector<8x316xf32>,
    %264 = vector.extract_strided_slice %255 {offsets = [0, 4], sizes = [8, 316], strides = [1, 1]} : vector<8x320xf32> to vector<8x316xf32>
    %c192_227 = arith.constant 192 : index
    %c316_228 = arith.constant 316 : index
    %265 = vector.load %arg12[%c192_227, %c316_228] : memref<200x632xf32, #tpu.memory_space<vmem>>, vector<8x316xf32>
    tpu.vector_store %arg12[%c192_227, %c316_228], %264 {strides = array<i32>} : memref<200x632xf32, #tpu.memory_space<vmem>>, vector<8x316xf32>,
    %c0_229 = arith.constant 0 : index
    %c0_230 = arith.constant 0 : index
    %266 = vector.load %arg7[%c0_229, %c0_230] : memref<4x200xf32, #tpu.memory_space<vmem>>, vector<4x200xf32>
    %c0_231 = arith.constant 0 : index
    %c0_232 = arith.constant 0 : index
    %267 = vector.load %arg12[%c0_231, %c0_232] : memref<200x632xf32, #tpu.memory_space<vmem>>, vector<200x632xf32>
    %cst_233 = arith.constant dense<0.000000e+00> : vector<4x632xf32>
    %268 = tpu.matmul %266, %267, %cst_233 {dimension_numbers = #tpu.dot_dimension_numbers<[1], [0], [0], [1], [0, 0, 1, 1], [], []>} : vector<4x200xf32>, vector<200x632xf32>, vector<4x632xf32> -> vector<4x632xf32>
    %c0_234 = arith.constant 0 : index
    %c0_235 = arith.constant 0 : index
    %269 = vector.load %arg8[%c0_234, %c0_235] : memref<4x1xf32, #tpu.memory_space<vmem>>, vector<4x1xf32>
    %270 = vector.broadcast %269 : vector<4x1xf32> to vector<4x632xf32>
    %271 = arith.addf %268, %270 : vector<4x632xf32>
    %cst_236 = arith.constant 0.000000e+00 : f32
    %272 = vector.broadcast %cst_236 : f32 to vector<4x632xf32>
    %273 = arith.maximumf %271, %272 : vector<4x632xf32>
    %274 = vector.extract_strided_slice %273 {offsets = [0, 0], sizes = [4, 316], strides = [1, 1]} : vector<4x632xf32> to vector<4x316xf32>
    %c0_237 = arith.constant 0 : index
    %c0_238 = arith.constant 0 : index
    %c0_239 = arith.constant 0 : index
    %275 = vector.load %arg9[%c0_237, %c0_238, %c0_239] : memref<1x4x640xf32, #tpu.memory_space<vmem>>, vector<1x4x316xf32>
    %276 = vector.shape_cast %275 : vector<1x4x316xf32> to vector<4x316xf32>
    %277 = vector.shape_cast %274 : vector<4x316xf32> to vector<1x4x316xf32>
    tpu.vector_store %arg9[%c0_237, %c0_238, %c0_239], %277 {strides = array<i32>} : memref<1x4x640xf32, #tpu.memory_space<vmem>>, vector<1x4x316xf32>,
    %278 = vector.extract_strided_slice %273 {offsets = [0, 316], sizes = [4, 316], strides = [1, 1]} : vector<4x632xf32> to vector<4x316xf32>
    %c0_240 = arith.constant 0 : index
    %c0_241 = arith.constant 0 : index
    %c320 = arith.constant 320 : index
    %279 = vector.load %arg9[%c0_240, %c0_241, %c320] : memref<1x4x640xf32, #tpu.memory_space<vmem>>, vector<1x4x316xf32>
    %280 = vector.shape_cast %279 : vector<1x4x316xf32> to vector<4x316xf32>
    %281 = vector.shape_cast %278 : vector<4x316xf32> to vector<1x4x316xf32>
    tpu.vector_store %arg9[%c0_240, %c0_241, %c320], %281 {strides = array<i32>} : memref<1x4x640xf32, #tpu.memory_space<vmem>>, vector<1x4x316xf32>,
    return
  }
  func.func @transform_0(%arg0: i32) -> (i32, i32, i32) {
    %c0_i32 = arith.constant 0 : i32
    %c0_i32_0 = arith.constant 0 : i32
    %c0_i32_1 = arith.constant 0 : i32
    return %arg0, %c0_i32, %c0_i32_0 : i32, i32, i32
  }
  func.func @transform_1(%arg0: i32) -> (i32, i32) {
    %c0_i32 = arith.constant 0 : i32
    %c0_i32_0 = arith.constant 0 : i32
    %c0_i32_1 = arith.constant 0 : i32
    return %c0_i32, %c0_i32_0 : i32, i32
  }
  func.func @transform_2(%arg0: i32) -> (i32, i32) {
    %c0_i32 = arith.constant 0 : i32
    %c0_i32_0 = arith.constant 0 : i32
    %c0_i32_1 = arith.constant 0 : i32
    return %c0_i32, %c0_i32_0 : i32, i32
  }
  func.func @transform_3(%arg0: i32) -> (i32, i32) {
    %c0_i32 = arith.constant 0 : i32
    %c0_i32_0 = arith.constant 0 : i32
    %c0_i32_1 = arith.constant 0 : i32
    return %c0_i32, %c0_i32_0 : i32, i32
  }
  func.func @transform_4(%arg0: i32) -> (i32, i32) {
    %c0_i32 = arith.constant 0 : i32
    %c0_i32_0 = arith.constant 0 : i32
    %c0_i32_1 = arith.constant 0 : i32
    return %c0_i32, %c0_i32_0 : i32, i32
  }
  func.func @transform_5(%arg0: i32) -> (i32, i32) {
    %c0_i32 = arith.constant 0 : i32
    %c0_i32_0 = arith.constant 0 : i32
    %c0_i32_1 = arith.constant 0 : i32
    return %c0_i32, %c0_i32_0 : i32, i32
  }
  func.func @transform_6(%arg0: i32) -> (i32, i32) {
    %c0_i32 = arith.constant 0 : i32
    %c0_i32_0 = arith.constant 0 : i32
    %c0_i32_1 = arith.constant 0 : i32
    return %c0_i32, %c0_i32_0 : i32, i32
  }
  func.func @transform_7(%arg0: i32) -> (i32, i32) {
    %c0_i32 = arith.constant 0 : i32
    %c0_i32_0 = arith.constant 0 : i32
    %c0_i32_1 = arith.constant 0 : i32
    return %c0_i32, %c0_i32_0 : i32, i32
  }
  func.func @transform_8(%arg0: i32) -> (i32, i32, i32) {
    %c0_i32 = arith.constant 0 : i32
    %c0_i32_0 = arith.constant 0 : i32
    %c0_i32_1 = arith.constant 0 : i32
    return %arg0, %c0_i32, %c0_i32_0 : i32, i32, i32
  }
}

</mosaic_0001>

<bundles_post_ra>
// kernel: _dama_forward_impl.1
= control target key start
LH: loop header
LB: loop body
LE: loop exit
PB: predicated region body
PF: predicated region fallthrough
CT: control target
= control target key end

     0   :  { %vm39_vm0 = vcmask 486400   ;;  %s3082_s9 = smov 126   ;;  %s3083_s10 = smov 127   ;;  %vm488_vm1 = vcmask 982020   ;;  %vm49_vm2 = vcmask 1039360   ;;  %vm57_vm3 = vcmask 490500   ;;  %s4924_s0 = inlined_call_operand.vmem [shape: f32[2,4,400], index: 0, kind: input, shape index: {}]   ;;  %s4925_s2 = inlined_call_operand.vmem [shape: f32[16,100], index: 2, kind: input, shape index: {}]   ;;  %s4926_s3 = inlined_call_operand.vmem [shape: f32[16,1], index: 3, kind: input, shape index: {}]   ;;  %s4927_s5 = inlined_call_operand.vmem [shape: f32[8,1], index: 5, kind: input, shape index: {}]   ;;  %s4928_s4 = inlined_call_operand.vmem [shape: f32[8,16], index: 4, kind: input, shape index: {}]   ;;  %s4929_s1 = inlined_call_operand.vmem [shape: f32[1,316], index: 1, kind: input, shape index: {}]   ;;  %s4930_s6 = inlined_call_operand.vmem [shape: f32[4,200], index: 6, kind: input, shape index: {}]   ;;  %s4931_s7 = inlined_call_operand.vmem [shape: f32[4,1], index: 7, kind: input, shape index: {}]   ;;  %s4932_s8 = inlined_call_operand.vmem [shape: f32[1,4,640], index: 8, kind: output, shape index: {}]  }
   0x1   :  { %v32_v0 = vld [vmem:[%s4924_s0 + $0x8] sm:$0xf]  ;;  %v3195_v1 = vld [vmem:[%s4924_s0] sm:$0xff]  ;;  %s3084_s11 = smov 125   ;;  %v3220_v5 = vld [vmem:[%s4924_s0 + $0x10] sm:$0xff]  ;;  %s4972_s14 = smov 124  }
   0x2   :  { %63 = vrot.lane.b32.xlu1 %v32_v0, %s3082_s9  ;;  %45 = vrot.lane.b32.xlu0 %v3195_v1, %s3083_s10  ;;  %37 = vst [vmem:[#allocation2] sm:$0xf] %v3195_v1  ;;  %v42_v2 = vcombine.low %v32_v0, %v32_v0  ;;  %v3203_v3 = vcombine.high %v3195_v1, %v3195_v1  ;;  %40 = vst.msk [vmem:[#allocation2 + $0x10] sm:$0xf] %vm39_vm0, %v32_v0  ;;  %v105_v6 = vld [vmem:[%s4924_s0 + $0x8] sm:$0xf] }
   0x3   :  { %v3215_v4 = vcombine.low %v3195_v1, %v3195_v1  ;;  %708 = vst [vmem:[#allocation2 + $0x130] sm:$0xf0] %v3220_v5  ;;  %s3086_s17 = smov 108   ;;  %v109_v7 = vcombine.low %v105_v6, %v105_v6  ;;  %s3087_s18 = smov 107   ;;  %v187_v8 = vld [vmem:[%s4924_s0 + $0x8] sm:$0xf]  ;;  %v3379_v44 = vcombine.high %v3220_v5, %v3220_v5  ;;  %v3383_v45 = vcombine.low %v3220_v5, %v3220_v5 }
   0x4   :  { %38 = vst [vmem:[#allocation2 + $0x8] sm:$0xf] %v3203_v3  ;;  %s3088_s19 = smov 106   ;;  %s3089_s20 = smov 105   ;;  %v207_v9 = vcombine.low %v187_v8, %v187_v8  ;;  %v269_v10 = vld [vmem:[%s4924_s0 + $0x8] sm:$0xf] }
   0x5   :  { %s3090_s21 = smov 104   ;;  %s4941_s22 = smov 88   ;;  %v3289_v11 = vld [vmem:[%s4924_s0 + $0x18] sm:$0xf]  ;;  %v273_v12 = vcombine.low %v269_v10, %v269_v10  ;;  %v3334_v14 = vld [vmem:[%s4924_s0 + $0x8] sm:$0xff]  ;;  %vm65_vm4 = vcmask 1031168  }
   0x6   :  { %47 = vrot.lane.b32.xlu0 %v42_v2, %s3083_s10  ;;  %61 = vrot.lane.b32.xlu1 %v3203_v3, %s3082_s9  ;;  %s4949_s25 = smov 87   ;;  %s4939_s26 = smov 86   ;;  %v3296_v13 = vcombine.low %v3289_v11, %v3289_v11  ;;  %v375_v17 = vcombine.low %v3334_v14, %v3334_v14  ;;  %vm80_vm5 = vcmask 1022976   ;;  %vm4996_vm6 = vcmask 1014784  }
   0x7   :  { %s4947_s27 = smov 85   ;;  %s4937_s28 = smov 84   ;;  %vm4979_vm7 = vcmask 883712   ;;  %vm4978_vm8 = vcmask 875520   ;;  %vm4977_vm9 = vcmask 867328   ;;  %v5014_v57 = vmov 0.0  }
   0x8   :  { %s4951_s15 = smov 68   ;;  %709 = vst.msk [vmem:[#allocation2 + $0x138] sm:$0xf0] %vm488_vm1, %v3296_v13  ;;  %s4935_s16 = smov 67   ;;  %1026 = vmatprep.mubr.f32.mxu0 %v5014_v57  ;;  %1281 = vmatprep.mubr.f32.mxu1 %v5014_v57  ;;  %vm4976_vm10 = vcmask 859136   ;;  %vm4961_vm11 = vcmask 850944  }
   0x9   :  { %s4945_s23 = smov 66   ;;  %s4933_s24 = smov 65   ;;  %vm4960_vm12 = vcmask 719872   ;;  %vm4957_vm13 = vcmask 711680   ;;  %vm4966_vm14 = vcmask 703488   ;;  %vm4965_vm15 = vcmask 695296  }
   0xa   :  { %76 = vrot.lane.b32.xlu0 %v3195_v1, %s3084_s11  ;;  %78 = vrot.lane.b32.xlu1 %v42_v2, %s3084_s11  ;;  %s4943_s29 = smov 64   ;;  %s4970_s30 = smov 48  }
   0xb   :  { %s3103_s12 = smov 46   ;;  %s3104_s13 = smov 45  }
   0xe   :  { %43 = vrot.lane.b32.xlu0 %v3215_v4, %s3083_s10  ;;  %59 = vrot.lane.b32.xlu1 %v3195_v1, %s3082_s9 }
  0x12   :  { %74 = vrot.lane.b32.xlu0 %v3215_v4, %s3084_s11  ;;  %91 = vrot.lane.b32.xlu1 %v3203_v3, %s4972_s14 }
  0x16   :  { %93 = vrot.lane.b32.xlu0 %v32_v0, %s4972_s14  ;;  %112 = vrot.lane.b32.xlu1 %v3195_v1, %s3086_s17 }
  0x1a   :  { %114 = vrot.lane.b32.xlu0 %v109_v7, %s3086_s17  ;;  %128 = vrot.lane.b32.xlu1 %v3203_v3, %s3087_s18 }
  0x1e   :  { %130 = vrot.lane.b32.xlu0 %v105_v6, %s3087_s18  ;;  %143 = vrot.lane.b32.xlu1 %v3195_v1, %s3088_s19 }
  0x22   :  { %145 = vrot.lane.b32.xlu0 %v109_v7, %s3088_s19  ;;  %89 = vrot.lane.b32.xlu1 %v3195_v1, %s4972_s14 }
  0x26   :  { %110 = vrot.lane.b32.xlu0 %v3215_v4, %s3086_s17  ;;  %126 = vrot.lane.b32.xlu1 %v3195_v1, %s3087_s18 }
  0x2a   :  { %141 = vrot.lane.b32.xlu0 %v3215_v4, %s3088_s19  ;;  %158 = vrot.lane.b32.xlu1 %v3203_v3, %s3089_s20 }
  0x2e   :  { %160 = vrot.lane.b32.xlu0 %v105_v6, %s3089_s20  ;;  %173 = vrot.lane.b32.xlu1 %v3195_v1, %s3090_s21 }
  0x32   :  { %175 = vrot.lane.b32.xlu0 %v109_v7, %s3090_s21  ;;  %193 = vrot.lane.b32.xlu1 %v3203_v3, %s4941_s22 }
  0x36   :  { %195 = vrot.lane.b32.xlu0 %v187_v8, %s4941_s22  ;;  %210 = vrot.lane.b32.xlu1 %v3195_v1, %s4949_s25 }
  0x3a   :  { %212 = vrot.lane.b32.xlu0 %v207_v9, %s4949_s25  ;;  %156 = vrot.lane.b32.xlu1 %v3195_v1, %s3089_s20 }
  0x3e   :  { %171 = vrot.lane.b32.xlu0 %v3215_v4, %s3090_s21  ;;  %191 = vrot.lane.b32.xlu1 %v3195_v1, %s4941_s22  ;;  %s3108_s22 = smov 58  }
  0x42   :  { %208 = vrot.lane.b32.xlu0 %v3215_v4, %s4949_s25  ;;  %225 = vrot.lane.b32.xlu1 %v3203_v3, %s4939_s26  ;;  %s4953_s25 = smov 39  }
  0x46   :  { %227 = vrot.lane.b32.xlu0 %v187_v8, %s4939_s26  ;;  %240 = vrot.lane.b32.xlu1 %v3195_v1, %s4947_s27 }
  0x4a   :  { %242 = vrot.lane.b32.xlu0 %v207_v9, %s4947_s27  ;;  %255 = vrot.lane.b32.xlu1 %v3203_v3, %s4937_s28 }
  0x4e   :  { %257 = vrot.lane.b32.xlu0 %v187_v8, %s4937_s28  ;;  %276 = vrot.lane.b32.xlu1 %v3195_v1, %s4951_s15 }
  0x52   :  { %278 = vrot.lane.b32.xlu0 %v273_v12, %s4951_s15  ;;  %223 = vrot.lane.b32.xlu1 %v3195_v1, %s4939_s26  ;;  %s3107_s26 = smov 59  }
  0x56   :  { %238 = vrot.lane.b32.xlu0 %v3215_v4, %s4947_s27  ;;  %253 = vrot.lane.b32.xlu1 %v3195_v1, %s4937_s28  ;;  %s3106_s28 = smov 60   ;;  %s3112_s27 = smov 40  }
  0x5a   :  { %274 = vrot.lane.b32.xlu0 %v3215_v4, %s4951_s15  ;;  %292 = vrot.lane.b32.xlu1 %v3203_v3, %s4935_s16  ;;  %s4954_s15 = smov 38  }
  0x5e   :  { %294 = vrot.lane.b32.xlu0 %v269_v10, %s4935_s16  ;;  %307 = vrot.lane.b32.xlu1 %v3195_v1, %s4945_s23 }
  0x62   :  { %309 = vrot.lane.b32.xlu0 %v273_v12, %s4945_s23  ;;  %322 = vrot.lane.b32.xlu1 %v3203_v3, %s4933_s24 }
  0x66   :  { %324 = vrot.lane.b32.xlu0 %v269_v10, %s4933_s24  ;;  %337 = vrot.lane.b32.xlu1 %v3195_v1, %s4943_s29 }
  0x6a   :  { %339 = vrot.lane.b32.xlu0 %v273_v12, %s4943_s29  ;;  %290 = vrot.lane.b32.xlu1 %v3195_v1, %s4935_s16  ;;  %s3105_s16 = smov 44  }
  0x6e   :  { %305 = vrot.lane.b32.xlu0 %v3215_v4, %s4945_s23  ;;  %320 = vrot.lane.b32.xlu1 %v3195_v1, %s4933_s24  ;;  %s3102_s24 = smov 47   ;;  %s3111_s23 = smov 56  }
  0x72   :  { %335 = vrot.lane.b32.xlu0 %v3215_v4, %s4943_s29  ;;  %358 = vrot.lane.b32.xlu1 %v3203_v3, %s4970_s30  ;;  %s3109_s29 = smov 57  }
  0x74   :  { %v64_v15 = vpop.permute.xlu1 %63  ;;  %v46_v16 = vpop.permute.xlu0 %45 }
  0x75   :  { %73 = vst.msk [vmem:[#allocation2 + $0x38] sm:$0xf] %vm39_vm0, %v64_v15 }
  0x76   :  { %360 = vrot.lane.b32.xlu0 %v3334_v14, %s4970_s30  ;;  %378 = vrot.lane.b32.xlu1 %v3195_v1, %s3102_s24 }
  0x78   :  { %v48_v18 = vpop.permute.xlu0 %47  ;;  %v62_v19 = vpop.permute.xlu1 %61 }
  0x79   :  { %v51_v20 = vsel %vm49_vm2, %v46_v16, %v48_v18  ;;  %58 = vst.msk [vmem:[#allocation2 + $0x10] sm:$0xf0] %vm57_vm3, %v48_v18  ;;  %v67_v21 = vsel %vm65_vm4, %v62_v19, %v64_v15 }
  0x7a   :  { %56 = vst [vmem:[#allocation2 + $0x8] sm:$0xf0] %v51_v20  ;;  %72 = vst [vmem:[#allocation2 + $0x30] sm:$0xf] %v67_v21  ;;  %380 = vrot.lane.b32.xlu0 %v375_v17, %s3102_s24  ;;  %396 = vrot.lane.b32.xlu1 %v3203_v3, %s3103_s12 }
  0x7c   :  { %v77_v22 = vpop.permute.xlu0 %76  ;;  %v79_v23 = vpop.permute.xlu1 %78 }
  0x7d   :  { %v82_v24 = vsel %vm80_vm5, %v77_v22, %v79_v23  ;;  %88 = vst.msk [vmem:[#allocation2 + $0x38] sm:$0xf0] %vm57_vm3, %v79_v23 }
  0x7e   :  { %87 = vst [vmem:[#allocation2 + $0x30] sm:$0xf0] %v82_v24  ;;  %398 = vrot.lane.b32.xlu0 %v3334_v14, %s3103_s12  ;;  %414 = vrot.lane.b32.xlu1 %v3195_v1, %s3104_s13 }
  0x80   :  { %v44_v25 = vpop.permute.xlu0 %43  ;;  %v60_v26 = vpop.permute.xlu1 %59 }
  0x81   :  { %v50_v27 = vsel %vm49_vm2, %v44_v25, %v46_v16  ;;  %v66_v28 = vsel %vm65_vm4, %v60_v26, %v62_v19  ;;  %v863_v32 = vld [vmem:[#allocation2 + $0x8] sm:$0xff] }
  0x82   :  { %55 = vst [vmem:[#allocation2] sm:$0xf0] %v50_v27  ;;  %71 = vst [vmem:[#allocation2 + $0x28] sm:$0xf] %v66_v28  ;;  %416 = vrot.lane.b32.xlu0 %v375_v17, %s3104_s13  ;;  %356 = vrot.lane.b32.xlu1 %v3195_v1, %s4970_s30 }
  0x84   :  { %v75_v29 = vpop.permute.xlu0 %74  ;;  %v92_v30 = vpop.permute.xlu1 %91 }
  0x85   :  { %v81_v31 = vsel %vm80_vm5, %v75_v29, %v77_v22  ;;  %v868_v33 = vld [vmem:[#allocation2 + $0x30] sm:$0xff] }
  0x86   :  { %86 = vst [vmem:[#allocation2 + $0x28] sm:$0xf0] %v81_v31  ;;  %376 = vrot.lane.b32.xlu0 %v3215_v4, %s3102_s24  ;;  %394 = vrot.lane.b32.xlu1 %v3195_v1, %s3103_s12  ;;  %v2790_v34 = vpack.c.bf16 %v868_v33, %v863_v32 }
  0x88   :  { %v94_v35 = vpop.permute.xlu0 %93  ;;  %v113_v36 = vpop.permute.xlu1 %112  ;;  %2791 = vmatprep.subr.bf16.mxu0 %v2790_v34 }
  0x89   :  { %v97_v37 = vsel %vm4996_vm6, %v92_v30, %v94_v35  ;;  %103 = vst.msk [vmem:[#allocation2 + $0x60] sm:$0xf] %vm39_vm0, %v94_v35  ;;  %v862_v41 = vld [vmem:[#allocation2] sm:$0xff] }
  0x8a   :  { %102 = vst [vmem:[#allocation2 + $0x58] sm:$0xf] %v97_v37  ;;  %412 = vrot.lane.b32.xlu0 %v3215_v4, %s3104_s13  ;;  %432 = vrot.lane.b32.xlu1 %v3203_v3, %s3105_s16 }
  0x8c   :  { %v115_v38 = vpop.permute.xlu0 %114  ;;  %v129_v39 = vpop.permute.xlu1 %128 }
  0x8d   :  { %v118_v40 = vsel %vm4979_vm7, %v113_v36, %v115_v38  ;;  %124 = vst.msk [vmem:[#allocation2 + $0x60] sm:$0xf0] %vm57_vm3, %v115_v38  ;;  %v867_v42 = vld [vmem:[#allocation2 + $0x28] sm:$0xff] }
  0x8e   :  { %123 = vst [vmem:[#allocation2 + $0x58] sm:$0xf0] %v118_v40  ;;  %434 = vrot.lane.b32.xlu0 %v3334_v14, %s3105_s16  ;;  %454 = vrot.lane.b32.xlu1 %v3220_v5, %s3106_s28  ;;  %v2792_v43 = vpack.c.bf16 %v867_v42, %v862_v41 }
  0x90   :  { %v131_v46 = vpop.permute.xlu0 %130  ;;  %v144_v47 = vpop.permute.xlu1 %143  ;;  %2793 = vmatpush1.bf16.msra.mxu0 %v2792_v43 }
  0x91   :  { %v134_v48 = vsel %vm4978_vm8, %v129_v39, %v131_v46  ;;  %140 = vst.msk [vmem:[#allocation2 + $0x88] sm:$0xf] %vm39_vm0, %v131_v46 }
  0x92   :  { %139 = vst [vmem:[#allocation2 + $0x80] sm:$0xf] %v134_v48  ;;  %456 = vrot.lane.b32.xlu0 %v3379_v44, %s3106_s28  ;;  %473 = vrot.lane.b32.xlu1 %v3383_v45, %s3107_s26 }
  0x94   :  { %v146_v49 = vpop.permute.xlu0 %145  ;;  %v90_v50 = vpop.permute.xlu1 %89 }
  0x95   :  { %v149_v51 = vsel %vm4977_vm9, %v144_v47, %v146_v49  ;;  %155 = vst.msk [vmem:[#allocation2 + $0x88] sm:$0xf0] %vm57_vm3, %v146_v49  ;;  %v96_v52 = vsel %vm4996_vm6, %v90_v50, %v92_v30  ;;  %v873_v61 = vld [vmem:[#allocation2 + $0x58] sm:$0xff] }
  0x96   :  { %154 = vst [vmem:[#allocation2 + $0x80] sm:$0xf0] %v149_v51  ;;  %101 = vst [vmem:[#allocation2 + $0x50] sm:$0xf] %v96_v52  ;;  %475 = vrot.lane.b32.xlu0 %v3220_v5, %s3107_s26  ;;  %490 = vrot.lane.b32.xlu1 %v3220_v5, %s3108_s22 }
  0x98   :  { %v111_v53 = vpop.permute.xlu0 %110  ;;  %v127_v54 = vpop.permute.xlu1 %126 }
  0x99   :  { %v117_v55 = vsel %vm4979_vm7, %v111_v53, %v113_v36  ;;  %v133_v56 = vsel %vm4978_vm8, %v127_v54, %v129_v39  ;;  %vm4981_vm8 = vcmask 490496   ;;  %vm4982_vm7 = vcmask 482304  }
  0x9a   :  { %122 = vst [vmem:[#allocation2 + $0x50] sm:$0xf0] %v117_v55  ;;  %138 = vst [vmem:[#allocation2 + $0x78] sm:$0xf] %v133_v56  ;;  %492 = vrot.lane.b32.xlu0 %v3379_v44, %s3108_s22  ;;  %505 = vrot.lane.b32.xlu1 %v3383_v45, %s3109_s29 }
  0x9c   :  { %v142_v58 = vpop.permute.xlu0 %141  ;;  %v159_v59 = vpop.permute.xlu1 %158 }
  0x9d   :  { %v148_v60 = vsel %vm4977_vm9, %v142_v58, %v144_v47  ;;  %v878_v62 = vld [vmem:[#allocation2 + $0x80] sm:$0xff]  ;;  %vm466_vm9 = vcmask 1043936  }
  0x9e   :  { %153 = vst [vmem:[#allocation2 + $0x78] sm:$0xf0] %v148_v60  ;;  %507 = vrot.lane.b32.xlu0 %v3220_v5, %s3109_s29  ;;  %430 = vrot.lane.b32.xlu1 %v3195_v1, %s3105_s16  ;;  %v2794_v63 = vpack.c.bf16 %v878_v62, %v873_v61 }
  0xa0   :  { %v161_v0 = vpop.permute.xlu0 %160  ;;  %v174_v2 = vpop.permute.xlu1 %173  ;;  %2795 = vmatprep.subr.bf16.mxu0 %v2794_v63 }
  0xa1   :  { %v164_v3 = vsel %vm4976_vm10, %v159_v59, %v161_v0  ;;  %170 = vst.msk [vmem:[#allocation2 + $0xb0] sm:$0xf] %vm39_vm0, %v161_v0  ;;  %v872_v7 = vld [vmem:[#allocation2 + $0x50] sm:$0xff] }
  0xa2   :  { %169 = vst [vmem:[#allocation2 + $0xa8] sm:$0xf] %v164_v3  ;;  %520 = vrot.lane.b32.xlu0 %v3220_v5, %s3111_s23  ;;  %522 = vrot.lane.b32.xlu1 %v3379_v44, %s3111_s23 }
  0xa4   :  { %v176_v4 = vpop.permute.xlu0 %175  ;;  %v194_v1 = vpop.permute.xlu1 %193 }
  0xa5   :  { %v179_v6 = vsel %vm4961_vm11, %v174_v2, %v176_v4  ;;  %185 = vst.msk [vmem:[#allocation2 + $0xb0] sm:$0xf0] %vm57_vm3, %v176_v4  ;;  %v877_v8 = vld [vmem:[#allocation2 + $0x78] sm:$0xff] }
  0xa6   :  { %184 = vst [vmem:[#allocation2 + $0xa8] sm:$0xf0] %v179_v6  ;;  %541 = vrot.lane.b32.xlu0 %v3383_v45, %s3112_s27  ;;  %543 = vrot.lane.b32.xlu1 %v3220_v5, %s3112_s27  ;;  %v2796_v9 = vpack.c.bf16 %v877_v8, %v872_v7 }
  0xa8   :  { %v196_v10 = vpop.permute.xlu0 %195  ;;  %v211_v12 = vpop.permute.xlu1 %210  ;;  %2797 = vmatpush1.bf16.msra.mxu0 %v2796_v9 }
  0xa9   :  { %v199_v15 = vsel %vm4960_vm12, %v194_v1, %v196_v10  ;;  %205 = vst.msk [vmem:[#allocation2 + $0xd8] sm:$0xf] %vm39_vm0, %v196_v10 }
  0xaa   :  { %204 = vst [vmem:[#allocation2 + $0xd0] sm:$0xf] %v199_v15  ;;  %557 = vrot.lane.b32.xlu0 %v3220_v5, %s4953_s25  ;;  %559 = vrot.lane.b32.xlu1 %v3379_v44, %s4953_s25  ;;  %s4955_s25 = smov 37  }
  0xac   :  { %v213_v16 = vpop.permute.xlu0 %212  ;;  %v157_v17 = vpop.permute.xlu1 %156 }
  0xad   :  { %v216_v18 = vsel %vm4957_vm13, %v211_v12, %v213_v16  ;;  %222 = vst.msk [vmem:[#allocation2 + $0xd8] sm:$0xf0] %vm57_vm3, %v213_v16  ;;  %v163_v19 = vsel %vm4976_vm10, %v157_v17, %v159_v59  ;;  %v883_v27 = vld [vmem:[#allocation2 + $0xa8] sm:$0xff]  ;;  %v3518_v17 = vcombine.high %v3334_v14, %v3334_v14  ;;  %vm4986_vm10 = vcmask 359424  }
  0xae   :  { %221 = vst [vmem:[#allocation2 + $0xd0] sm:$0xf0] %v216_v18  ;;  %168 = vst [vmem:[#allocation2 + $0xa0] sm:$0xf] %v163_v19  ;;  %572 = vrot.lane.b32.xlu0 %v3383_v45, %s4954_s15  ;;  %574 = vrot.lane.b32.xlu1 %v3220_v5, %s4954_s15  ;;  %s4956_s15 = smov 36  }
  0xb0   :  { %v172_v20 = vpop.permute.xlu0 %171  ;;  %v192_v21 = vpop.permute.xlu1 %191 }
  0xb1   :  { %v178_v22 = vsel %vm4961_vm11, %v172_v20, %v174_v2  ;;  %v198_v23 = vsel %vm4960_vm12, %v192_v21, %v194_v1  ;;  %vm4967_vm12 = vcmask 556032   ;;  %vm485_vm11 = vcmask 1048036  }
  0xb2   :  { %183 = vst [vmem:[#allocation2 + $0xa0] sm:$0xf0] %v178_v22  ;;  %203 = vst [vmem:[#allocation2 + $0xc8] sm:$0xf] %v198_v23  ;;  %587 = vrot.lane.b32.xlu0 %v3220_v5, %s4955_s25  ;;  %589 = vrot.lane.b32.xlu1 %v3379_v44, %s4955_s25  ;;  %s4958_s25 = smov 20  }
  0xb4   :  { %v209_v24 = vpop.permute.xlu0 %208  ;;  %v226_v25 = vpop.permute.xlu1 %225 }
  0xb5   :  { %v215_v26 = vsel %vm4957_vm13, %v209_v24, %v211_v12  ;;  %v888_v28 = vld [vmem:[#allocation2 + $0xd0] sm:$0xff]  ;;  %vm4964_vm13 = vcmask 687104  }
  0xb6   :  { %220 = vst [vmem:[#allocation2 + $0xc8] sm:$0xf0] %v215_v26  ;;  %602 = vrot.lane.b32.xlu0 %v3383_v45, %s4956_s15  ;;  %604 = vrot.lane.b32.xlu1 %v3220_v5, %s4956_s15  ;;  %v2798_v29 = vpack.c.bf16 %v888_v28, %v883_v27  ;;  %s4962_s15 = smov 19   ;;  %v3536_v27 = vld [vmem:[%s4924_s0 + $0x18] sm:$0xff] }
  0xb8   :  { %v228_v30 = vpop.permute.xlu0 %227  ;;  %v241_v31 = vpop.permute.xlu1 %240  ;;  %2799 = vmatprep.subr.bf16.mxu0 %v2798_v29 }
  0xb9   :  { %v231_v32 = vsel %vm4966_vm14, %v226_v25, %v228_v30  ;;  %237 = vst.msk [vmem:[#allocation2 + $0x100] sm:$0xf] %vm39_vm0, %v228_v30  ;;  %v882_v36 = vld [vmem:[#allocation2 + $0xa0] sm:$0xff] }
  0xba   :  { %236 = vst [vmem:[#allocation2 + $0xf8] sm:$0xf] %v231_v32  ;;  %622 = vrot.lane.b32.xlu0 %v3220_v5, %s4958_s25  ;;  %624 = vrot.lane.b32.xlu1 %v3379_v44, %s4958_s25  ;;  %s4963_s25 = smov 18  }
  0xbc   :  { %v243_v33 = vpop.permute.xlu0 %242  ;;  %v256_v34 = vpop.permute.xlu1 %255 }
  0xbd   :  { %v246_v35 = vsel %vm4965_vm15, %v241_v31, %v243_v33  ;;  %252 = vst.msk [vmem:[#allocation2 + $0x100] sm:$0xf0] %vm57_vm3, %v243_v33  ;;  %v887_v37 = vld [vmem:[#allocation2 + $0xc8] sm:$0xff]  ;;  %v791_v33 = vcombine.low %v3536_v27, %v3536_v27 }
  0xbe   :  { %251 = vst [vmem:[#allocation2 + $0xf8] sm:$0xf0] %v246_v35  ;;  %639 = vrot.lane.b32.xlu0 %v3383_v45, %s4962_s15  ;;  %641 = vrot.lane.b32.xlu1 %v3220_v5, %s4962_s15  ;;  %v2800_v38 = vpack.c.bf16 %v887_v37, %v882_v36  ;;  %s3120_s15 = smov 17   ;;  %v3122_v37 = vmov 0  }
  0xbf   :  { %3068 = vset.pattern.permute.xlu1 %v3122_v37  ;;  %3067 = vset.pattern.permute.xlu0 %v3122_v37 }
  0xc0   :  { %v258_v39 = vpop.permute.xlu0 %257  ;;  %v277_v40 = vpop.permute.xlu1 %276  ;;  %2801 = vmatpush1.bf16.msra.mxu0 %v2800_v38 }
  0xc1   :  { %v261_v41 = vsel %vm4964_vm13, %v256_v34, %v258_v39  ;;  %267 = vst.msk [vmem:[#allocation2 + $0x128] sm:$0xf] %vm39_vm0, %v258_v39 }
  0xc2   :  { %266 = vst [vmem:[#allocation2 + $0x120] sm:$0xf] %v261_v41  ;;  %654 = vrot.lane.b32.xlu0 %v3220_v5, %s4963_s25  ;;  %656 = vrot.lane.b32.xlu1 %v3379_v44, %s4963_s25  ;;  %s3121_s25 = smov 16  }
  0xc4   :  { %v279_v42 = vpop.permute.xlu0 %278  ;;  %v224_v43 = vpop.permute.xlu1 %223 }
  0xc5   :  { %v282_v46 = vsel %vm4967_vm12, %v277_v40, %v279_v42  ;;  %288 = vst.msk [vmem:[#allocation2 + $0x128] sm:$0xf0] %vm57_vm3, %v279_v42  ;;  %v230_v47 = vsel %vm4966_vm14, %v224_v43, %v226_v25  ;;  %v893_v55 = vld [vmem:[#allocation2 + $0xf8] sm:$0xff]  ;;  %vm4968_vm14 = vcmask 531456  }
  0xc6   :  { %287 = vst [vmem:[#allocation2 + $0x120] sm:$0xf0] %v282_v46  ;;  %707 = vst.msk [vmem:[#allocation2 + $0x128] sm:$0xf0] %vm485_vm11, %v3383_v45  ;;  %669 = vrot.lane.b32.xlu0 %v3383_v45, %s3120_s15  ;;  %671 = vrot.lane.b32.xlu1 %v3220_v5, %s3120_s15 }
  0xc7   :  { %235 = vst [vmem:[#allocation2 + $0xf0] sm:$0xf] %v230_v47 }
  0xc8   :  { %v239_v48 = vpop.permute.xlu0 %238  ;;  %v254_v49 = vpop.permute.xlu1 %253 }
  0xc9   :  { %v245_v50 = vsel %vm4965_vm15, %v239_v48, %v241_v31  ;;  %v260_v51 = vsel %vm4964_vm13, %v254_v49, %v256_v34  ;;  %vm4975_vm13 = vcmask 547840   ;;  %vm4974_vm15 = vcmask 539648  }
  0xca   :  { %250 = vst [vmem:[#allocation2 + $0xf0] sm:$0xf0] %v245_v50  ;;  %265 = vst [vmem:[#allocation2 + $0x118] sm:$0xf] %v260_v51  ;;  %684 = vrot.lane.b32.xlu0 %v3220_v5, %s3121_s25  ;;  %686 = vrot.lane.b32.xlu1 %v3379_v44, %s3121_s25 }
  0xcc   :  { %v275_v52 = vpop.permute.xlu0 %274  ;;  %v293_v53 = vpop.permute.xlu1 %292 }
  0xcd   :  { %v281_v54 = vsel %vm4967_vm12, %v275_v52, %v277_v40  ;;  %v898_v56 = vld [vmem:[#allocation2 + $0x120] sm:$0xff]  ;;  %vm4969_vm12 = vcmask 523264  }
  0xce   :  { %286 = vst [vmem:[#allocation2 + $0x118] sm:$0xf0] %v281_v54  ;;  %713 = vrot.lane.b32.xlu0 %v3379_v44, %s3083_s10  ;;  %715 = vrot.lane.b32.xlu1 %v3289_v11, %s3083_s10  ;;  %v2802_v58 = vpack.c.bf16 %v898_v56, %v893_v55 }
  0xd0   :  { %v295_v59 = vpop.permute.xlu0 %294  ;;  %v308_v60 = vpop.permute.xlu1 %307  ;;  %2803 = vmatprep.subr.bf16.mxu0 %v2802_v58  ;;  %v2710_v58 = vld [vmem:[%s4924_s0 + $0x18] sm:$0xf] }
  0xd1   :  { %v298_v61 = vsel %vm4975_vm13, %v293_v53, %v295_v59  ;;  %304 = vst.msk [vmem:[#allocation2 + $0x150] sm:$0xf] %vm39_vm0, %v295_v59  ;;  %v892_v2 = vld [vmem:[#allocation2 + $0xf0] sm:$0xff] }
  0xd2   :  { %303 = vst [vmem:[#allocation2 + $0x148] sm:$0xf] %v298_v61  ;;  %727 = vrot.lane.b32.xlu0 %v3220_v5, %s3082_s9  ;;  %729 = vrot.lane.b32.xlu1 %v3296_v13, %s3082_s9 }
  0xd4   :  { %v310_v62 = vpop.permute.xlu0 %309  ;;  %v323_v63 = vpop.permute.xlu1 %322 }
  0xd5   :  { %v313_v0 = vsel %vm4974_vm15, %v308_v60, %v310_v62  ;;  %319 = vst.msk [vmem:[#allocation2 + $0x150] sm:$0xf0] %vm57_vm3, %v310_v62  ;;  %v897_v3 = vld [vmem:[#allocation2 + $0x118] sm:$0xff] }
  0xd6   :  { %318 = vst [vmem:[#allocation2 + $0x148] sm:$0xf0] %v313_v0  ;;  %741 = vrot.lane.b32.xlu0 %v3379_v44, %s3084_s11  ;;  %743 = vrot.lane.b32.xlu1 %v3289_v11, %s3084_s11  ;;  %v2804_v4 = vpack.c.bf16 %v897_v3, %v892_v2  ;;  %v472_v0 = vcombine.low %v2710_v58, %v2710_v58 }
  0xd8   :  { %v325_v1 = vpop.permute.xlu0 %324  ;;  %v338_v6 = vpop.permute.xlu1 %337  ;;  %2805 = vmatpush1.bf16.msra.mxu0 %v2804_v4 }
  0xd9   :  { %v328_v7 = vsel %vm4968_vm14, %v323_v63, %v325_v1  ;;  %334 = vst.msk [vmem:[#allocation2 + $0x178] sm:$0xf] %vm39_vm0, %v325_v1 }
  0xda   :  { %333 = vst [vmem:[#allocation2 + $0x170] sm:$0xf] %v328_v7  ;;  %755 = vrot.lane.b32.xlu0 %v3220_v5, %s4972_s14  ;;  %757 = vrot.lane.b32.xlu1 %v3296_v13, %s4972_s14 }
  0xdc   :  { %v340_v8 = vpop.permute.xlu0 %339  ;;  %v291_v9 = vpop.permute.xlu1 %290 }
  0xdd   :  { %v343_v11 = vsel %vm4969_vm12, %v338_v6, %v340_v8  ;;  %349 = vst.msk [vmem:[#allocation2 + $0x178] sm:$0xf0] %vm57_vm3, %v340_v8  ;;  %v297_v10 = vsel %vm4975_vm13, %v291_v9, %v293_v53  ;;  %v903_v21 = vld [vmem:[#allocation2 + $0x148] sm:$0xff]  ;;  %vm4980_vm13 = vcmask 367616   ;;  %v2712_v9 = vld [vmem:[%s4924_s0 + $0x18] sm:$0xf] }
  0xde   :  { %348 = vst [vmem:[#allocation2 + $0x170] sm:$0xf0] %v343_v11  ;;  %302 = vst [vmem:[#allocation2 + $0x140] sm:$0xf] %v297_v10  ;;  %711 = vrot.lane.b32.xlu0 %v3220_v5, %s3083_s10  ;;  %725 = vrot.lane.b32.xlu1 %v3383_v45, %s3082_s9 }
  0xe0   :  { %v306_v12 = vpop.permute.xlu0 %305  ;;  %v321_v15 = vpop.permute.xlu1 %320 }
  0xe1   :  { %v312_v13 = vsel %vm4974_vm15, %v306_v12, %v308_v60  ;;  %v327_v16 = vsel %vm4968_vm14, %v321_v15, %v323_v63  ;;  %vm4999_vm14 = vcmask 392192   ;;  %vm4998_vm15 = vcmask 375808  }
  0xe2   :  { %317 = vst [vmem:[#allocation2 + $0x140] sm:$0xf0] %v312_v13  ;;  %332 = vst [vmem:[#allocation2 + $0x168] sm:$0xf] %v327_v16  ;;  %739 = vrot.lane.b32.xlu0 %v3220_v5, %s3084_s11  ;;  %753 = vrot.lane.b32.xlu1 %v3383_v45, %s4972_s14  ;;  %s5068_s14 = smov 66  }
  0xe4   :  { %v336_v18 = vpop.permute.xlu0 %335  ;;  %v359_v19 = vpop.permute.xlu1 %358 }
  0xe5   :  { %v342_v20 = vsel %vm4969_vm12, %v336_v18, %v338_v6  ;;  %v908_v22 = vld [vmem:[#allocation2 + $0x170] sm:$0xff]  ;;  %vm4997_vm12 = vcmask 384000  }
  0xe6   :  { %347 = vst [vmem:[#allocation2 + $0x168] sm:$0xf0] %v342_v20  ;;  %362 = vrot.lane.b32.xlu0 %v3518_v17, %s4970_s30  ;;  %382 = vrot.lane.b32.xlu1 %v3334_v14, %s3102_s24  ;;  %v2806_v23 = vpack.c.bf16 %v908_v22, %v903_v21  ;;  %s5018_s30 = smov 38  }
  0xe8   :  { %v3525_v24 = vpop.permute.xlu0 %360  ;;  %v379_v25 = vpop.permute.xlu1 %378  ;;  %2807 = vmatprep.subr.bf16.mxu0 %v2806_v23 }
  0xe9   :  { %v366_v26 = vsel %vm4999_vm14, %v359_v19, %v3525_v24  ;;  %v902_v31 = vld [vmem:[#allocation2 + $0x140] sm:$0xff] }
  0xea   :  { %372 = vst [vmem:[#allocation2 + $0x198] sm:$0xf] %v366_v26  ;;  %400 = vrot.lane.b32.xlu0 %v3518_v17, %s3103_s12  ;;  %418 = vrot.lane.b32.xlu1 %v3334_v14, %s3104_s13 }
  0xec   :  { %v3538_v28 = vpop.permute.xlu0 %380  ;;  %v397_v29 = vpop.permute.xlu1 %396 }
  0xed   :  { %v386_v30 = vsel %vm4997_vm12, %v379_v25, %v3538_v28  ;;  %v907_v32 = vld [vmem:[#allocation2 + $0x168] sm:$0xff] }
  0xee   :  { %392 = vst [vmem:[#allocation2 + $0x198] sm:$0xf0] %v386_v30  ;;  %775 = vrot.lane.b32.xlu0 %v3379_v44, %s3086_s17  ;;  %777 = vrot.lane.b32.xlu1 %v3536_v27, %s3086_s17  ;;  %v2808_v14 = vpack.c.bf16 %v907_v32, %v902_v31  ;;  %v2714_v31 = vld [vmem:[%s4924_s0 + $0x18] sm:$0xf]  ;;  %s5019_s0 = smov 37  }
  0xf0   :  { %v3548_v34 = vpop.permute.xlu0 %398  ;;  %v415_v35 = vpop.permute.xlu1 %414  ;;  %2809 = vmatpush1.bf16.msra.mxu0 %v2808_v14 }
  0xf1   :  { %v404_v36 = vsel %vm4998_vm15, %v397_v29, %v3548_v34 }
  0xf2   :  { %410 = vst [vmem:[#allocation2 + $0x1c0] sm:$0xf] %v404_v36  ;;  %794 = vrot.lane.b32.xlu0 %v3220_v5, %s3087_s18  ;;  %796 = vrot.lane.b32.xlu1 %v791_v33, %s3087_s18  ;;  %v638_v36 = vcombine.low %v2714_v31, %v2714_v31 }
  0xf4   :  { %v3557_v38 = vpop.permute.xlu0 %416  ;;  %v357_v39 = vpop.permute.xlu1 %356 }
  0xf5   :  { %v422_v40 = vsel %vm4980_vm13, %v415_v35, %v3557_v38  ;;  %v365_v41 = vsel %vm4999_vm14, %v357_v39, %v359_v19  ;;  %v913_v51 = vld [vmem:[#allocation2 + $0x198] sm:$0xff] }
  0xf6   :  { %428 = vst [vmem:[#allocation2 + $0x1c0] sm:$0xf0] %v422_v40  ;;  %371 = vst [vmem:[#allocation2 + $0x190] sm:$0xf] %v365_v41  ;;  %811 = vrot.lane.b32.xlu0 %v3379_v44, %s3088_s19  ;;  %813 = vrot.lane.b32.xlu1 %v3536_v27, %s3088_s19 }
  0xf8   :  { %v377_v42 = vpop.permute.xlu0 %376  ;;  %v395_v43 = vpop.permute.xlu1 %394 }
  0xf9   :  { %v385_v46 = vsel %vm4997_vm12, %v377_v42, %v379_v25  ;;  %v403_v47 = vsel %vm4998_vm15, %v395_v43, %v397_v29 }
  0xfa   :  { %391 = vst [vmem:[#allocation2 + $0x190] sm:$0xf0] %v385_v46  ;;  %409 = vst [vmem:[#allocation2 + $0x1b8] sm:$0xf] %v403_v47  ;;  %828 = vrot.lane.b32.xlu0 %v3220_v5, %s3089_s20  ;;  %830 = vrot.lane.b32.xlu1 %v791_v33, %s3089_s20  ;;  %v772_v47 = vcombine.high %v3536_v27, %v3536_v27 }
  0xfc   :  { %v413_v48 = vpop.permute.xlu0 %412  ;;  %v433_v49 = vpop.permute.xlu1 %432 }
  0xfd   :  { %v421_v50 = vsel %vm4980_vm13, %v413_v48, %v415_v35  ;;  %v918_v52 = vld [vmem:[#allocation2 + $0x1c0] sm:$0xff]  ;;  %vm4987_vm13 = vcmask 1043456   ;;  %v3658_v35 = vld [vmem:[%s4925_s2 + $0x8] sm:$0xff] }
  0xfe   :  { %427 = vst [vmem:[#allocation2 + $0x1b8] sm:$0xf0] %v421_v50  ;;  %773 = vrot.lane.b32.xlu0 %v3220_v5, %s3086_s17  ;;  %792 = vrot.lane.b32.xlu1 %v3383_v45, %s3087_s18  ;;  %v2810_v53 = vpack.c.bf16 %v918_v52, %v913_v51 }
 0x100   :  { %v3576_v54 = vpop.permute.xlu0 %434  ;;  %v455_v55 = vpop.permute.xlu1 %454  ;;  %2811 = vmatprep.subr.bf16.mxu0 %v2810_v53 }
 0x101   :  { %v440_v56 = vsel %vm4986_vm10, %v433_v49, %v3576_v54  ;;  %467 = vst.msk [vmem:[#allocation2 + $0x10] sm:$0xf] %vm466_vm9, %v455_v55  ;;  %v912_v62 = vld [vmem:[#allocation2 + $0x190] sm:$0xff] }
 0x102   :  { %446 = vst [vmem:[#allocation2 + $0x1e8] sm:$0xf] %v440_v56  ;;  %809 = vrot.lane.b32.xlu0 %v3220_v5, %s3088_s19  ;;  %826 = vrot.lane.b32.xlu1 %v3383_v45, %s3089_s20 }
 0x104   :  { %v3588_v59 = vpop.permute.xlu0 %456  ;;  %v474_v60 = vpop.permute.xlu1 %473 }
 0x105   :  { %v461_v61 = vsel %vm4981_vm8, %v455_v55, %v3588_v59  ;;  %486 = vst.msk [vmem:[#allocation2 + $0x10] sm:$0xf0] %vm485_vm11, %v474_v60  ;;  %v917_v63 = vld [vmem:[#allocation2 + $0x1b8] sm:$0xff]  ;;  %vm4983_vm8 = vcmask 474112  }
 0x106   :  { %468 = vst [vmem:[#allocation2 + $0x18] sm:$0xf] %v461_v61  ;;  %436 = vrot.lane.b32.xlu0 %v3518_v17, %s3105_s16  ;;  %458 = vrot.lane.b32.xlu1 %v2710_v58, %s3106_s28  ;;  %v2812_v45 = vpack.c.bf16 %v917_v63, %v912_v62  ;;  %s5065_s28 = smov 87  }
 0x108   :  { %v3596_v2 = vpop.permute.xlu0 %475  ;;  %v491_v3 = vpop.permute.xlu1 %490  ;;  %2813 = vmatpush1.bf16.msra.mxu0 %v2812_v45 }
 0x109   :  { %v480_v4 = vsel %vm4982_vm7, %v474_v60, %v3596_v2  ;;  %502 = vst.msk [vmem:[#allocation2 + $0x38] sm:$0xf] %vm466_vm9, %v491_v3  ;;  %v923_v1 = vld [vmem:[#allocation2 + $0x1e8] sm:$0xf]  ;;  %vm4984_vm7 = vcmask 465920  }
 0x10a   :  { %487 = vst [vmem:[#allocation2 + $0x18] sm:$0xf0] %v480_v4  ;;  %477 = vrot.lane.b32.xlu0 %v472_v0, %s3107_s26  ;;  %494 = vrot.lane.b32.xlu1 %v2710_v58, %s3108_s22  ;;  %s5023_s26 = smov 18   ;;  %v928_v4 = vld [vmem:[%s4926_s3 + $0x8] sm:$0xff] }
 0x10b   :  { %2719 = vmatprep.subr.msk.mxu0 %vm4987_vm13, %v923_v1  ;;  %v1201_v1 = vld [vmem:[%s4927_s5] sm:$0xff]  ;;  %s5012_s5 = smov 111  }
 0x10c   :  { %v3604_v6 = vpop.permute.xlu0 %492  ;;  %v506_v7 = vpop.permute.xlu1 %505  ;;  %v864_v29 = vld [vmem:[#allocation2 + $0x10] sm:$0xff] }
 0x10d   :  { %v497_v8 = vsel %vm4983_vm8, %v491_v3, %v3604_v6  ;;  %517 = vst.msk [vmem:[#allocation2 + $0x38] sm:$0xf0] %vm485_vm11, %v506_v7  ;;  %vm4985_vm8 = vcmask 457728   ;;  %v927_v3 = vld [vmem:[%s4926_s3] sm:$0xff]  ;;  %s5008_s3 = smov 112  }
 0x10e   :  { %503 = vst [vmem:[#allocation2 + $0x40] sm:$0xf] %v497_v8  ;;  %509 = vrot.lane.b32.xlu0 %v472_v0, %s3109_s29  ;;  %845 = vrot.lane.b32.xlu1 %v3379_v44, %s3090_s21  ;;  %v540_v44 = vcombine.low %v2712_v9, %v2712_v9  ;;  %s5066_s29 = smov 85  }
 0x110   :  { %v3615_v11 = vpop.permute.xlu0 %507  ;;  %v431_v10 = vpop.permute.xlu1 %430 }
 0x111   :  { %v512_v12 = vsel %vm4984_vm7, %v506_v7, %v3615_v11  ;;  %v439_v15 = vsel %vm4986_vm10, %v431_v10, %v433_v49  ;;  %vm547_vm7 = vcmask 326656   ;;  %v865_v23 = vld [vmem:[#allocation2 + $0x18] sm:$0xff]  ;;  %vm4988_vm10 = vcmask 318464  }
 0x112   :  { %518 = vst [vmem:[#allocation2 + $0x40] sm:$0xf0] %v512_v12  ;;  %445 = vst [vmem:[#allocation2 + $0x1e0] sm:$0xf] %v439_v15  ;;  %847 = vrot.lane.b32.xlu0 %v3536_v27, %s3090_s21  ;;  %843 = vrot.lane.b32.xlu1 %v3220_v5, %s3090_s21  ;;  %v3636_v5 = vld [vmem:[%s4925_s2] sm:$0xff]  ;;  %s5021_s2 = smov 20  }
 0x114   :  { %v521_v13 = vpop.permute.xlu0 %520  ;;  %v3624_v16 = vpop.permute.xlu1 %522  ;;  %v869_v20 = vld [vmem:[#allocation2 + $0x38] sm:$0xff] }
 0x115   :  { %532 = vst.msk [vmem:[#allocation2 + $0x60] sm:$0xf] %vm466_vm9, %v521_v13  ;;  %v527_v17 = vsel %vm4985_vm8, %v521_v13, %v3624_v16  ;;  %vm4989_vm8 = vcmask 818176   ;;  %v2816_v30 = vpack.c.bf16 %v869_v20, %v864_v29 }
 0x116   :  { %533 = vst [vmem:[#allocation2 + $0x68] sm:$0xf] %v527_v17  ;;  %524 = vrot.lane.b32.xlu0 %v2710_v58, %s3111_s23  ;;  %545 = vrot.lane.b32.xlu1 %v540_v44, %s3112_s27  ;;  %s5017_s23 = smov 39  }
 0x118   :  { %v542_v18 = vpop.permute.xlu0 %541  ;;  %v3631_v19 = vpop.permute.xlu1 %543 }
 0x119   :  { %553 = vst.msk [vmem:[#allocation2 + $0x60] sm:$0xf0] %vm485_vm11, %v542_v18  ;;  %v548_v21 = vsel %vm547_vm7, %v542_v18, %v3631_v19  ;;  %v922_v22 = vld [vmem:[#allocation2 + $0x1e0] sm:$0xf] }
 0x11a   :  { %v870_v25 = vld [vmem:[#allocation2 + $0x40] sm:$0xff]  ;;  %554 = vst [vmem:[#allocation2 + $0x68] sm:$0xf0] %v548_v21  ;;  %561 = vrot.lane.b32.xlu0 %v2712_v9, %s5017_s23  ;;  %576 = vrot.lane.b32.xlu1 %v540_v44, %s5018_s30  ;;  %s5020_s23 = smov 36   ;;  %s5022_s30 = smov 19  }
 0x11b   :  { %v2814_v26 = vpack.c.bf16 %v870_v25, %v865_v23  ;;  %2720 = vmatpush1.msk.msra.mxu0 %vm4987_vm13, %v922_v22  ;;  %vm4994_vm13 = vcmask 310272  }
 0x11c   :  { %2721 = vmatmul.mubr.msk.f32.vlgmr.msra.gmra.mrb[0].mxu0 %vm4989_vm8, %v3636_v5  ;;  %v558_v32 = vpop.permute.xlu0 %557  ;;  %v3649_v14 = vpop.permute.xlu1 %559 }
 0x11d   :  { %2815 = vmatprep.subr.bf16.mxu0 %v2814_v26  ;;  %569 = vst.msk [vmem:[#allocation2 + $0x88] sm:$0xf] %vm466_vm9, %v558_v32  ;;  %v564_v33 = vsel %vm4988_vm10, %v558_v32, %v3649_v14  ;;  %1032 = vmatprep.mubr.f32.mxu0 %v5014_v57  ;;  %vm4990_vm10 = vcmask 302080  }
 0x11e   :  { %2817 = vmatpush1.bf16.msra.mxu0 %v2816_v30  ;;  %570 = vst [vmem:[#allocation2 + $0x90] sm:$0xf] %v564_v33  ;;  %591 = vrot.lane.b32.xlu0 %v2712_v9, %s5019_s0  ;;  %v1202_v9 = vmax.f32 %v1201_v1, 0.0  ;;  %s5064_s0 = smov 68  }
 0x11f   :  { %606 = vrot.lane.b32.xlu1 %v540_v44, %s5020_s23  ;;  %s5006_s23 = smov 110  }
 0x120   :  { %2722 = vmatmul.mubr.msk.f32.gmra.mrb[2].mxu0 %vm4989_vm8, %v3658_v35  ;;  %v573_v39 = vpop.permute.xlu0 %572  ;;  %v3664_v40 = vpop.permute.xlu1 %574  ;;  %vm4991_vm8 = vcmask 293888   ;;  %v874_v56 = vld [vmem:[#allocation2 + $0x60] sm:$0xff] }
 0x121   :  { %584 = vst.msk [vmem:[#allocation2 + $0x88] sm:$0xf0] %vm485_vm11, %v573_v39  ;;  %v579_v41 = vsel %vm4994_vm13, %v573_v39, %v3664_v40  ;;  %1103 = vmatprep.mubr.f32.mxu0 %v5014_v57  ;;  %v875_v52 = vld [vmem:[#allocation2 + $0x68] sm:$0xff]  ;;  %vm690_vm13 = vcmask 130048  }
 0x122   :  { %585 = vst [vmem:[#allocation2 + $0x90] sm:$0xf0] %v579_v41  ;;  %626 = vrot.lane.b32.xlu0 %v2714_v31, %s5021_s2 }
 0x123   :  { %643 = vrot.lane.b32.xlu1 %v638_v36, %s5022_s30  ;;  %s5004_s30 = smov 109  }
 0x124   :  { %v588_v42 = vpop.permute.xlu0 %587  ;;  %v3672_v43 = vpop.permute.xlu1 %589 }
 0x125   :  { %599 = vst.msk [vmem:[#allocation2 + $0xb0] sm:$0xf] %vm466_vm9, %v588_v42  ;;  %v594_v46 = vsel %vm4990_vm10, %v588_v42, %v3672_v43  ;;  %vm4992_vm10 = vcmask 162816  }
 0x126   :  { %600 = vst [vmem:[#allocation2 + $0xb8] sm:$0xf] %v594_v46  ;;  %658 = vrot.lane.b32.xlu0 %v2714_v31, %s5023_s26  ;;  %s5002_s26 = smov 92  }
 0x127   :  { %673 = vrot.lane.b32.xlu1 %v638_v36, %s3120_s15  ;;  %s5000_s15 = smov 90  }
 0x128   :  { %v603_v48 = vpop.permute.xlu0 %602  ;;  %v3681_v49 = vpop.permute.xlu1 %604  ;;  %v879_v50 = vld [vmem:[#allocation2 + $0x88] sm:$0xff] }
 0x129   :  { %614 = vst.msk [vmem:[#allocation2 + $0xb0] sm:$0xf0] %vm485_vm11, %v603_v48  ;;  %v609_v51 = vsel %vm4991_vm8, %v603_v48, %v3681_v49  ;;  %v880_v53 = vld [vmem:[#allocation2 + $0x90] sm:$0xff]  ;;  %v2820_v58 = vpack.c.bf16 %v879_v50, %v874_v56  ;;  %vm4993_vm8 = vcmask 154624  }
 0x12a   :  { %615 = vst [vmem:[#allocation2 + $0xb8] sm:$0xf0] %v609_v51  ;;  %688 = vrot.lane.b32.xlu0 %v2714_v31, %s3121_s25  ;;  %v2818_v55 = vpack.c.bf16 %v880_v53, %v875_v52  ;;  %s5010_s25 = smov 91  }
 0x12b   :  { %779 = vrot.lane.b32.xlu1 %v772_v47, %s3086_s17 }
 0x12c   :  { %v623_v60 = vpop.permute.xlu0 %622  ;;  %v3688_v61 = vpop.permute.xlu1 %624  ;;  %2819 = vmatprep.subr.bf16.mxu0 %v2818_v55 }
 0x12d   :  { %634 = vst.msk [vmem:[#allocation2 + $0xd8] sm:$0xf] %vm466_vm9, %v623_v60  ;;  %v629_v62 = vsel %vm4992_vm10, %v623_v60, %v3688_v61  ;;  %2821 = vmatpush1.bf16.msra.mxu0 %v2820_v58  ;;  %vm660_vm10 = vcmask 146432  }
 0x12e   :  { %635 = vst [vmem:[#allocation2 + $0xe0] sm:$0xf] %v629_v62  ;;  %798 = vrot.lane.b32.xlu0 %v3536_v27, %s3087_s18 }
 0x12f   :  { %815 = vrot.lane.b32.xlu1 %v772_v47, %s3088_s19 }
 0x130   :  { %v640_v63 = vpop.permute.xlu0 %639  ;;  %v3696_v45 = vpop.permute.xlu1 %641  ;;  %v884_v20 = vld [vmem:[#allocation2 + $0xb0] sm:$0xff] }
 0x131   :  { %651 = vst.msk [vmem:[#allocation2 + $0xd8] sm:$0xf0] %vm485_vm11, %v640_v63  ;;  %v646_v0 = vsel %vm4993_vm8, %v640_v63, %v3696_v45  ;;  %vm4995_vm8 = vcmask 138240   ;;  %v885_v13 = vld [vmem:[#allocation2 + $0xb8] sm:$0xff] }
 0x132   :  { %652 = vst [vmem:[#allocation2 + $0xe0] sm:$0xf0] %v646_v0  ;;  %832 = vrot.lane.b32.xlu0 %v3536_v27, %s3089_s20 }
 0x133   :  { %849 = vrot.lane.b32.xlu1 %v772_v47, %s3090_s21 }
 0x134   :  { %v655_v7 = vpop.permute.xlu0 %654  ;;  %v3713_v8 = vpop.permute.xlu1 %656 }
 0x135   :  { %666 = vst.msk [vmem:[#allocation2 + $0x100] sm:$0xf] %vm466_vm9, %v655_v7  ;;  %v661_v27 = vsel %vm660_vm10, %v655_v7, %v3713_v8 }
 0x136   :  { %667 = vst [vmem:[#allocation2 + $0x108] sm:$0xf] %v661_v27  ;;  %931 = vperm.xlu0 %3067, %v927_v3  }
 0x137   :  { %936 = vperm.xlu1 %3068, %v928_v4  }
 0x138   :  { %v670_v10 = vpop.permute.xlu0 %669  ;;  %v3718_v12 = vpop.permute.xlu1 %671  ;;  %v889_v15 = vld [vmem:[#allocation2 + $0xd8] sm:$0xff] }
 0x139   :  { %681 = vst.msk [vmem:[#allocation2 + $0x100] sm:$0xf0] %vm485_vm11, %v670_v10  ;;  %v676_v44 = vsel %vm4995_vm8, %v670_v10, %v3718_v12  ;;  %v890_v17 = vld [vmem:[#allocation2 + $0xe0] sm:$0xff]  ;;  %v2824_v21 = vpack.c.bf16 %v889_v15, %v884_v20  ;;  %vm469_vm8 = vcmask 977920  }
 0x13a   :  { %682 = vst [vmem:[#allocation2 + $0x108] sm:$0xf0] %v676_v44  ;;  %v2822_v18 = vpack.c.bf16 %v890_v17, %v885_v13  ;;  %1205 = vperm.xlu0 %3067, %v1202_v9  }
 0x13b   :  { %1211 = vperm.xlu1 %3068, %v1201_v1  }
 0x13c   :  { %v685_v22 = vpop.permute.xlu0 %684  ;;  %v3723_v23 = vpop.permute.xlu1 %686  ;;  %2823 = vmatprep.subr.bf16.mxu0 %v2822_v18 }
 0x13d   :  { %696 = vst.msk [vmem:[#allocation2 + $0x128] sm:$0xf] %vm466_vm9, %v685_v22  ;;  %v691_v25 = vsel %vm690_vm13, %v685_v22, %v3723_v23  ;;  %2825 = vmatpush1.bf16.msra.mxu0 %v2824_v21 }
 0x13e   :  { %697 = vst [vmem:[#allocation2 + $0x130] sm:$0xf] %v691_v25 }
 0x140   :  { %v714_v26 = vpop.permute.xlu0 %713  ;;  %v716_v29 = vpop.permute.xlu1 %715  ;;  %v894_v46 = vld [vmem:[#allocation2 + $0x100] sm:$0xff] }
 0x141   :  { %v718_v30 = vsel %vm49_vm2, %v714_v26, %v716_v29  ;;  %724 = vst.msk [vmem:[#allocation2 + $0x160] sm:$0xf] %vm469_vm8, %v716_v29  ;;  %v895_v39 = vld [vmem:[#allocation2 + $0x108] sm:$0xff] }
 0x142   :  { %723 = vst [vmem:[#allocation2 + $0x158] sm:$0xf] %v718_v30 }
 0x144   :  { %v728_v31 = vpop.permute.xlu0 %727  ;;  %v730_v32 = vpop.permute.xlu1 %729  ;;  %v899_v33 = vld [vmem:[#allocation2 + $0x128] sm:$0xff] }
 0x145   :  { %v732_v36 = vsel %vm65_vm4, %v728_v31, %v730_v32  ;;  %738 = vst.msk [vmem:[#allocation2 + $0x160] sm:$0xf0] %vm488_vm1, %v730_v32  ;;  %v900_v41 = vld [vmem:[#allocation2 + $0x130] sm:$0xff]  ;;  %v2828_v47 = vpack.c.bf16 %v899_v33, %v894_v46 }
 0x146   :  { %737 = vst [vmem:[#allocation2 + $0x158] sm:$0xf0] %v732_v36  ;;  %v2826_v42 = vpack.c.bf16 %v900_v41, %v895_v39 }
 0x148   :  { %v742_v48 = vpop.permute.xlu0 %741  ;;  %v744_v50 = vpop.permute.xlu1 %743  ;;  %2827 = vmatprep.subr.bf16.mxu0 %v2826_v42 }
 0x149   :  { %v746_v51 = vsel %vm80_vm5, %v742_v48, %v744_v50  ;;  %752 = vst.msk [vmem:[#allocation2 + $0x188] sm:$0xf] %vm469_vm8, %v744_v50  ;;  %2829 = vmatpush1.bf16.msra.mxu0 %v2828_v47 }
 0x14a   :  { %751 = vst [vmem:[#allocation2 + $0x180] sm:$0xf] %v746_v51 }
 0x14c   :  { %v756_v52 = vpop.permute.xlu0 %755  ;;  %v758_v53 = vpop.permute.xlu1 %757 }
 0x14d   :  { %v760_v55 = vsel %vm4996_vm6, %v756_v52, %v758_v53  ;;  %766 = vst.msk [vmem:[#allocation2 + $0x188] sm:$0xf0] %vm488_vm1, %v758_v53  ;;  %v905_v1 = vld [vmem:[#allocation2 + $0x158] sm:$0xff] }
 0x14e   :  { %765 = vst [vmem:[#allocation2 + $0x180] sm:$0xf0] %v760_v55 }
 0x150   :  { %v712_v56 = vpop.permute.xlu0 %711  ;;  %v726_v58 = vpop.permute.xlu1 %725 }
 0x151   :  { %v717_v60 = vsel %vm49_vm2, %v712_v56, %v714_v26  ;;  %v731_v62 = vsel %vm65_vm4, %v726_v58, %v728_v31 }
 0x152   :  { %722 = vst.msk [vmem:[#allocation2 + $0x150] sm:$0xf] %vm466_vm9, %v717_v60 }
 0x153   :  { %736 = vst.msk [vmem:[#allocation2 + $0x150] sm:$0xf0] %vm485_vm11, %v731_v62 }
 0x154   :  { %v740_v63 = vpop.permute.xlu0 %739  ;;  %v754_v0 = vpop.permute.xlu1 %753 }
 0x155   :  { %v745_v3 = vsel %vm80_vm5, %v740_v63, %v742_v48  ;;  %v759_v4 = vsel %vm4996_vm6, %v754_v0, %v756_v52  ;;  %v910_v7 = vld [vmem:[#allocation2 + $0x180] sm:$0xff]  ;;  %vm5024_vm6 = vcmask 367616  }
 0x156   :  { %750 = vst.msk [vmem:[#allocation2 + $0x178] sm:$0xf] %vm466_vm9, %v745_v3  ;;  %v2830_v27 = vpack.c.bf16 %v910_v7, %v905_v1 }
 0x157   :  { %764 = vst.msk [vmem:[#allocation2 + $0x178] sm:$0xf0] %vm485_vm11, %v759_v4 }
 0x158   :  { %v363_v9 = vpop.permute.xlu0 %362  ;;  %v383_v10 = vpop.permute.xlu1 %382  ;;  %2831 = vmatprep.subr.bf16.mxu0 %v2830_v27 }
 0x159   :  { %v367_v15 = vsel %vm4999_vm14, %v3525_v24, %v363_v9  ;;  %v387_v44 = vsel %vm4997_vm12, %v3538_v28, %v383_v10  ;;  %vm5025_vm12 = vcmask 883712  }
 0x15a   :  { %373 = vst.msk [vmem:[#allocation2 + $0x1a0] sm:$0xf] %vm39_vm0, %v367_v15  ;;  %v904_v21 = vld [vmem:[#allocation2 + $0x150] sm:$0xff] }
 0x15b   :  { %393 = vst.msk [vmem:[#allocation2 + $0x1a0] sm:$0xf0] %vm57_vm3, %v387_v44 }
 0x15c   :  { %v401_v13 = vpop.permute.xlu0 %400  ;;  %v419_v17 = vpop.permute.xlu1 %418 }
 0x15d   :  { %v405_v18 = vsel %vm4998_vm15, %v3548_v34, %v401_v13  ;;  %v423_v20 = vsel %vm5024_vm6, %v3557_v38, %v419_v17  ;;  %vm5026_vm6 = vcmask 875520   ;;  %vm5029_vm15 = vcmask 883712  }
 0x15e   :  { %v909_v22 = vld [vmem:[#allocation2 + $0x178] sm:$0xff]  ;;  %411 = vst.msk [vmem:[#allocation2 + $0x1c8] sm:$0xf] %vm39_vm0, %v405_v18 }
 0x15f   :  { %429 = vst.msk [vmem:[#allocation2 + $0x1c8] sm:$0xf0] %vm57_vm3, %v423_v20  ;;  %v2832_v24 = vpack.c.bf16 %v909_v22, %v904_v21  ;;  %vm5027_vm3 = vcmask 867328  }
 0x160   :  { %v776_v28 = vpop.permute.xlu0 %775  ;;  %v3756_v25 = vpop.permute.xlu1 %777 }
 0x161   :  { %2833 = vmatpush1.bf16.msra.mxu0 %v2832_v24  ;;  %v782_v26 = vsel %vm5025_vm12, %v776_v28, %v3756_v25  ;;  %vm5028_vm12 = vcmask 859136  }
 0x162   :  { %788 = vst [vmem:[#allocation2 + $0x1a8] sm:$0xf] %v782_v26  ;;  %vm5030_vm14 = vmmov %vm5028_vm12 }
 0x164   :  { %v795_v29 = vpop.permute.xlu0 %794  ;;  %v3760_v34 = vpop.permute.xlu1 %796 }
 0x165   :  { %v801_v38 = vsel %vm5026_vm6, %v795_v29, %v3760_v34 }
 0x166   :  { %807 = vst [vmem:[#allocation2 + $0x1a8] sm:$0xf0] %v801_v38 }
 0x168   :  { %v812_v30 = vpop.permute.xlu0 %811  ;;  %v3764_v31 = vpop.permute.xlu1 %813 }
 0x169   :  { %v818_v32 = vsel %vm5027_vm3, %v812_v30, %v3764_v31 }
 0x16a   :  { %824 = vst [vmem:[#allocation2 + $0x1d0] sm:$0xf] %v818_v32 }
 0x16c   :  { %v829_v33 = vpop.permute.xlu0 %828  ;;  %v3768_v36 = vpop.permute.xlu1 %830 }
 0x16d   :  { %v835_v39 = vsel %vm5028_vm12, %v829_v33, %v3768_v36  ;;  %v915_v53 = vld [vmem:[#allocation2 + $0x1a8] sm:$0xff]  ;;  %vm5032_vm12 = vcmask 490496  }
 0x16e   :  { %841 = vst [vmem:[#allocation2 + $0x1d0] sm:$0xf0] %v835_v39 }
 0x170   :  { %v774_v41 = vpop.permute.xlu0 %773  ;;  %v793_v42 = vpop.permute.xlu1 %792 }
 0x171   :  { %v781_v46 = vsel %vm5029_vm15, %v774_v41, %v776_v28  ;;  %v800_v47 = vsel %vm5026_vm6, %v793_v42, %v795_v29  ;;  %vm5031_vm15 = vcmask 359424   ;;  %vm5035_vm6 = vcmask 465920  }
 0x172   :  { %787 = vst.msk [vmem:[#allocation2 + $0x1a0] sm:$0xf] %vm466_vm9, %v781_v46 }
 0x173   :  { %806 = vst.msk [vmem:[#allocation2 + $0x1a0] sm:$0xf0] %vm485_vm11, %v800_v47 }
 0x174   :  { %v810_v48 = vpop.permute.xlu0 %809  ;;  %v827_v50 = vpop.permute.xlu1 %826 }
 0x175   :  { %v817_v51 = vsel %vm5027_vm3, %v810_v48, %v812_v30  ;;  %v834_v52 = vsel %vm5030_vm14, %v827_v50, %v829_v33  ;;  %v920_v55 = vld [vmem:[#allocation2 + $0x1d0] sm:$0xff]  ;;  %vm5033_vm14 = vcmask 482304   ;;  %vm5036_vm3 = vcmask 850944  }
 0x176   :  { %823 = vst.msk [vmem:[#allocation2 + $0x1c8] sm:$0xf] %vm466_vm9, %v817_v51  ;;  %v2834_v56 = vpack.c.bf16 %v920_v55, %v915_v53 }
 0x177   :  { %840 = vst.msk [vmem:[#allocation2 + $0x1c8] sm:$0xf0] %vm485_vm11, %v834_v52  ;;  %vm5034_vm11 = vcmask 474112  }
 0x178   :  { %v437_v58 = vpop.permute.xlu0 %436  ;;  %v459_v60 = vpop.permute.xlu1 %458  ;;  %2835 = vmatprep.subr.bf16.mxu0 %v2834_v56 }
 0x179   :  { %v441_v62 = vsel %vm5031_vm15, %v3576_v54, %v437_v58  ;;  %v462_v63 = vsel %vm5032_vm12, %v3588_v59, %v459_v60  ;;  %vm5037_vm15 = vmmov %vm5036_vm3  ;;  %vm5038_vm12 = vcmask 457728  }
 0x17a   :  { %447 = vst.msk [vmem:[#allocation2 + $0x1f0] sm:$0xf] %vm39_vm0, %v441_v62  ;;  %v914_v7 = vld [vmem:[#allocation2 + $0x1a0] sm:$0xff] }
 0x17b   :  { %470 = vst.msk [vmem:[#allocation2 + $0x20] sm:$0xf] %vm469_vm8, %v462_v63 }
 0x17c   :  { %v478_v0 = vpop.permute.xlu0 %477  ;;  %v495_v3 = vpop.permute.xlu1 %494 }
 0x17d   :  { %v481_v4 = vsel %vm5033_vm14, %v3596_v2, %v478_v0  ;;  %v498_v1 = vsel %vm5034_vm11, %v3604_v6, %v495_v3  ;;  %vm5039_vm14 = vcmask 318464   ;;  %vm5041_vm11 = vcmask 1043456   ;;  %v911_v3 = vld [vmem:[#allocation2 + $0x188] sm:$0xff] }
 0x17e   :  { %v919_v27 = vld [vmem:[#allocation2 + $0x1c8] sm:$0xff]  ;;  %489 = vst.msk [vmem:[#allocation2 + $0x20] sm:$0xf0] %vm488_vm1, %v481_v4 }
 0x17f   :  { %504 = vst.msk [vmem:[#allocation2 + $0x48] sm:$0xf] %vm469_vm8, %v498_v1  ;;  %v2836_v54 = vpack.c.bf16 %v919_v27, %v914_v7 }
 0x180   :  { %v510_v59 = vpop.permute.xlu0 %509  ;;  %v846_v9 = vpop.permute.xlu1 %845 }
 0x181   :  { %2837 = vmatpush1.bf16.msra.mxu0 %v2836_v54  ;;  %v513_v10 = vsel %vm5035_vm6, %v3615_v11, %v510_v59  ;;  %vm5042_vm6 = vmmov %vm5041_vm11 }
 0x182   :  { %519 = vst.msk [vmem:[#allocation2 + $0x48] sm:$0xf0] %vm488_vm1, %v513_v10 }
 0x184   :  { %v3795_v15 = vpop.permute.xlu0 %847  ;;  %v844_v2 = vpop.permute.xlu1 %843 }
 0x185   :  { %v852_v6 = vsel %vm5036_vm3, %v846_v9, %v3795_v15  ;;  %v851_v44 = vsel %vm5037_vm15, %v844_v2, %v846_v9  ;;  %v866_v38 = vld [vmem:[#allocation2 + $0x20] sm:$0xff]  ;;  %vm5043_vm3 = vcmask 818176   ;;  %vm5044_vm15 = vcmask 302080  }
 0x186   :  { %858 = vst [vmem:[#allocation2 + $0x1f8] sm:$0xf] %v852_v6  ;;  %857 = vst.msk [vmem:[#allocation2 + $0x1f0] sm:$0xf] %vm466_vm9, %v851_v44  ;;  %vm5040_vm9 = vcmask 310272  }
 0x188   :  { %v525_v13 = vpop.permute.xlu0 %524  ;;  %v546_v17 = vpop.permute.xlu1 %545 }
 0x189   :  { %v528_v18 = vsel %vm5038_vm12, %v3624_v16, %v525_v13  ;;  %v549_v11 = vsel %vm547_vm7, %v3631_v19, %v546_v17  ;;  %v871_v20 = vld [vmem:[#allocation2 + $0x48] sm:$0xff]  ;;  %vm5045_vm12 = vcmask 293888  }
 0x18a   :  { %534 = vst.msk [vmem:[#allocation2 + $0x70] sm:$0xf] %vm469_vm8, %v528_v18  ;;  %v2838_v16 = vpack.c.bf16 %v871_v20, %v866_v38 }
 0x18b   :  { %555 = vst.msk [vmem:[#allocation2 + $0x70] sm:$0xf0] %vm488_vm1, %v549_v11 }
 0x18c   :  { %v562_v21 = vpop.permute.xlu0 %561  ;;  %v577_v22 = vpop.permute.xlu1 %576 }
 0x18d   :  { %v565_v24 = vsel %vm5039_vm14, %v3649_v14, %v562_v21  ;;  %v580_v28 = vsel %vm5040_vm9, %v3664_v40, %v577_v22  ;;  %v925_v26 = vld [vmem:[#allocation2 + $0x1f8] sm:$0xf]  ;;  %v924_v29 = vld [vmem:[#allocation2 + $0x1f0] sm:$0xf]  ;;  %vm5046_vm14 = vmmov %vm5043_vm3  ;;  %vm5047_vm9 = vcmask 162816  }
 0x18e   :  { %571 = vst.msk [vmem:[#allocation2 + $0x98] sm:$0xf] %vm469_vm8, %v565_v24  ;;  %2723 = vmatprep.subr.msk.mxu0 %vm5041_vm11, %v925_v26  ;;  %vm5048_vm11 = vcmask 154624   ;;  %v1208_v26 = vld [vmem:[%s4928_s4] sm:$0xff]  ;;  %s5067_s4 = smov 124  }
 0x18f   :  { %586 = vst.msk [vmem:[#allocation2 + $0x98] sm:$0xf0] %vm488_vm1, %v580_v28  ;;  %2724 = vmatpush1.msk.msra.mxu0 %vm5042_vm6, %v924_v29  ;;  %vm5049_vm6 = vmmov %vm5043_vm3 }
 0x190   :  { %v592_v19 = vpop.permute.xlu0 %591  ;;  %2725 = vmatmul.mubr.msk.f32.vlgmr.msra.gmra.mrb[4].mxu0 %vm5043_vm3, %v3636_v5  ;;  %2839 = vmatprep.subr.bf16.mxu0 %v2838_v16  ;;  %vm5050_vm3 = vcmask 138240  }
 0x191   :  { %v607_v30 = vpop.permute.xlu1 %606  ;;  %v595_v14 = vsel %vm5044_vm15, %v3672_v43, %v592_v19  ;;  %2841 = vmatpush3.bf16.msra.mxu0 %v2838_v16  ;;  %1109 = vmatprep.mubr.f32.mxu0 %v5014_v57  ;;  %vm5051_vm15 = vcmask 883712  }
 0x192   :  { %v610_v40 = vsel %vm5045_vm12, %v3681_v49, %v607_v30  ;;  %601 = vst.msk [vmem:[#allocation2 + $0xc0] sm:$0xf] %vm469_vm8, %v595_v14  ;;  %v876_v41 = vld [vmem:[#allocation2 + $0x70] sm:$0xff]  ;;  %vm5053_vm12 = vcmask 867328  }
 0x193   :  { %616 = vst.msk [vmem:[#allocation2 + $0xc0] sm:$0xf0] %vm488_vm1, %v610_v40 }
 0x194   :  { %v627_v32 = vpop.permute.xlu0 %626  ;;  %2726 = vmatmul.mubr.msk.f32.gmra.mrb[6].mxu0 %vm5046_vm14, %v3658_v35  ;;  %vm5054_vm14 = vcmask 859136  }
 0x195   :  { %v644_v33 = vpop.permute.xlu1 %643  ;;  %v630_v39 = vsel %vm5047_vm9, %v3688_v61, %v627_v32  ;;  %2780 = vmatprep.mubr.msk.f32.mxu0 %vm5049_vm6, %v3636_v5  ;;  %vm5055_vm9 = vcmask 850944  }
 0x196   :  { %v647_v43 = vsel %vm5048_vm11, %v3696_v45, %v644_v33  ;;  %v881_v49 = vld [vmem:[#allocation2 + $0x98] sm:$0xff]  ;;  %636 = vst.msk [vmem:[#allocation2 + $0xe8] sm:$0xf] %vm469_vm8, %v630_v39  ;;  %vm5056_vm11 = vcmask 1043456  }
 0x197   :  { %653 = vst.msk [vmem:[#allocation2 + $0xe8] sm:$0xf0] %vm488_vm1, %v647_v43  ;;  %v2842_v42 = vpack.c.bf16 %v881_v49, %v876_v41  ;;  %vm5057_vm6 = vmmov %vm5056_vm11 }
 0x198   :  { %v659_v46 = vpop.permute.xlu0 %658 }
 0x199   :  { %v674_v47 = vpop.permute.xlu1 %673  ;;  %2843 = vmatprep.subr.bf16.mxu0 %v2842_v42  ;;  %v662_v48 = vsel %vm660_vm10, %v3713_v8, %v659_v46  ;;  %vm5052_vm10 = vcmask 875520   ;;  %v5015_v46 = vmov 0.0|0.0  }
 0x19a   :  { %v677_v61 = vsel %vm5050_vm3, %v3718_v12, %v674_v47  ;;  %2845 = vmatpush3.bf16.msra.mxu0 %v2842_v42  ;;  %668 = vst.msk [vmem:[#allocation2 + $0x110] sm:$0xf] %vm469_vm8, %v662_v48  ;;  %v886_v52 = vld [vmem:[#allocation2 + $0xc0] sm:$0xff]  ;;  %vm3131_vm3 = vmmov 0  }
 0x19b   :  { %683 = vst.msk [vmem:[#allocation2 + $0x110] sm:$0xf0] %vm488_vm1, %v677_v61 }
 0x19c   :  { %v689_v5 = vpop.permute.xlu0 %688 }
 0x19d   :  { %v780_v45 = vpop.permute.xlu1 %779  ;;  %v692_v50 = vsel %vm690_vm13, %v3723_v23, %v689_v5 }
 0x19e   :  { %v783_v51 = vsel %vm5051_vm15, %v3756_v25, %v780_v45  ;;  %v891_v53 = vld [vmem:[#allocation2 + $0xe8] sm:$0xff]  ;;  %698 = vst.msk [vmem:[#allocation2 + $0x138] sm:$0xf] %vm469_vm8, %v692_v50 }
 0x19f   :  { %789 = vst.msk [vmem:[#allocation2 + $0x1b0] sm:$0xf] %vm469_vm8, %v783_v51  ;;  %v2846_v8 = vpack.c.bf16 %v891_v53, %v886_v52  ;;  %v1443_v52 = vlaneseq  ;;  %v29_v53 = vld [vmem:[%s4929_s1] sm:$0x7]  ;;  %s3132_s1 = smov 42  }
 0x1a0   :  { %v799_v12 = vpop.permute.xlu0 %798  ;;  %vm30_vm15 = vcmp.gt.f32.partialorder %v29_v53, 0.5 }
 0x1a1   :  { %v816_v55 = vpop.permute.xlu1 %815  ;;  %2847 = vmatprep.subr.bf16.mxu0 %v2846_v8  ;;  %v802_v56 = vsel %vm5052_vm10, %v3760_v34, %v799_v12 }
 0x1a2   :  { %v819_v58 = vsel %vm5053_vm12, %v3764_v31, %v816_v55  ;;  %2849 = vmatpush3.bf16.msra.mxu0 %v2846_v8  ;;  %808 = vst.msk [vmem:[#allocation2 + $0x1b0] sm:$0xf0] %vm488_vm1, %v802_v56  ;;  %v896_v63 = vld [vmem:[#allocation2 + $0x110] sm:$0xff]  ;;  %v906_v31 = vld [vmem:[#allocation2 + $0x160] sm:$0xff]  ;;  %v1444_v8 = vshrl.u32 %v1443_v52, 7  ;;  %v1442_v55 = vsel %vm30_vm15, 1, %v3122_v37 }
 0x1a3   :  { %825 = vst.msk [vmem:[#allocation2 + $0x1d8] sm:$0xf] %vm469_vm8, %v819_v58  ;;  %v2854_v4 = vpack.c.bf16 %v911_v3, %v906_v31  ;;  %vm1476_vm12 = vcmask 1047888   ;;  %vm5080_vm15 = vcmask 875520  }
 0x1a4   :  { %v833_v23 = vpop.permute.xlu0 %832  ;;  %v1445_v12 = vsub.s32 0, %v1444_v8  ;;  %v1449_v56 = vsub.s32 1, %v1444_v8 }
 0x1a5   :  { %v850_v25 = vpop.permute.xlu1 %849  ;;  %v836_v60 = vsel %vm5054_vm14, %v3768_v36, %v833_v23  ;;  %v901_v0 = vld [vmem:[#allocation2 + $0x138] sm:$0xff]  ;;  %vm1470_vm14 = vcmask 343040  }
 0x1a6   :  { %v853_v62 = vsel %vm5055_vm9, %v3795_v15, %v850_v25  ;;  %842 = vst.msk [vmem:[#allocation2 + $0x1d8] sm:$0xf0] %vm488_vm1, %v836_v60  ;;  %v2850_v34 = vpack.c.bf16 %v901_v0, %v896_v63  ;;  %vm5058_vm1 = vcmask 818176   ;;  %v3897_v58 = vrot.slane %v1442_v55, %v1445_v12 }
 0x1a7   :  { %859 = vst.msk [vmem:[#allocation2 + $0x200] sm:$0xf] %vm469_vm8, %v853_v62  ;;  %vm1440_vm8 = vcmask 261120   ;;  %v3899_v23 = vrot.slane %v1442_v55, %v1449_v56 }
 0x1a8   :  { %2851 = vmatprep.subr.bf16.mxu0 %v2850_v34 }
 0x1a9   :  { %2853 = vmatpush3.bf16.msra.mxu0 %v2850_v34  ;;  %v916_v1 = vld [vmem:[#allocation2 + $0x1b0] sm:$0xff]  ;;  %vm1456_vm10 = vcmp.eq.s32.totalorder %v3899_v23, 1 }
 0x1aa   :  { %2855 = vmatprep.subr.bf16.mxu0 %v2854_v4 }
 0x1ad   :  { %2857 = vmatpush3.bf16.msra.mxu0 %v2854_v4  ;;  %v921_v7 = vld [vmem:[#allocation2 + $0x1d8] sm:$0xff] }
 0x1ae   :  { %v2858_v36 = vpack.c.bf16 %v921_v7, %v916_v1  ;;  %v926_v27 = vld [vmem:[#allocation2 + $0x200] sm:$0xf] }
 0x1b0   :  { %2859 = vmatprep.subr.bf16.mxu0 %v2858_v36 }
 0x1b1   :  { %2861 = vmatpush3.bf16.msra.mxu0 %v2858_v36 }
 0x1b2   :  { %2778 = vmatprep.subr.msk.mxu0 %vm5056_vm11, %v926_v27  ;;  %vm1479_vm11 = vcmask 834560  }
 0x1b5   :  { %2779 = vmatpush3.msk.msra.mxu0 %vm5057_vm6, %v926_v27  ;;  %v3860_v54 = vpop.permute.xlu0 %931  ;;  %vm5076_vm6 = vcmask 490496  }
 0x1b6   :  { %2781 = vmatmul.mubr.msk.f32.vlgmr.msra.gmra.mrb[8].mxu0 %vm5058_vm1, %v3658_v35  ;;  %v937_v2 = vpop.permute.xlu1 %936  ;;  %vm5077_vm1 = vcmask 556032  }
 0x1b9   :  { %v3864_v59 = vpop.permute.xlu0 %1205 }
 0x1ba   :  { %1434 = vst [vmem:[#allocation3] sm:$0xff] %v3864_v59  ;;  %1436 = vst [vmem:[#allocation3 + $0x10] sm:$0xff] %v3864_v59  ;;  %v1212_v25 = vpop.permute.xlu1 %1211 }
 0x1bb   :  { %1437 = vst [vmem:[#allocation3 + $0x18] sm:$0xff] %v3864_v59  ;;  %1439 = vst [vmem:[#allocation3 + $0x28] sm:$0xff] %v3864_v59 }
 0x1bc   :  { %1441 = vst.msk [vmem:[#allocation3 + $0x30] sm:$0xff] %vm1440_vm8, %v3864_v59  ;;  %vm5078_vm8 = vcmask 1014784  }
 0x1c3   :  { %v2135_v9 = vld [vmem:[#allocation3 + $0x30] sm:$0xff] }
 0x1c4   :  { %2146 = vrot.lane.b32.xlu1 %v2135_v9, %s5008_s3  ;;  %2164 = vrot.lane.b32.xlu0 %v2135_v9, %s5012_s5  ;;  %s5073_s3 = smov 67   ;;  %s5075_s5 = smov 48  }
 0x1c8   :  { %2182 = vrot.lane.b32.xlu1 %v2135_v9, %s5006_s23  ;;  %2200 = vrot.lane.b32.xlu0 %v2135_v9, %s5004_s30  ;;  %s5071_s30 = smov 86   ;;  %s5072_s23 = smov 84  }
 0x1cc   :  { %2218 = vrot.lane.b32.xlu1 %v2135_v9, %s3086_s17  ;;  %2243 = vrot.lane.b32.xlu0 %v2135_v9, %s5002_s26  ;;  %s5070_s26 = smov 88  }
 0x1d0   :  { %2261 = vrot.lane.b32.xlu1 %v2135_v9, %s5010_s25  ;;  %s5074_s25 = smov 65  }
 0x1d4   :  { %2279 = vrot.lane.b32.xlu1 %v2135_v9, %s5000_s15  ;;  %v1453_v9 = vsub.s32 2, %v1444_v8  ;;  %s5069_s15 = smov 64  }
 0x1ef   :  { %v1028_v35 = vpop.f32.mrb[0].mxu0 }
 0x1f0   :  { %v1030_v10 = vpop.f32.mrb[1].mxu0  ;;  %v1029_v15 = vadd.f32 %v1028_v35, %v3860_v54 }
 0x1f1   :  { %v1031_v6 = vadd.f32 %v1030_v10, %v3860_v54 }
 0x1f2   :  { %v1191_v18 = vmax.f32 %v1029_v15, 0.0 }
 0x1f3   :  { %v1034_v44 = vpop.f32.mrb[2].mxu0  ;;  %v1192_v20 = vmax.f32 %v1031_v6, 0.0 }
 0x1f4   :  { %v1036_v13 = vpop.f32.mrb[3].mxu0  ;;  %v1035_v17 = vadd.f32 %v1034_v44, %v937_v2 }
 0x1f5   :  { %v1037_v11 = vadd.f32 %v1036_v13, %v937_v2  ;;  %v3927_v13 = vrot.slane %v1442_v55, %v1453_v9 }
 0x1f6   :  { %v1196_v21 = vmax.f32 %v1035_v17, 0.0 }
 0x1f7   :  { %v1197_v22 = vmax.f32 %v1037_v11, 0.0  ;;  %vm1457_vm9 = vcmp.eq.s32.totalorder %v3927_v13, 1 }
 0x1f8   :  { %v2864_v24 = vpack.c.bf16 %v1196_v21, %v1191_v18 }
 0x1f9   :  { %v2862_v28 = vpack.c.bf16 %v1197_v22, %v1192_v20 }
 0x1fb   :  { %2863 = vmatprep.subr.bf16.mxu1 %v2862_v28 }
 0x1fc   :  { %2865 = vmatpush1.bf16.msra.mxu1 %v2864_v24 }
 0x1ff   :  { %2730 = vmatmul.mubr.msk.f32.vlgmr.msra.gmra.mrb[0].mxu1 %vm690_vm13, %v1208_v26 }
 0x200   :  { %1352 = vmatprep.mubr.f32.mxu1 %v5014_v57 }
 0x236   :  { %v3911_v4 = vpop.permute.xlu1 %2146  ;;  %v3915_v7 = vpop.permute.xlu0 %2164 }
 0x23a   :  { %v3913_v1 = vpop.permute.xlu1 %2182  ;;  %v3919_v27 = vpop.permute.xlu0 %2200 }
 0x23b   :  { %5060 = vst [vmem:[#allocation6_spill] sm:$0xff] %v3919_v27 }
 0x23e   :  { %v3917_v36 = vpop.permute.xlu1 %2218  ;;  %v3923_v35 = vpop.permute.xlu0 %2243 }
 0x23f   :  { %5059 = vst [vmem:[#allocation5_spill] sm:$0xff] %v3917_v36  ;;  %5062 = vst [vmem:[#allocation8_spill] sm:$0xff] %v3923_v35 }
 0x263   :  { %v1105_v29 = vpop.f32.mrb[4].mxu0 }
 0x264   :  { %v1107_v38 = vpop.f32.mrb[5].mxu0  ;;  %v1106_v16 = vadd.f32 %v1105_v29, %v3860_v54 }
 0x265   :  { %v1108_v19 = vadd.f32 %v1107_v38, %v3860_v54 }
 0x266   :  { %v1193_v33 = vmax.f32 %v1106_v16, 0.0 }
 0x267   :  { %v1111_v30 = vpop.f32.mrb[6].mxu0  ;;  %v1194_v43 = vmax.f32 %v1108_v19, 0.0 }
 0x268   :  { %v1112_v14 = vadd.f32 %v1111_v30, %v937_v2  ;;  %v1113_v40 = vpop.f32.mrb[7].mxu0 }
 0x269   :  { %v1114_v32 = vadd.f32 %v1113_v40, %v937_v2 }
 0x26a   :  { %v1198_v39 = vmax.f32 %v1112_v14, 0.0 }
 0x26b   :  { %v1199_v41 = vmax.f32 %v1114_v32, 0.0 }
 0x26c   :  { %v2868_v49 = vpack.c.bf16 %v1198_v39, %v1193_v33 }
 0x26d   :  { %v2866_v42 = vpack.c.bf16 %v1199_v41, %v1194_v43 }
 0x26f   :  { %2867 = vmatprep.subr.bf16.mxu1 %v2866_v42 }
 0x270   :  { %2869 = vmatpush1.bf16.msra.mxu1 %v2868_v49 }
 0x271   :  { %2870 = vmatprep.subr.bf16.mxu1 %v5015_v46 }
 0x273   :  { %2731 = vmatmul.mubr.msk.f32.vlgmr.msra.gmra.mrb[2].mxu1 %vm690_vm13, %v1208_v26 }
 0x274   :  { %2787 = vmatprep.mubr.msk.f32.mxu1 %vm3131_vm3, %v5014_v57  ;;  %vm5079_vm3 = vcmask 883712  }
 0x289   :  { %v2782_v47 = vpop.f32.mrb[8].mxu0 }
 0x28a   :  { %v1188_v48 = vadd.f32 %v2782_v47, %v937_v2  ;;  %v1182_v61 = vpop.f32.mrb[9].mxu0 }
 0x28b   :  { %v1183_v5 = vadd.f32 %v1182_v61, %v3860_v54  ;;  %v3921_v54 = vpop.permute.xlu1 %2261 }
 0x28c   :  { %v1200_v45 = vmax.f32 %v1188_v48, 0.0  ;;  %5061 = vst [vmem:[#allocation7_spill] sm:$0xff] %v3921_v54 }
 0x28d   :  { %v1195_v50 = vmax.f32 %v1183_v5, 0.0 }
 0x28f   :  { %v2871_v51 = vpack.c.bf16 %v1200_v45, %v1195_v50  ;;  %v3925_v15 = vpop.permute.xlu1 %2279 }
 0x290   :  { %5063 = vst [vmem:[#allocation9_spill] sm:$0xff] %v3925_v15 }
 0x291   :  { %2872 = vmatpush3.bf16.msra.mxu1 %v2871_v51 }
 0x294   :  { %2788 = vmatmul.mubr.msk.f32.vlgmr.msra.gmra.mrb[4].mxu1 %vm690_vm13, %v1208_v26  ;;  %vm1455_vm13 = vcmp.eq.s32.totalorder %v3897_v58, 1 }
 0x2d2   :  { %v1283_v60 = vpop.f32.mrb[0].mxu1 }
 0x2d3   :  { %v1284_v62 = vadd.f32 %v1283_v60, %v1212_v25  ;;  %v1285_v63 = vpop.f32.mrb[1].mxu1 }
 0x2d4   :  { %v1286_v0 = vadd.f32 %v1285_v63, %v1212_v25 }
 0x2d5   :  { %v1429_v3 = vmax.f32 %v1284_v62, 0.0 }
 0x2d6   :  { %v1430_v34 = vmax.f32 %v1286_v0, 0.0 }
 0x2d7   :  { %v1458_v37 = vsel %vm1455_vm13, %v1429_v3, %v3864_v59 }
 0x2d8   :  { %1464 = vrot.lane.b32.xlu0 %v1458_v37, %s3132_s1  ;;  %v1459_v31 = vsel %vm1456_vm10, %v1430_v34, %v3864_v59 }
 0x2d9   :  { %1466 = vrot.lane.b32.xlu1 %v1459_v31, %s3132_s1 }
 0x346   :  { %v1354_v10 = vpop.f32.mrb[2].mxu1 }
 0x347   :  { %v1355_v2 = vadd.f32 %v1354_v10, %v1212_v25  ;;  %v1356_v6 = vpop.f32.mrb[3].mxu1 }
 0x348   :  { %v1357_v44 = vadd.f32 %v1356_v6, %v1212_v25 }
 0x349   :  { %v1431_v17 = vmax.f32 %v1355_v2, 0.0 }
 0x34a   :  { %v1432_v18 = vmax.f32 %v1357_v44, 0.0  ;;  %v1465_v11 = vpop.permute.xlu0 %1464 }
 0x34b   :  { %1477 = vst.msk [vmem:[#allocation3] sm:$0xff] %vm1476_vm12, %v1465_v11  ;;  %v1467_v20 = vpop.permute.xlu1 %1466  ;;  %1484 = vrot.lane.b32.xlu1 %v1431_v17, %s5064_s0  ;;  %v1460_v22 = vsel %vm1457_vm9, %v1431_v17, %v3864_v59  ;;  %vm5082_vm12 = vcmask 867328  }
 0x34c   :  { %v3931_v21 = vsel %vm1470_vm14, %v1465_v11, %v1467_v20  ;;  %1486 = vrot.lane.b32.xlu0 %v1432_v18, %s5064_s0 }
 0x350   :  { %1468 = vrot.lane.b32.xlu0 %v1460_v22, %s3132_s1 }
 0x352   :  { %v3939_v24 = vld [vmem:[#allocation3] sm:$0xff] }
 0x354   :  { %1526 = vrot.lane.b32.xlu0 %v3939_v24, %s3083_s10 }
 0x358   :  { %1554 = vrot.lane.b32.xlu0 %v3939_v24, %s3084_s11 }
 0x35c   :  { %1588 = vrot.lane.b32.xlu0 %v3939_v24, %s3086_s17 }
 0x360   :  { %1616 = vrot.lane.b32.xlu0 %v3939_v24, %s3088_s19 }
 0x364   :  { %1644 = vrot.lane.b32.xlu0 %v3939_v24, %s3090_s21 }
 0x367   :  { %v1425_v28 = vpop.f32.mrb[4].mxu1 }
 0x368   :  { %v1426_v26 = vadd.f32 %v1425_v28, %v1212_v25  ;;  %v2789_v29 = vpop.f32.mrb[5].mxu1  ;;  %1678 = vrot.lane.b32.xlu0 %v3939_v24, %s5065_s28 }
 0x36a   :  { %v1433_v38 = vmax.f32 %v1426_v26, 0.0 }
 0x36c   :  { %1488 = vrot.lane.b32.xlu1 %v1433_v38, %s5064_s0  ;;  %1706 = vrot.lane.b32.xlu0 %v3939_v24, %s5066_s29 }
 0x370   :  { %1540 = vrot.lane.b32.xlu1 %v3939_v24, %s3082_s9  ;;  %1740 = vrot.lane.b32.xlu0 %v3939_v24, %s5064_s0 }
 0x374   :  { %1568 = vrot.lane.b32.xlu1 %v3939_v24, %s5067_s4  ;;  %1768 = vrot.lane.b32.xlu0 %v3939_v24, %s5068_s14 }
 0x378   :  { %1602 = vrot.lane.b32.xlu1 %v3939_v24, %s3087_s18  ;;  %1796 = vrot.lane.b32.xlu0 %v3939_v24, %s5069_s15 }
 0x37c   :  { %1630 = vrot.lane.b32.xlu1 %v3939_v24, %s3089_s20  ;;  %1835 = vrot.lane.b32.xlu0 %v3939_v24, %s3102_s24 }
 0x380   :  { %1664 = vrot.lane.b32.xlu1 %v3939_v24, %s5070_s26  ;;  %1869 = vrot.lane.b32.xlu0 %v3939_v24, %s3104_s13 }
 0x384   :  { %1692 = vrot.lane.b32.xlu1 %v3939_v24, %s5071_s30  ;;  %1528 = vrot.lane.b32.xlu0 %v3931_v21, %s3083_s10 }
 0x388   :  { %1720 = vrot.lane.b32.xlu1 %v3939_v24, %s5072_s23 }
 0x38c   :  { %1754 = vrot.lane.b32.xlu1 %v3939_v24, %s5073_s3 }
 0x390   :  { %1782 = vrot.lane.b32.xlu1 %v3939_v24, %s5074_s25 }
 0x394   :  { %1818 = vrot.lane.b32.xlu1 %v3939_v24, %s5075_s5 }
 0x398   :  { %1852 = vrot.lane.b32.xlu1 %v3939_v24, %s3103_s12 }
 0x39c   :  { %1886 = vrot.lane.b32.xlu1 %v3939_v24, %s3105_s16 }
 0x3a0   :  { %1542 = vrot.lane.b32.xlu1 %v3931_v21, %s3082_s9 }
 0x3a4   :  { %1556 = vrot.lane.b32.xlu1 %v3931_v21, %s3084_s11 }
 0x3a8   :  { %1570 = vrot.lane.b32.xlu1 %v3931_v21, %s5067_s4 }
 0x3ac   :  { %1590 = vrot.lane.b32.xlu1 %v3931_v21, %s3086_s17 }
 0x3b0   :  { %1604 = vrot.lane.b32.xlu1 %v3931_v21, %s3087_s18 }
 0x3b4   :  { %1618 = vrot.lane.b32.xlu1 %v3931_v21, %s3088_s19 }
 0x3b8   :  { %1632 = vrot.lane.b32.xlu1 %v3931_v21, %s3089_s20 }
 0x3bc   :  { %1646 = vrot.lane.b32.xlu1 %v3931_v21, %s3090_s21 }
 0x3bd   :  { %v1485_v41 = vpop.permute.xlu1 %1484 }
 0x3be   :  { %v4008_v16 = vpop.permute.xlu0 %1486 }
 0x3bf   :  { %v1490_v60 = vsel %vm5077_vm1, %v1485_v41, %v4008_v16 }
 0x3c0   :  { %1666 = vrot.lane.b32.xlu1 %v3931_v21, %s5070_s26  ;;  %v1495_v63 = vsel %vm1455_vm13, %v1490_v60, %v3864_v59  ;;  %vm5081_vm13 = vmmov %vm5077_vm1  ;;  %vm5087_vm1 = vcmask 703488  }
 0x3c2   :  { %v1469_v19 = vpop.permute.xlu0 %1468 }
 0x3c3   :  { %v1472_v30 = vsel %vm1470_vm14, %v1467_v20, %v1469_v19 }
 0x3c4   :  { %1480 = vst.msk [vmem:[#allocation3 + $0x10] sm:$0xff] %vm1479_vm11, %v1472_v30  ;;  %1680 = vrot.lane.b32.xlu1 %v3931_v21, %s5065_s28  ;;  %vm5084_vm11 = vcmask 850944  }
 0x3c6   :  { %v1527_v14 = vpop.permute.xlu0 %1526 }
 0x3c8   :  { %1694 = vrot.lane.b32.xlu1 %v3931_v21, %s5071_s30 }
 0x3ca   :  { %v4017_v40 = vpop.permute.xlu0 %1554 }
 0x3cb   :  { %v4019_v32 = vld [vmem:[#allocation3 + $0x10] sm:$0xff] }
 0x3cc   :  { %1708 = vrot.lane.b32.xlu1 %v3931_v21, %s5066_s29  ;;  %1544 = vrot.lane.b32.xlu0 %v4019_v32, %s3082_s9  ;;  %1522 = vst.msk [vmem:[#allocation4 + $0x10] sm:$0xff] %vm5076_vm6, %v4019_v32  ;;  %vm5085_vm6 = vcmask 719872  }
 0x3ce   :  { %v4027_v33 = vpop.permute.xlu0 %1588 }
 0x3d0   :  { %1722 = vrot.lane.b32.xlu1 %v3931_v21, %s5072_s23  ;;  %1558 = vrot.lane.b32.xlu0 %v4019_v32, %s3084_s11  ;;  %s3133_s11 = smov 24  }
 0x3d2   :  { %v4033_v39 = vpop.permute.xlu0 %1616 }
 0x3d4   :  { %1742 = vrot.lane.b32.xlu1 %v3931_v21, %s5064_s0  ;;  %1572 = vrot.lane.b32.xlu0 %v4019_v32, %s5067_s4  ;;  %s5157_s4 = smov 92  }
 0x3d6   :  { %v4039_v43 = vpop.permute.xlu0 %1644 }
 0x3d8   :  { %1756 = vrot.lane.b32.xlu1 %v3931_v21, %s5073_s3  ;;  %1592 = vrot.lane.b32.xlu0 %v4019_v32, %s3086_s17 }
 0x3da   :  { %v4045_v49 = vpop.permute.xlu0 %1678 }
 0x3dc   :  { %1770 = vrot.lane.b32.xlu1 %v3931_v21, %s5068_s14  ;;  %1606 = vrot.lane.b32.xlu0 %v4019_v32, %s3087_s18  ;;  %s3134_s18 = smov 43  }
 0x3de   :  { %v4051_v42 = vpop.permute.xlu1 %1488  ;;  %v4053_v47 = vpop.permute.xlu0 %1706 }
 0x3df   :  { %v1497_v58 = vsel %vm1457_vm9, %v4051_v42, %v3864_v59  ;;  %v1491_v26 = vsel %vm5081_vm13, %v4008_v16, %v4051_v42  ;;  %vm5083_vm9 = vcmask 859136   ;;  %vm5090_vm13 = vcmask 687104  }
 0x3e0   :  { %1784 = vrot.lane.b32.xlu1 %v3931_v21, %s5074_s25  ;;  %1620 = vrot.lane.b32.xlu0 %v4019_v32, %s3088_s19  ;;  %v1496_v19 = vsel %vm1456_vm10, %v1491_v26, %v3864_v59  ;;  %vm5086_vm10 = vcmask 711680   ;;  %s3135_s19 = smov 23  }
 0x3e2   :  { %v1541_v48 = vpop.permute.xlu1 %1540  ;;  %v4059_v61 = vpop.permute.xlu0 %1740 }
 0x3e4   :  { %1798 = vrot.lane.b32.xlu1 %v3931_v21, %s5069_s15  ;;  %1634 = vrot.lane.b32.xlu0 %v4019_v32, %s3089_s20  ;;  %s3136_s20 = smov 22  }
 0x3e6   :  { %v1569_v5 = vpop.permute.xlu1 %1568  ;;  %v4065_v45 = vpop.permute.xlu0 %1768 }
 0x3e8   :  { %1820 = vrot.lane.b32.xlu1 %v3931_v21, %s5075_s5  ;;  %1648 = vrot.lane.b32.xlu0 %v4019_v32, %s3090_s21  ;;  %s3137_s21 = smov 41  }
 0x3ea   :  { %v1603_v50 = vpop.permute.xlu1 %1602  ;;  %v4071_v51 = vpop.permute.xlu0 %1796 }
 0x3ec   :  { %1837 = vrot.lane.b32.xlu1 %v3931_v21, %s3102_s24  ;;  %1668 = vrot.lane.b32.xlu0 %v4019_v32, %s5070_s26 }
 0x3ee   :  { %v1631_v52 = vpop.permute.xlu1 %1630  ;;  %v4077_v53 = vpop.permute.xlu0 %1835 }
 0x3f0   :  { %1854 = vrot.lane.b32.xlu1 %v3931_v21, %s3103_s12  ;;  %1682 = vrot.lane.b32.xlu0 %v4019_v32, %s5065_s28  ;;  %s5154_s28 = smov 110  }
 0x3f2   :  { %v1665_v8 = vpop.permute.xlu1 %1664  ;;  %v4083_v12 = vpop.permute.xlu0 %1869 }
 0x3f4   :  { %1871 = vrot.lane.b32.xlu1 %v3931_v21, %s3104_s13  ;;  %1696 = vrot.lane.b32.xlu0 %v4019_v32, %s5071_s30  ;;  %s3140_s30 = smov 3  }
 0x3f6   :  { %v1693_v55 = vpop.permute.xlu1 %1692  ;;  %v4089_v56 = vpop.permute.xlu0 %1528 }
 0x3f7   :  { %v4093_v25 = vsel %vm49_vm2, %v1527_v14, %v4089_v56 }
 0x3f8   :  { %1888 = vrot.lane.b32.xlu1 %v3931_v21, %s3105_s16  ;;  %1710 = vrot.lane.b32.xlu0 %v4019_v32, %s5066_s29  ;;  %s5155_s29 = smov 109  }
 0x3fa   :  { %v4101_v62 = vpop.permute.xlu1 %1720 }
 0x3fc   :  { %1501 = vrot.lane.b32.xlu1 %v1495_v63, %s3108_s22  ;;  %1724 = vrot.lane.b32.xlu0 %v4019_v32, %s5072_s23  ;;  %s3139_s23 = smov 4  }
 0x3fe   :  { %v4109_v0 = vpop.permute.xlu1 %1754 }
 0x400   :  { %1744 = vrot.lane.b32.xlu0 %v4019_v32, %s5064_s0  ;;  %1530 = vrot.lane.b32.xlu1 %v4019_v32, %s3083_s10  ;;  %s5153_s0 = smov 112  }
 0x402   :  { %v4115_v3 = vpop.permute.xlu1 %1782 }
 0x404   :  { %1758 = vrot.lane.b32.xlu0 %v4019_v32, %s5073_s3  ;;  %1505 = vrot.lane.b32.xlu1 %v1497_v58, %s3108_s22  ;;  %s5139_s3 = smov 111  }
 0x406   :  { %v4124_v34 = vpop.permute.xlu1 %1818 }
 0x408   :  { %1772 = vrot.lane.b32.xlu0 %v4019_v32, %s5068_s14  ;;  %s5158_s14 = smov 90  }
 0x40a   :  { %v4128_v37 = vpop.permute.xlu1 %1852 }
 0x40c   :  { %1786 = vrot.lane.b32.xlu0 %v4019_v32, %s5074_s25  ;;  %s5146_s25 = smov 91  }
 0x40e   :  { %v4132_v31 = vpop.permute.xlu1 %1886 }
 0x410   :  { %1800 = vrot.lane.b32.xlu0 %v4019_v32, %s5069_s15  ;;  %s3142_s15 = smov 1  }
 0x412   :  { %v1543_v9 = vpop.permute.xlu1 %1542 }
 0x413   :  { %v4137_v10 = vsel %vm65_vm4, %v1541_v48, %v1543_v9 }
 0x414   :  { %1822 = vrot.lane.b32.xlu0 %v4019_v32, %s5075_s5 }
 0x416   :  { %v1557_v2 = vpop.permute.xlu1 %1556 }
 0x417   :  { %v4143_v6 = vsel %vm80_vm5, %v4017_v40, %v1557_v2 }
 0x418   :  { %1839 = vrot.lane.b32.xlu0 %v4019_v32, %s3102_s24 }
 0x41a   :  { %v1571_v13 = vpop.permute.xlu1 %1570 }
 0x41b   :  { %v4150_v17 = vsel %vm5078_vm8, %v1569_v5, %v1571_v13  ;;  %v4210_v5 = vld [vmem:[%s4930_s6] sm:$0xff]  ;;  %vm2460_vm8 = vcmask 588800  }
 0x41c   :  { %1856 = vrot.lane.b32.xlu0 %v4019_v32, %s3103_s12 }
 0x41e   :  { %v1591_v18 = vpop.permute.xlu1 %1590 }
 0x41f   :  { %v4156_v11 = vsel %vm5079_vm3, %v4027_v33, %v1591_v18  ;;  %vm5088_vm3 = vcmask 695296  }
 0x420   :  { %1873 = vrot.lane.b32.xlu0 %v4019_v32, %s3104_s13 }
 0x422   :  { %v1605_v22 = vpop.permute.xlu1 %1604 }
 0x423   :  { %v4163_v28 = vsel %vm5080_vm15, %v1603_v50, %v1605_v22  ;;  %v4214_v50 = vcombine.high %v4210_v5, %v4210_v5  ;;  %vm5089_vm15 = vcmask 490496  }
 0x424   :  { %1890 = vrot.lane.b32.xlu0 %v4019_v32, %s3105_s16 }
 0x425   :  { %2733 = vmatprep.mubr.msk.f32.mxu1 %vm2460_vm8, %v4214_v50  ;;  %2734 = vmatprep.mubr.msk.f32.mxu0 %vm2460_vm8, %v4214_v50 }
 0x426   :  { %v1619_v29 = vpop.permute.xlu1 %1618 }
 0x427   :  { %v4172_v38 = vsel %vm5082_vm12, %v4033_v39, %v1619_v29  ;;  %vm5092_vm12 = vcmask 556032  }
 0x428   :  { %1503 = vrot.lane.b32.xlu0 %v1496_v19, %s3108_s22  ;;  %s3138_s22 = smov 21  }
 0x42a   :  { %v1633_v14 = vpop.permute.xlu1 %1632 }
 0x42b   :  { %v4181_v16 = vsel %vm5083_vm9, %v1631_v52, %v1633_v14  ;;  %vm5093_vm9 = vcmask 1014784  }
 0x42e   :  { %v1647_v40 = vpop.permute.xlu1 %1646 }
 0x42f   :  { %v4185_v32 = vsel %vm5084_vm11, %v4039_v43, %v1647_v40 }
 0x432   :  { %v1667_v39 = vpop.permute.xlu1 %1666 }
 0x433   :  { %v4190_v59 = vsel %vm5085_vm6, %v1665_v8, %v1667_v39  ;;  %vm5096_vm6 = vcmask 883712  }
 0x436   :  { %v4192_v23 = vpop.permute.xlu1 %1680 }
 0x437   :  { %v4197_v41 = vsel %vm5086_vm10, %v4045_v49, %v4192_v23 }
 0x43a   :  { %v4201_v48 = vpop.permute.xlu1 %1694 }
 0x43b   :  { %v4205_v43 = vsel %vm5087_vm1, %v1693_v55, %v4201_v48  ;;  %vm5098_vm1 = vcmask 539648  }
 0x43e   :  { %v4216_v49 = vpop.permute.xlu1 %1708  ;;  %v1545_v52 = vpop.permute.xlu0 %1544 }
 0x43f   :  { %v4221_v8 = vsel %vm5088_vm3, %v4053_v47, %v4216_v49  ;;  %v4224_v55 = vsel %vm65_vm4, %v1543_v9, %v1545_v52  ;;  %1553 = vst.msk [vmem:[#allocation4 + $0x60] sm:$0xff] %vm5089_vm15, %v1545_v52  ;;  %vm5091_vm4 = vmmov %vm5089_vm15  ;;  %vm5099_vm3 = vcmask 875520  }
 0x440   :  { %vm5094_vm11 = vmmov %vm5091_vm4 }
 0x441   :  { %vm5097_vm10 = vmmov %vm5091_vm4 }
 0x442   :  { %v4233_v63 = vpop.permute.xlu1 %1722  ;;  %v1559_v58 = vpop.permute.xlu0 %1558  ;;  %vm5100_vm15 = vmmov %vm5091_vm4 }
 0x443   :  { %v4238_v47 = vsel %vm5090_vm13, %v4101_v62, %v4233_v63  ;;  %v4241_v9 = vsel %vm80_vm5, %v1557_v2, %v1559_v58  ;;  %1567 = vst.msk [vmem:[#allocation4 + $0x88] sm:$0xff] %vm5091_vm4, %v1559_v58  ;;  %vm5095_vm5 = vcmask 547840   ;;  %vm5101_vm13 = vcmask 531456  }
 0x444   :  { %vm5102_vm4 = vcmask 867328  }
 0x446   :  { %v4244_v26 = vpop.permute.xlu1 %1742  ;;  %v1573_v19 = vpop.permute.xlu0 %1572 }
 0x447   :  { %v4249_v52 = vsel %vm5092_vm12, %v4059_v61, %v4244_v26  ;;  %v4252_v57 = vsel %vm5093_vm9, %v1571_v13, %v1573_v19  ;;  %1581 = vst.msk [vmem:[#allocation4 + $0xb0] sm:$0xff] %vm5094_vm11, %v1573_v19  ;;  %vm5103_vm12 = vmmov %vm5097_vm10  ;;  %vm5104_vm9 = vcmask 523264   ;;  %vm5105_vm11 = vcmask 859136  }
 0x44a   :  { %v4257_v2 = vpop.permute.xlu1 %1756  ;;  %v1593_v46 = vpop.permute.xlu0 %1592 }
 0x44b   :  { %v4262_v58 = vsel %vm5095_vm5, %v4109_v0, %v4257_v2  ;;  %v4265_v60 = vsel %vm5096_vm6, %v1591_v18, %v1593_v46  ;;  %1601 = vst.msk [vmem:[#allocation4 + $0xd8] sm:$0xff] %vm5097_vm10, %v1593_v46  ;;  %vm5106_vm5 = vmmov %vm5097_vm10  ;;  %vm5107_vm6 = vcmask 392192   ;;  %vm5108_vm10 = vcmask 850944  }
 0x44e   :  { %v4268_v61 = vpop.permute.xlu1 %1770  ;;  %v1607_v13 = vpop.permute.xlu0 %1606 }
 0x44f   :  { %v4273_v19 = vsel %vm5098_vm1, %v4065_v45, %v4268_v61  ;;  %v4276_v62 = vsel %vm5099_vm3, %v1605_v22, %v1607_v13  ;;  %1615 = vst.msk [vmem:[#allocation4 + $0x100] sm:$0xff] %vm5100_vm15, %v1607_v13  ;;  %vm5109_vm1 = vmmov %vm5106_vm5  ;;  %vm5110_vm3 = vcmask 384000   ;;  %vm5111_vm15 = vcmask 719872  }
 0x452   :  { %v4281_v18 = vpop.permute.xlu1 %1784  ;;  %v1621_v42 = vpop.permute.xlu0 %1620 }
 0x453   :  { %v4286_v46 = vsel %vm5101_vm13, %v4115_v3, %v4281_v18  ;;  %v4289_v33 = vsel %vm5102_vm4, %v1619_v29, %v1621_v42  ;;  %1629 = vst.msk [vmem:[#allocation4 + $0x128] sm:$0xff] %vm5103_vm12, %v1621_v42  ;;  %vm5112_vm13 = vmmov %vm5109_vm1  ;;  %vm5113_vm4 = vcmask 375808   ;;  %vm5114_vm12 = vcmask 711680  }
 0x456   :  { %v4292_v45 = vpop.permute.xlu1 %1798  ;;  %v1635_v22 = vpop.permute.xlu0 %1634 }
 0x457   :  { %v4297_v13 = vsel %vm5104_vm9, %v4071_v51, %v4292_v45  ;;  %v4300_v0 = vsel %vm5105_vm11, %v1633_v14, %v1635_v22  ;;  %1643 = vst.msk [vmem:[#allocation4 + $0x150] sm:$0xff] %vm5106_vm5, %v1635_v22  ;;  %vm5115_vm9 = vmmov %vm5109_vm1  ;;  %vm5116_vm11 = vcmask 367616   ;;  %vm5117_vm5 = vcmask 703488  }
 0x45a   :  { %v4305_v29 = vpop.permute.xlu1 %1820  ;;  %v1649_v30 = vpop.permute.xlu0 %1648 }
 0x45b   :  { %v4310_v42 = vsel %vm5107_vm6, %v4124_v34, %v4305_v29  ;;  %v4313_v20 = vsel %vm5108_vm10, %v1647_v40, %v1649_v30  ;;  %1657 = vst.msk [vmem:[#allocation4 + $0x178] sm:$0xff] %vm5109_vm1, %v1649_v30  ;;  %vm5118_vm6 = vmmov %vm5109_vm1  ;;  %vm5119_vm10 = vcmask 359424   ;;  %vm5120_vm1 = vcmask 695296  }
 0x45e   :  { %v4316_v51 = vpop.permute.xlu1 %1837  ;;  %v1669_v14 = vpop.permute.xlu0 %1668 }
 0x45f   :  { %v4321_v22 = vsel %vm5110_vm3, %v4077_v53, %v4316_v51  ;;  %v4324_v3 = vsel %vm5111_vm15, %v1667_v39, %v1669_v14  ;;  %1677 = vst.msk [vmem:[#allocation4 + $0x1a0] sm:$0xff] %vm5112_vm13, %v1669_v14  ;;  %vm5121_vm3 = vmmov %vm5118_vm6  ;;  %vm1512_vm15 = vcmask 1048016   ;;  %vm5122_vm13 = vcmask 687104  }
 0x462   :  { %v4327_v34 = vpop.permute.xlu1 %1854  ;;  %v1683_v44 = vpop.permute.xlu0 %1682 }
 0x463   :  { %v4332_v30 = vsel %vm5113_vm4, %v4128_v37, %v4327_v34  ;;  %v4336_v40 = vsel %vm5114_vm12, %v4192_v23, %v1683_v44  ;;  %1691 = vst.msk [vmem:[#allocation4 + $0x1c8] sm:$0xff] %vm5115_vm9, %v1683_v44  ;;  %vm5123_vm4 = vmmov %vm5121_vm3  ;;  %vm5125_vm9 = vcmask 556032  }
 0x464   :  { %vm5124_vm12 = vmmov %vm5121_vm3 }
 0x466   :  { %v4339_v53 = vpop.permute.xlu1 %1871  ;;  %v1697_v39 = vpop.permute.xlu0 %1696 }
 0x467   :  { %v4344_v14 = vsel %vm5116_vm11, %v4083_v12, %v4339_v53  ;;  %v4348_v15 = vsel %vm5117_vm5, %v4201_v48, %v1697_v39  ;;  %1705 = vst.msk [vmem:[#allocation4 + $0x1f0] sm:$0xff] %vm5118_vm6, %v1697_v39  ;;  %vm5126_vm11 = vmmov %vm5121_vm3  ;;  %vm1920_vm5 = vcmask 1048032  }
 0x468   :  { %vm5128_vm6 = vmmov %vm5121_vm3 }
 0x46a   :  { %v4351_v37 = vpop.permute.xlu1 %1888  ;;  %v1711_v23 = vpop.permute.xlu0 %1710 }
 0x46b   :  { %v4356_v44 = vsel %vm5119_vm10, %v4132_v31, %v4351_v37  ;;  %v4360_v54 = vsel %vm5120_vm1, %v4216_v49, %v1711_v23  ;;  %1719 = vst.msk [vmem:[#allocation4 + $0x218] sm:$0xff] %vm5121_vm3, %v1711_v23  ;;  %vm5129_vm10 = vcmask 539648   ;;  %vm5130_vm1 = vmmov %vm5121_vm3  ;;  %vm5132_vm3 = vcmask 531456  }
 0x46e   :  { %v4363_v12 = vpop.permute.xlu1 %1501  ;;  %v1725_v48 = vpop.permute.xlu0 %1724 }
 0x46f   :  { %1513 = vst.msk [vmem:[#allocation3 + $0x18] sm:$0xff] %vm1512_vm15, %v4363_v12  ;;  %v4368_v39 = vsel %vm5122_vm13, %v4233_v63, %v1725_v48  ;;  %vm5133_vm15 = vmmov %vm5130_vm1  ;;  %vm5135_vm13 = vcmask 523264  }
 0x470   :  { %1733 = vst.msk [vmem:[#allocation4 + $0x240] sm:$0xff] %vm5123_vm4, %v1725_v48  ;;  %v2875_v48 = vpack.c.bf16 %v4093_v25, %v3939_v24  ;;  %v5131_v24 = vpack.c.bf16 %v4143_v6, %v4137_v10  ;;  %v5134_v10 = vpack.c.bf16 %v4156_v11, %v4150_v17  ;;  %vm5136_vm4 = vmmov %vm5130_vm1  ;;  %v5137_v17 = vpack.c.bf16 %v4172_v38, %v4163_v28 }
 0x471   :  { %v5140_v28 = vpack.c.bf16 %v4185_v32, %v4181_v16  ;;  %v5142_v16 = vpack.c.bf16 %v4197_v41, %v4190_v59 }
 0x472   :  { %v1531_v31 = vpop.permute.xlu1 %1530  ;;  %v1745_v35 = vpop.permute.xlu0 %1744 }
 0x473   :  { %v1533_v49 = vsel %vm49_vm2, %v4089_v56, %v1531_v31  ;;  %1539 = vst.msk [vmem:[#allocation4 + $0x38] sm:$0xff] %vm5124_vm12, %v1531_v31  ;;  %v4376_v23 = vsel %vm5125_vm9, %v4244_v26, %v1745_v35  ;;  %vm5127_vm2 = vcmask 547840   ;;  %vm5138_vm12 = vcmask 392192  }
 0x474   :  { %1753 = vst.msk [vmem:[#allocation4 + $0x268] sm:$0xff] %vm5126_vm11, %v1745_v35  ;;  %v2873_v36 = vpack.c.bf16 %v1533_v49, %v3931_v21  ;;  %vm5141_vm9 = vcmask 384000   ;;  %vm5143_vm11 = vcmask 375808  }
 0x476   :  { %v4380_v63 = vld [vmem:[#allocation3 + $0x18] sm:$0xff]  ;;  %v1759_v27 = vpop.permute.xlu0 %1758  ;;  %2874 = vmatprep.subr.bf16.mxu1 %v2873_v36  ;;  %v2877_v36 = vpack.c.bf16 %v4241_v9, %v4224_v55 }
 0x477   :  { %2129 = vst.msk [vmem:[#allocation4 + $0x240] sm:$0xff] %vm1920_vm5, %v4380_v63  ;;  %v4388_v56 = vsel %vm5127_vm2, %v4257_v2, %v1759_v27  ;;  %1969 = vrot.lane.b32.xlu0 %v4380_v63, %s3112_s27  ;;  %1909 = vrot.lane.b32.xlu1 %v4380_v63, %s3105_s16  ;;  %vm5145_vm2 = vcmask 367616  }
 0x478   :  { %1767 = vst.msk [vmem:[#allocation4 + $0x290] sm:$0xff] %vm5128_vm6, %v1759_v27  ;;  %2876 = vmatpush1.bf16.msra.mxu1 %v2875_v48  ;;  %v2881_v27 = vpack.c.bf16 %v4265_v60, %v4252_v57  ;;  %v2885_v57 = vpack.c.bf16 %v4289_v33, %v4276_v62  ;;  %v2889_v33 = vpack.c.bf16 %v4313_v20, %v4300_v0  ;;  %vm5148_vm6 = vcmask 359424  }
 0x479   :  { %2878 = vmatprep.subr.bf16.mxu1 %v2877_v36  ;;  %v2893_v20 = vpack.c.bf16 %v4336_v40, %v4324_v3  ;;  %v2897_v62 = vpack.c.bf16 %v4360_v54, %v4348_v15  ;;  %v2901_v54 = vpack.c.bf16 %v4376_v23, %v4368_v39  ;;  %v5144_v15 = vpack.c.bf16 %v4221_v8, %v4205_v43 }
 0x47a   :  { %v1773_v35 = vpop.permute.xlu0 %1772  ;;  %v5147_v43 = vpack.c.bf16 %v4249_v52, %v4238_v47  ;;  %v1506_v47 = vpop.permute.xlu1 %1505  ;;  %v2919_v40 = vpack.c.bf16 %v4344_v14, %v4332_v30 }
 0x47b   :  { %v1775_v21 = vsel %vm5129_vm10, %v4268_v61, %v1773_v35  ;;  %1781 = vst.msk [vmem:[#allocation4 + $0x2b8] sm:$0xff] %vm5130_vm1, %v1773_v35  ;;  %1989 = vrot.lane.b32.xlu0 %v4380_v63, %s3133_s11  ;;  %1925 = vrot.lane.b32.xlu1 %v4380_v63, %s3134_s18  ;;  %vm1515_vm10 = vcmask 965632   ;;  %vm5150_vm1 = vcmask 474112  }
 0x47c   :  { %2880 = vmatpush1.bf16.msra.mxu1 %v5131_v24  ;;  %v2905_v61 = vpack.c.bf16 %v1775_v21, %v4388_v56 }
 0x47d   :  { %2882 = vmatprep.subr.bf16.mxu1 %v2881_v27 }
 0x47e   :  { %v1787_v25 = vpop.permute.xlu0 %1786 }
 0x47f   :  { %v1789_v55 = vsel %vm5132_vm3, %v4281_v18, %v1787_v25  ;;  %1795 = vst.msk [vmem:[#allocation4 + $0x2e0] sm:$0xff] %vm5133_vm15, %v1787_v25  ;;  %2004 = vrot.lane.b32.xlu0 %v4380_v63, %s3135_s19  ;;  %1940 = vrot.lane.b32.xlu1 %v4380_v63, %s3132_s1  ;;  %vm5151_vm3 = vmmov %vm5150_vm1  ;;  %vm1923_vm15 = vcmask 982016   ;;  %v3080_v25 = vld [vmem:[#allocation3 + $0x30] sm:$0xff] }
 0x480   :  { %2884 = vmatpush1.bf16.msra.mxu1 %v5134_v10 }
 0x481   :  { %2886 = vmatprep.subr.bf16.mxu1 %v2885_v57  ;;  %v2452_v57 = vld [vmem:[%s4931_s7] sm:$0xf] }
 0x482   :  { %v1801_v6 = vpop.permute.xlu0 %1800 }
 0x483   :  { %v1803_v60 = vsel %vm5135_vm13, %v4292_v45, %v1801_v6  ;;  %1809 = vst.msk [vmem:[#allocation4 + $0x308] sm:$0xff] %vm5136_vm4, %v1801_v6  ;;  %2019 = vrot.lane.b32.xlu0 %v4380_v63, %s3136_s20  ;;  %1954 = vrot.lane.b32.xlu1 %v4380_v63, %s3137_s21  ;;  %v5149_v45 = vpack.c.bf16 %v4273_v19, %v4262_v58  ;;  %vm5160_vm13 = vmmov %vm5136_vm4 }
 0x484   :  { %2888 = vmatpush1.bf16.msra.mxu1 %v5137_v17  ;;  %v2909_v18 = vpack.c.bf16 %v1803_v60, %v1789_v55  ;;  %v5152_v19 = vpack.c.bf16 %v4297_v13, %v4286_v46  ;;  %v5156_v46 = vmov 0.0|0.0   ;;  %vm5161_vm4 = vmmov %vm5145_vm2 }
 0x485   :  { %2890 = vmatprep.subr.bf16.mxu1 %v2889_v33 }
 0x486   :  { %v4433_v11 = vpop.permute.xlu0 %1822 }
 0x487   :  { %v1827_v9 = vsel %vm5138_vm12, %v4305_v29, %v4433_v11  ;;  %2034 = vrot.lane.b32.xlu0 %v4380_v63, %s3138_s22  ;;  %2158 = vrot.lane.b32.xlu1 %v4380_v63, %s5139_s3  ;;  %vm5162_vm12 = vmmov %vm5160_vm13 }
 0x488   :  { %2892 = vmatpush1.bf16.msra.mxu1 %v5140_v28 }
 0x489   :  { %2894 = vmatprep.subr.bf16.mxu1 %v2893_v20 }
 0x48a   :  { %v4447_v38 = vpop.permute.xlu0 %1839 }
 0x48b   :  { %v1844_v26 = vsel %vm5141_vm9, %v4316_v51, %v4447_v38  ;;  %2049 = vrot.lane.b32.xlu0 %v4380_v63, %s5021_s2  ;;  %2212 = vrot.lane.b32.xlu1 %v4380_v63, %s3086_s17  ;;  %v2915_v51 = vpack.c.bf16 %v4321_v22, %v4310_v42 }
 0x48c   :  { %2896 = vmatpush1.bf16.msra.mxu1 %v5142_v16  ;;  %v2913_v58 = vpack.c.bf16 %v1844_v26, %v1827_v9 }
 0x48d   :  { %2898 = vmatprep.subr.bf16.mxu1 %v2897_v62 }
 0x48e   :  { %v4461_v32 = vpop.permute.xlu0 %1856 }
 0x48f   :  { %v1861_v2 = vsel %vm5143_vm11, %v4327_v34, %v4461_v32  ;;  %2069 = vrot.lane.b32.xlu0 %v4380_v63, %s3139_s23  ;;  %1841 = vrot.lane.b32.xlu1 %v4380_v63, %s3102_s24  ;;  %s3141_s24 = smov 2   ;;  %vm5163_vm11 = vcmask 392192  }
 0x490   :  { %2900 = vmatpush1.bf16.msra.mxu1 %v5144_v15 }
 0x491   :  { %2902 = vmatprep.subr.bf16.mxu1 %v2901_v54 }
 0x492   :  { %v4475_v59 = vpop.permute.xlu0 %1873 }
 0x493   :  { %v1878_v41 = vsel %vm5145_vm2, %v4339_v53, %v4475_v59  ;;  %2084 = vrot.lane.b32.xlu0 %v4380_v63, %s3140_s30  ;;  %2255 = vrot.lane.b32.xlu1 %v4380_v63, %s5146_s25  ;;  %vm5164_vm2 = vmmov %vm5162_vm12 }
 0x494   :  { %2904 = vmatpush1.bf16.msra.mxu1 %v5147_v43  ;;  %v2917_v34 = vpack.c.bf16 %v1878_v41, %v1861_v2 }
 0x495   :  { %2906 = vmatprep.subr.bf16.mxu1 %v2905_v61 }
 0x496   :  { %v4488_v8 = vpop.permute.xlu0 %1890 }
 0x497   :  { %v1895_v0 = vsel %vm5148_vm6, %v4351_v37, %v4488_v8  ;;  %2099 = vrot.lane.b32.xlu0 %v4380_v63, %s3141_s24  ;;  %1875 = vrot.lane.b32.xlu1 %v4380_v63, %s3104_s13  ;;  %s3143_s13 = smov 89   ;;  %vm2010_vm6 = vcmask 187392  }
 0x498   :  { %2908 = vmatpush1.bf16.msra.mxu1 %v5149_v45 }
 0x499   :  { %2910 = vmatprep.subr.bf16.mxu1 %v2909_v18 }
 0x49a   :  { %v1504_v52 = vpop.permute.xlu0 %1503 }
 0x49b   :  { %v4502_v3 = vsel %vm5150_vm1, %v4363_v12, %v1504_v52  ;;  %v1508_v29 = vsel %vm5151_vm3, %v1504_v52, %v1506_v47  ;;  %2114 = vrot.lane.b32.xlu0 %v4380_v63, %s3142_s15  ;;  %2291 = vrot.lane.b32.xlu1 %v4380_v63, %s3143_s13  ;;  %vm5166_vm1 = vmmov %vm5164_vm2  ;;  %vm2025_vm3 = vcmask 179200  }
 0x49c   :  { %1516 = vst.msk [vmem:[#allocation3 + $0x28] sm:$0xff] %vm1515_vm10, %v1508_v29  ;;  %2912 = vmatpush1.bf16.msra.mxu1 %v5152_v19  ;;  %vm5165_vm10 = vcmask 375808  }
 0x49d   :  { %2914 = vmatprep.subr.bf16.mxu1 %v2913_v58 }
 0x49f   :  { %2140 = vrot.lane.b32.xlu0 %v4380_v63, %s5153_s0 }
 0x4a0   :  { %2916 = vmatpush1.bf16.msra.mxu1 %v2915_v51 }
 0x4a1   :  { %2918 = vmatprep.subr.bf16.mxu1 %v2917_v34 }
 0x4a3   :  { %2176 = vrot.lane.b32.xlu0 %v4380_v63, %s5154_s28  ;;  %v4520_v53 = vld [vmem:[#allocation3 + $0x28] sm:$0xff] }
 0x4a4   :  { %1929 = vrot.lane.b32.xlu1 %v4520_v53, %s3134_s18  ;;  %2920 = vmatpush1.bf16.msra.mxu1 %v2919_v40  ;;  %2131 = vst.msk [vmem:[#allocation4 + $0x250] sm:$0xff] %vm1923_vm15, %v4520_v53 }
 0x4a5   :  { %2511 = vmatprep.subr.mxu1 %v1895_v0 }
 0x4a7   :  { %2194 = vrot.lane.b32.xlu0 %v4380_v63, %s5155_s29 }
 0x4a8   :  { %1971 = vrot.lane.b32.xlu1 %v4502_v3, %s3112_s27  ;;  %2512 = vmatpush1.msra.mxu1 %v4356_v44 }
 0x4a9   :  { %2528 = vmatmul.mubr.f32.vlgmr.msra.gmra.mrb[6].mxu1 %v4210_v5  ;;  %2969 = vmatprep.subr.bf16.mxu1 %v5156_v46 }
 0x4aa   :  { %2735 = vmatprep.mubr.msk.f32.mxu1 %vm2460_vm8, %v4214_v50  ;;  %vm5159_vm8 = vmmov %vm5141_vm9  ;;  %vm1995_vm9 = vcmask 195584  }
 0x4ab   :  { %1824 = vrot.lane.b32.xlu0 %v4380_v63, %s5075_s5 }
 0x4ac   :  { %1991 = vrot.lane.b32.xlu1 %v4502_v3, %s3133_s11 }
 0x4af   :  { %2237 = vrot.lane.b32.xlu0 %v4380_v63, %s5157_s4 }
 0x4b0   :  { %1958 = vrot.lane.b32.xlu1 %v4520_v53, %s3137_s21 }
 0x4b3   :  { %1858 = vrot.lane.b32.xlu0 %v4380_v63, %s3103_s12 }
 0x4b4   :  { %2006 = vrot.lane.b32.xlu1 %v4502_v3, %s3135_s19 }
 0x4b7   :  { %2273 = vrot.lane.b32.xlu0 %v4380_v63, %s5158_s14 }
 0x4b8   :  { %2021 = vrot.lane.b32.xlu1 %v4502_v3, %s3136_s20 }
 0x4bb   :  { %1892 = vrot.lane.b32.xlu0 %v4380_v63, %s3105_s16 }
 0x4bc   :  { %1993 = vrot.lane.b32.xlu1 %v4520_v53, %s3133_s11 }
 0x4bf   :  { %1911 = vrot.lane.b32.xlu0 %v4502_v3, %s3105_s16 }
 0x4c0   :  { %2036 = vrot.lane.b32.xlu1 %v4502_v3, %s3138_s22 }
 0x4c3   :  { %1927 = vrot.lane.b32.xlu0 %v4502_v3, %s3134_s18 }
 0x4c4   :  { %2051 = vrot.lane.b32.xlu1 %v4502_v3, %s5021_s2 }
 0x4c7   :  { %1942 = vrot.lane.b32.xlu0 %v4502_v3, %s3132_s1 }
 0x4c8   :  { %2023 = vrot.lane.b32.xlu1 %v4520_v53, %s3136_s20 }
 0x4cb   :  { %1956 = vrot.lane.b32.xlu0 %v4502_v3, %s3137_s21 }
 0x4cc   :  { %2071 = vrot.lane.b32.xlu1 %v4502_v3, %s3139_s23 }
 0x4cf   :  { %1913 = vrot.lane.b32.xlu0 %v4520_v53, %s3105_s16 }
 0x4d0   :  { %2086 = vrot.lane.b32.xlu1 %v4502_v3, %s3140_s30 }
 0x4d3   :  { %1944 = vrot.lane.b32.xlu0 %v4520_v53, %s3132_s1 }
 0x4d4   :  { %2053 = vrot.lane.b32.xlu1 %v4520_v53, %s5021_s2 }
 0x4d7   :  { %1973 = vrot.lane.b32.xlu0 %v4520_v53, %s3112_s27 }
 0x4d8   :  { %2101 = vrot.lane.b32.xlu1 %v4502_v3, %s3141_s24 }
 0x4db   :  { %2008 = vrot.lane.b32.xlu0 %v4520_v53, %s3135_s19 }
 0x4dc   :  { %2116 = vrot.lane.b32.xlu1 %v4502_v3, %s3142_s15 }
 0x4df   :  { %2038 = vrot.lane.b32.xlu0 %v4520_v53, %s3138_s22 }
 0x4e0   :  { %2088 = vrot.lane.b32.xlu1 %v4520_v53, %s3140_s30 }
 0x4e3   :  { %2073 = vrot.lane.b32.xlu0 %v4520_v53, %s3139_s23 }
 0x4e4   :  { %2144 = vrot.lane.b32.xlu1 %v4520_v53, %s5153_s0 }
 0x4e7   :  { %2142 = vrot.lane.b32.xlu0 %v4502_v3, %s5153_s0 }
 0x4e8   :  { %2103 = vrot.lane.b32.xlu1 %v4520_v53, %s3141_s24 }
 0x4e9   :  { %v4599_v5 = vpop.permute.xlu1 %1909  ;;  %v4601_v50 = vpop.permute.xlu0 %1969 }
 0x4ea   :  { %1921 = vst.msk [vmem:[#allocation4 + $0x10] sm:$0xff] %vm1920_vm5, %v4599_v5  ;;  %1980 = vst.msk [vmem:[#allocation4 + $0xb0] sm:$0xff] %vm1920_vm5, %v4601_v50 }
 0x4eb   :  { %2118 = vrot.lane.b32.xlu0 %v4520_v53, %s3142_s15 }
 0x4ec   :  { %2160 = vrot.lane.b32.xlu1 %v4502_v3, %s5139_s3 }
 0x4ed   :  { %v4611_v13 = vpop.permute.xlu1 %1925  ;;  %v4613_v42 = vpop.permute.xlu0 %1989 }
 0x4ee   :  { %1937 = vst.msk [vmem:[#allocation4 + $0x38] sm:$0xff] %vm1920_vm5, %v4611_v13  ;;  %2001 = vst.msk [vmem:[#allocation4 + $0xd8] sm:$0xff] %vm1920_vm5, %v4613_v42 }
 0x4ef   :  { %2162 = vrot.lane.b32.xlu0 %v4520_v53, %s5139_s3 }
 0x4f0   :  { %2178 = vrot.lane.b32.xlu1 %v4502_v3, %s5154_s28 }
 0x4f1   :  { %v4623_v22 = vpop.permute.xlu1 %1940  ;;  %v4625_v30 = vpop.permute.xlu0 %2004 }
 0x4f2   :  { %1951 = vst.msk [vmem:[#allocation4 + $0x60] sm:$0xff] %vm1920_vm5, %v4623_v22  ;;  %2016 = vst.msk [vmem:[#allocation4 + $0x100] sm:$0xff] %vm1920_vm5, %v4625_v30 }
 0x4f3   :  { %2180 = vrot.lane.b32.xlu0 %v4520_v53, %s5154_s28 }
 0x4f4   :  { %2198 = vrot.lane.b32.xlu1 %v4520_v53, %s5155_s29 }
 0x4f5   :  { %v4635_v14 = vpop.permute.xlu1 %1954  ;;  %v4637_v37 = vpop.permute.xlu0 %2019  ;;  %v2334_v29 = vld [vmem:[#allocation4 + $0x38] sm:$0xff] }
 0x4f6   :  { %1966 = vst.msk [vmem:[#allocation4 + $0x88] sm:$0xff] %vm1920_vm5, %v4635_v14  ;;  %2031 = vst.msk [vmem:[#allocation4 + $0x128] sm:$0xff] %vm1920_vm5, %v4637_v37 }
 0x4f7   :  { %2196 = vrot.lane.b32.xlu0 %v4502_v3, %s5155_s29 }
 0x4f8   :  { %2216 = vrot.lane.b32.xlu1 %v4520_v53, %s3086_s17 }
 0x4f9   :  { %v4647_v44 = vpop.permute.xlu1 %2158  ;;  %v4649_v12 = vpop.permute.xlu0 %2034 }
 0x4fa   :  { %2046 = vst.msk [vmem:[#allocation4 + $0x150] sm:$0xff] %vm1920_vm5, %v4649_v12 }
 0x4fb   :  { %2214 = vrot.lane.b32.xlu0 %v4502_v3, %s3086_s17 }
 0x4fc   :  { %2241 = vrot.lane.b32.xlu1 %v4520_v53, %s5157_s4 }
 0x4fd   :  { %v4657_v39 = vpop.permute.xlu1 %2212  ;;  %v4659_v31 = vpop.permute.xlu0 %2049 }
 0x4fe   :  { %2060 = vst.msk [vmem:[#allocation4 + $0x178] sm:$0xff] %vm1920_vm5, %v4659_v31 }
 0x4ff   :  { %2239 = vrot.lane.b32.xlu0 %v4502_v3, %s5157_s4 }
 0x500   :  { %2259 = vrot.lane.b32.xlu1 %v4520_v53, %s5146_s25 }
 0x501   :  { %v1842_v49 = vpop.permute.xlu1 %1841  ;;  %v4667_v23 = vpop.permute.xlu0 %2069 }
 0x502   :  { %v1845_v48 = vsel %vm5159_vm8, %v4447_v38, %v1842_v49  ;;  %2081 = vst.msk [vmem:[#allocation4 + $0x1a0] sm:$0xff] %vm1920_vm5, %v4667_v23  ;;  %vm5167_vm8 = vcmask 359424  }
 0x503   :  { %1851 = vst.msk [vmem:[#allocation4 + $0x358] sm:$0xff] %vm5160_vm13, %v1845_v48  ;;  %2257 = vrot.lane.b32.xlu0 %v4502_v3, %s5146_s25  ;;  %vm5168_vm13 = vmmov %vm5166_vm1 }
 0x504   :  { %2277 = vrot.lane.b32.xlu1 %v4520_v53, %s5158_s14 }
 0x505   :  { %v4678_v56 = vpop.permute.xlu1 %2255  ;;  %v4680_v36 = vpop.permute.xlu0 %2084 }
 0x506   :  { %2096 = vst.msk [vmem:[#allocation4 + $0x1c8] sm:$0xff] %vm1920_vm5, %v4680_v36 }
 0x507   :  { %2275 = vrot.lane.b32.xlu0 %v4502_v3, %s5158_s14 }
 0x508   :  { %2295 = vrot.lane.b32.xlu1 %v4520_v53, %s3143_s13 }
 0x509   :  { %v1876_v35 = vpop.permute.xlu1 %1875  ;;  %v4688_v21 = vpop.permute.xlu0 %2099 }
 0x50a   :  { %v1879_v27 = vsel %vm5161_vm4, %v4475_v59, %v1876_v35  ;;  %2111 = vst.msk [vmem:[#allocation4 + $0x1f0] sm:$0xff] %vm1920_vm5, %v4688_v21  ;;  %vm2040_vm4 = vcmask 171008  }
 0x50b   :  { %1885 = vst.msk [vmem:[#allocation4 + $0x3a8] sm:$0xff] %vm5162_vm12, %v1879_v27  ;;  %2293 = vrot.lane.b32.xlu0 %v4502_v3, %s3143_s13  ;;  %vm5169_vm12 = vmmov %vm5167_vm8  ;;  %v2339_v27 = vld [vmem:[#allocation4 + $0x60] sm:$0xff] }
 0x50c   :  { %2311 = vrot.lane.b32.xlu1 %v4502_v3, %s5070_s26 }
 0x50d   :  { %v4699_v24 = vpop.permute.xlu0 %2114  ;;  %v4711_v10 = vpop.permute.xlu1 %2291 }
 0x50e   :  { %2126 = vst.msk [vmem:[#allocation4 + $0x218] sm:$0xff] %vm1920_vm5, %v4699_v24 }
 0x50f   :  { %2297 = vrot.lane.b32.xlu0 %v3080_v25, %s3143_s13 }
 0x510   :  { %2309 = vrot.lane.b32.xlu1 %v4380_v63, %s5070_s26 }
 0x511   :  { %v4706_v55 = vpop.permute.xlu0 %2140 }
 0x513   :  { %2313 = vrot.lane.b32.xlu0 %v4520_v53, %s5070_s26  ;;  %v2329_v53 = vld [vmem:[#allocation4 + $0x10] sm:$0xff] }
 0x514   :  { %2455 = vperm.xlu1 %3068, %v2452_v57  }
 0x515   :  { %v4715_v6 = vpop.permute.xlu0 %2176 }
 0x516   :  { %v1930_v60 = vpop.permute.xlu1 %1929 }
 0x517   :  { %2315 = vrot.lane.b32.xlu0 %v3080_v25, %s5070_s26 }
 0x519   :  { %v4718_v33 = vpop.permute.xlu0 %2194 }
 0x51a   :  { %v4720_v63 = vpop.permute.xlu1 %1971 }
 0x51b   :  { %v4725_v17 = vsel %vm547_vm7, %v4601_v50, %v4720_v63 }
 0x51d   :  { %v1825_v9 = vpop.permute.xlu0 %1824 }
 0x51e   :  { %v1828_v20 = vsel %vm5163_vm11, %v4433_v11, %v1825_v9  ;;  %v1992_v28 = vpop.permute.xlu1 %1991  ;;  %vm1931_vm11 = vcmask 351232   ;;  %v2354_v9 = vld [vmem:[#allocation4 + $0xd8] sm:$0xff] }
 0x51f   :  { %1834 = vst.msk [vmem:[#allocation4 + $0x330] sm:$0xff] %vm5164_vm2, %v1828_v20  ;;  %v4732_v38 = vsel %vm1995_vm9, %v4613_v42, %v1992_v28  ;;  %vm1960_vm2 = vcmask 334848  }
 0x521   :  { %v4734_v26 = vpop.permute.xlu0 %2237 }
 0x522   :  { %v1959_v62 = vpop.permute.xlu1 %1958 }
 0x525   :  { %v1859_v16 = vpop.permute.xlu0 %1858 }
 0x526   :  { %v1862_v2 = vsel %vm5165_vm10, %v4461_v32, %v1859_v16  ;;  %v4738_v54 = vpop.permute.xlu1 %2006  ;;  %vm2075_vm10 = vcmask 31744  }
 0x527   :  { %1868 = vst.msk [vmem:[#allocation4 + $0x380] sm:$0xff] %vm5166_vm1, %v1862_v2  ;;  %v4744_v11 = vsel %vm2010_vm6, %v4625_v30, %v4738_v54  ;;  %vm2090_vm1 = vcmask 23552  }
 0x529   :  { %v4746_v15 = vpop.permute.xlu0 %2273 }
 0x52a   :  { %v2022_v59 = vpop.permute.xlu1 %2021 }
 0x52b   :  { %v4750_v41 = vsel %vm2025_vm3, %v4637_v37, %v2022_v59 }
 0x52c   :  { %v2933_v2 = vpack.c.bf16 %v4750_v41, %v4744_v11 }
 0x52d   :  { %v1893_v61 = vpop.permute.xlu0 %1892 }
 0x52e   :  { %v1896_v32 = vsel %vm5167_vm8, %v4488_v8, %v1893_v61  ;;  %v1994_v43 = vpop.permute.xlu1 %1993 }
 0x52f   :  { %1902 = vst.msk [vmem:[#allocation4 + $0x3d0] sm:$0xff] %vm5168_vm13, %v1896_v32  ;;  %v1997_v0 = vsel %vm1995_vm9, %v1992_v28, %v1994_v43  ;;  %vm5170_vm9 = vcmask 162816   ;;  %v2349_v28 = vld [vmem:[#allocation4 + $0xb0] sm:$0xff]  ;;  %v2359_v32 = vld [vmem:[#allocation4 + $0x100] sm:$0xff]  ;;  %vm2105_vm13 = vcmask 15360  }
 0x530   :  { %2003 = vst.msk [vmem:[#allocation4 + $0xe8] sm:$0xff] %vm1923_vm15, %v1997_v0 }
 0x531   :  { %v1912_v18 = vpop.permute.xlu0 %1911 }
 0x532   :  { %v1915_v45 = vsel %vm5169_vm12, %v4599_v5, %v1912_v18  ;;  %v4759_v47 = vpop.permute.xlu1 %2036  ;;  %v2923_v5 = vpack.c.bf16 %v2334_v29, %v2329_v53  ;;  %vm2202_vm12 = vcmask 891904  }
 0x533   :  { %v4764_v52 = vsel %vm2040_vm4, %v4649_v12, %v4759_v47  ;;  %v2344_v12 = vld [vmem:[#allocation4 + $0x88] sm:$0xff] }
 0x534   :  { %v2927_v25 = vpack.c.bf16 %v2344_v12, %v2339_v27 }
 0x535   :  { %v1928_v8 = vpop.permute.xlu0 %1927 }
 0x536   :  { %v1932_v58 = vsel %vm1931_vm11, %v4611_v13, %v1928_v8  ;;  %v1933_v19 = vsel %vm1931_vm11, %v1928_v8, %v1930_v60  ;;  %v2052_v51 = vpop.permute.xlu1 %2051  ;;  %v2929_v60 = vpack.c.bf16 %v4732_v38, %v4725_v17  ;;  %v2364_v17 = vld [vmem:[#allocation4 + $0x128] sm:$0xff]  ;;  %vm5175_vm11 = vcmask 883712  }
 0x537   :  { %1939 = vst.msk [vmem:[#allocation4 + $0x48] sm:$0xff] %vm1923_vm15, %v1933_v19  ;;  %v2055_v34 = vsel %vm5170_vm9, %v4659_v31, %v2052_v51  ;;  %v2921_v40 = vpack.c.bf16 %v1932_v58, %v1915_v45  ;;  %v2369_v19 = vld [vmem:[#allocation4 + $0x150] sm:$0xff] }
 0x538   :  { %v2937_v0 = vpack.c.bf16 %v2055_v34, %v4764_v52 }
 0x539   :  { %v1943_v50 = vpop.permute.xlu0 %1942  ;;  %2922 = vmatprep.subr.bf16.mxu0 %v2921_v40 }
 0x53a   :  { %v1946_v42 = vsel %vm1470_vm14, %v4623_v22, %v1943_v50  ;;  %v2024_v30 = vpop.permute.xlu1 %2023  ;;  %2924 = vmatpush1.bf16.msra.mxu0 %v2923_v5 }
 0x53b   :  { %v2027_v37 = vsel %vm2025_vm3, %v2022_v59, %v2024_v30  ;;  %vm5171_vm3 = vmmov %vm5167_vm8  ;;  %v2379_v30 = vld [vmem:[#allocation4 + $0x1a0] sm:$0xff] }
 0x53c   :  { %2033 = vst.msk [vmem:[#allocation4 + $0x138] sm:$0xff] %vm1923_vm15, %v2027_v37  ;;  %vm5172_vm8 = vmmov %vm5170_vm9  ;;  %vm2245_vm9 = vcmask 752640  }
 0x53d   :  { %v1957_v13 = vpop.permute.xlu0 %1956 }
 0x53e   :  { %v1961_v31 = vsel %vm1960_vm2, %v4635_v14, %v1957_v13  ;;  %v1962_v49 = vsel %vm1960_vm2, %v1957_v13, %v1959_v62  ;;  %v4775_v48 = vpop.permute.xlu1 %2071  ;;  %v2931_v62 = vpack.c.bf16 %v2354_v9, %v2349_v28  ;;  %v2336_v8 = vld [vmem:[#allocation4 + $0x48] sm:$0xff]  ;;  %vm5176_vm2 = vmmov %vm5175_vm11 }
 0x53f   :  { %1968 = vst.msk [vmem:[#allocation4 + $0x98] sm:$0xff] %vm1923_vm15, %v1962_v49  ;;  %v2076_v22 = vsel %vm2075_vm10, %v4667_v23, %v4775_v48  ;;  %v2925_v35 = vpack.c.bf16 %v1961_v31, %v1946_v42  ;;  %v2394_v31 = vld [vmem:[#allocation4 + $0x218] sm:$0xff] }
 0x541   :  { %v1914_v57 = vpop.permute.xlu0 %1913  ;;  %2926 = vmatprep.subr.bf16.mxu0 %v2925_v35  ;;  %v2356_v35 = vld [vmem:[#allocation4 + $0xe8] sm:$0xff] }
 0x542   :  { %v1916_v14 = vsel %vm5171_vm3, %v1912_v18, %v1914_v57  ;;  %v4784_v20 = vpop.permute.xlu1 %2086  ;;  %2928 = vmatpush1.bf16.msra.mxu0 %v2927_v25  ;;  %v2374_v18 = vld [vmem:[#allocation4 + $0x178] sm:$0xff]  ;;  %v2389_v25 = vld [vmem:[#allocation4 + $0x1f0] sm:$0xff]  ;;  %vm2263_vm3 = vcmask 744448  }
 0x543   :  { %1924 = vst.msk [vmem:[#allocation4 + $0x20] sm:$0xff] %vm1923_vm15, %v1916_v14  ;;  %v2091_v23 = vsel %vm2090_vm1, %v4680_v36, %v4784_v20  ;;  %2930 = vmatprep.subr.bf16.mxu0 %v2929_v60  ;;  %v2935_v36 = vpack.c.bf16 %v2364_v17, %v2359_v32  ;;  %v2939_v52 = vpack.c.bf16 %v2374_v18, %v2369_v19 }
 0x544   :  { %v2941_v34 = vpack.c.bf16 %v2091_v23, %v2076_v22  ;;  %v2947_v57 = vpack.c.bf16 %v2394_v31, %v2389_v25  ;;  %v2366_v23 = vld [vmem:[#allocation4 + $0x138] sm:$0xff] }
 0x545   :  { %v1945_v16 = vpop.permute.xlu0 %1944 }
 0x546   :  { %v1947_v38 = vsel %vm1470_vm14, %v1943_v50, %v1945_v16  ;;  %v2054_v59 = vpop.permute.xlu1 %2053  ;;  %2932 = vmatpush1.bf16.msra.mxu0 %v2931_v62  ;;  %vm2120_vm14 = vcmask 7168   ;;  %v2346_v50 = vld [vmem:[#allocation4 + $0x98] sm:$0xff] }
 0x547   :  { %1953 = vst.msk [vmem:[#allocation4 + $0x70] sm:$0xff] %vm1923_vm15, %v1947_v38  ;;  %v2056_v61 = vsel %vm5172_vm8, %v2052_v51, %v2054_v59  ;;  %2934 = vmatprep.subr.bf16.mxu0 %v2933_v2  ;;  %vm2281_vm8 = vcmask 736256  }
 0x548   :  { %2062 = vst.msk [vmem:[#allocation4 + $0x188] sm:$0xff] %vm1923_vm15, %v2056_v61 }
 0x549   :  { %v1974_v43 = vpop.permute.xlu0 %1973 }
 0x54a   :  { %v1976_v11 = vsel %vm547_vm7, %v4720_v63, %v1974_v43  ;;  %v4799_v41 = vpop.permute.xlu1 %2101  ;;  %v2331_v45 = vld [vmem:[#allocation4 + $0x20] sm:$0xff]  ;;  %2936 = vmatpush1.bf16.msra.mxu0 %v2935_v36  ;;  %v2384_v63 = vld [vmem:[#allocation4 + $0x1c8] sm:$0xff]  ;;  %vm2148_vm7 = vcmask 916480  }
 0x54b   :  { %1982 = vst.msk [vmem:[#allocation4 + $0xc0] sm:$0xff] %vm1923_vm15, %v1976_v11  ;;  %v2106_v29 = vsel %vm2105_vm13, %v4688_v21, %v4799_v41  ;;  %v2970_v58 = vpack.c.bf16 %v2336_v8, %v2331_v45  ;;  %2938 = vmatprep.subr.bf16.mxu0 %v2937_v0  ;;  %v2943_v37 = vpack.c.bf16 %v2384_v63, %v2379_v30 }
 0x54d   :  { %2971 = vmatpush1.bf16.msra.mxu1 %v2970_v58  ;;  %v2009_v51 = vpop.permute.xlu0 %2008 }
 0x54e   :  { %v2012_v40 = vsel %vm2010_vm6, %v4738_v54, %v2009_v51  ;;  %v2117_v53 = vpop.permute.xlu1 %2116  ;;  %2972 = vmatprep.subr.bf16.mxu1 %v5156_v46  ;;  %v2341_v5 = vld [vmem:[#allocation4 + $0x70] sm:$0xff]  ;;  %2940 = vmatpush1.bf16.msra.mxu0 %v2939_v52  ;;  %vm2166_vm6 = vcmask 908288  }
 0x54f   :  { %2018 = vst.msk [vmem:[#allocation4 + $0x110] sm:$0xff] %vm1923_vm15, %v2012_v40  ;;  %v2121_v21 = vsel %vm2120_vm14, %v4699_v24, %v2117_v53  ;;  %v2973_v42 = vpack.c.bf16 %v2346_v50, %v2341_v5  ;;  %2942 = vmatprep.subr.bf16.mxu0 %v2941_v34  ;;  %v2376_v38 = vld [vmem:[#allocation4 + $0x188] sm:$0xff] }
 0x550   :  { %v2945_v13 = vpack.c.bf16 %v2121_v21, %v2106_v29  ;;  %v2399_v29 = vld [vmem:[#allocation4 + $0x240] sm:$0xff] }
 0x551   :  { %2974 = vmatpush1.bf16.msra.mxu1 %v2973_v42  ;;  %v2039_v12 = vpop.permute.xlu0 %2038 }
 0x552   :  { %v2042_v54 = vsel %vm2040_vm4, %v4759_v47, %v2039_v12  ;;  %v2089_v49 = vpop.permute.xlu1 %2088  ;;  %2975 = vmatprep.subr.bf16.mxu1 %v5156_v46  ;;  %v2351_v22 = vld [vmem:[#allocation4 + $0xc0] sm:$0xff]  ;;  %2944 = vmatpush1.bf16.msra.mxu0 %v2943_v37  ;;  %vm2184_vm4 = vcmask 900096   ;;  %v5174_v12 = vld [vmem:[#allocation5_spill] sm:$0xff] }
 0x553   :  { %2048 = vst.msk [vmem:[#allocation4 + $0x160] sm:$0xff] %vm1923_vm15, %v2042_v54  ;;  %v2092_v24 = vsel %vm2090_vm1, %v4784_v20, %v2089_v49  ;;  %v2976_v27 = vpack.c.bf16 %v2356_v35, %v2351_v22  ;;  %2946 = vmatprep.subr.bf16.mxu0 %v2945_v13  ;;  %v2401_v13 = vld [vmem:[#allocation4 + $0x250] sm:$0xff]  ;;  %vm5177_vm1 = vmmov %vm5176_vm2 }
 0x554   :  { %2098 = vst.msk [vmem:[#allocation4 + $0x1d8] sm:$0xff] %vm1923_vm15, %v2092_v24 }
 0x555   :  { %2977 = vmatpush1.bf16.msra.mxu1 %v2976_v27  ;;  %v2074_v47 = vpop.permute.xlu0 %2073 }
 0x556   :  { %v2077_v60 = vsel %vm2075_vm10, %v4775_v48, %v2074_v47  ;;  %v2145_v9 = vpop.permute.xlu1 %2144  ;;  %2978 = vmatprep.subr.bf16.mxu1 %v5156_v46  ;;  %v2361_v14 = vld [vmem:[#allocation4 + $0x110] sm:$0xff]  ;;  %2948 = vmatpush1.bf16.msra.mxu0 %v2947_v57 }
 0x557   :  { %2083 = vst.msk [vmem:[#allocation4 + $0x1b0] sm:$0xff] %vm1923_vm15, %v2077_v60  ;;  %v2151_v20 = vsel %vm2148_vm7, %v2145_v9, %v3911_v4  ;;  %v2979_v28 = vpack.c.bf16 %v2366_v23, %v2361_v14  ;;  %v5178_v60 = vld [vmem:[#allocation8_spill] sm:$0xff] }
 0x558   :  { %2157 = vst.msk [vmem:[#allocation4 + $0x278] sm:$0xff] %vm1923_vm15, %v2151_v20 }
 0x559   :  { %2980 = vmatpush1.bf16.msra.mxu1 %v2979_v28  ;;  %v2143_v62 = vpop.permute.xlu0 %2142 }
 0x55a   :  { %v2149_v16 = vsel %vm2148_vm7, %v4706_v55, %v2143_v62  ;;  %v2150_v48 = vsel %vm2148_vm7, %v2143_v62, %v2145_v9  ;;  %v2104_v2 = vpop.permute.xlu1 %2103  ;;  %2981 = vmatprep.subr.bf16.mxu1 %v5156_v46  ;;  %v2371_v17 = vld [vmem:[#allocation4 + $0x160] sm:$0xff] }
 0x55b   :  { %2155 = vst.msk [vmem:[#allocation4 + $0x268] sm:$0xff] %vm1920_vm5, %v2149_v16  ;;  %v2107_v4 = vsel %vm2105_vm13, %v4799_v41, %v2104_v2  ;;  %v2982_v59 = vpack.c.bf16 %v2376_v38, %v2371_v17  ;;  %v2949_v61 = vpack.c.bf16 %v2150_v48, %v4502_v3  ;;  %v2386_v0 = vld [vmem:[#allocation4 + $0x1d8] sm:$0xff]  ;;  %vm2299_vm13 = vcmask 728064  }
 0x55c   :  { %2113 = vst.msk [vmem:[#allocation4 + $0x200] sm:$0xff] %vm1923_vm15, %v2107_v4  ;;  %v5179_v16 = vld [vmem:[#allocation7_spill] sm:$0xff] }
 0x55d   :  { %2983 = vmatpush1.bf16.msra.mxu1 %v2982_v59  ;;  %v2119_v55 = vpop.permute.xlu0 %2118  ;;  %2950 = vmatprep.subr.bf16.mxu0 %v2949_v61 }
 0x55e   :  { %v2122_v32 = vsel %vm2120_vm14, %v2117_v53, %v2119_v55  ;;  %v2161_v36 = vpop.permute.xlu1 %2160  ;;  %2984 = vmatprep.subr.bf16.mxu1 %v5156_v46  ;;  %v2381_v43 = vld [vmem:[#allocation4 + $0x1b0] sm:$0xff]  ;;  %vm5181_vm14 = vcmask 719872  }
 0x55f   :  { %2128 = vst.msk [vmem:[#allocation4 + $0x228] sm:$0xff] %vm1923_vm15, %v2122_v32  ;;  %v2167_v18 = vsel %vm2166_vm6, %v4647_v44, %v2161_v36  ;;  %v2985_v11 = vpack.c.bf16 %v2386_v0, %v2381_v43  ;;  %v5173_v53 = vld [vmem:[#allocation6_spill] sm:$0xff]  ;;  %v2406_v21 = vld [vmem:[#allocation4 + $0x278] sm:$0xff]  ;;  %vm5182_vm7 = vmmov %vm5181_vm14 }
 0x560   :  { %2173 = vst.msk [vmem:[#allocation4 + $0x290] sm:$0xff] %vm1920_vm5, %v2167_v18  ;;  %v2991_v54 = vpack.c.bf16 %v2406_v21, %v2401_v13 }
 0x561   :  { %2986 = vmatpush1.bf16.msra.mxu1 %v2985_v11  ;;  %v2163_v3 = vpop.permute.xlu0 %2162 }
 0x562   :  { %v2168_v41 = vsel %vm2166_vm6, %v2161_v36, %v2163_v3  ;;  %v2169_v45 = vsel %vm2166_vm6, %v2163_v3, %v3915_v7  ;;  %v2179_v8 = vpop.permute.xlu1 %2178  ;;  %v2404_v58 = vld [vmem:[#allocation4 + $0x268] sm:$0xff]  ;;  %2987 = vmatprep.subr.bf16.mxu1 %v5156_v46  ;;  %vm5183_vm6 = vmmov %vm5182_vm7 }
 0x563   :  { %2175 = vst.msk [vmem:[#allocation4 + $0x2a0] sm:$0xff] %vm1923_vm15, %v2169_v45  ;;  %v2185_v44 = vsel %vm2184_vm4, %v4715_v6, %v2179_v8  ;;  %v2951_v19 = vpack.c.bf16 %v2404_v58, %v2399_v29  ;;  %v2391_v63 = vld [vmem:[#allocation4 + $0x200] sm:$0xff]  ;;  %v5180_v36 = vld [vmem:[#allocation9_spill] sm:$0xff] }
 0x564   :  { %2191 = vst.msk [vmem:[#allocation4 + $0x2b8] sm:$0xff] %vm1920_vm5, %v2185_v44 }
 0x565   :  { %v2181_v52 = vpop.permute.xlu0 %2180  ;;  %2952 = vmatpush1.bf16.msra.mxu0 %v2951_v19 }
 0x566   :  { %v2186_v51 = vsel %vm2184_vm4, %v2179_v8, %v2181_v52  ;;  %v2187_v7 = vsel %vm2184_vm4, %v2181_v52, %v3913_v1  ;;  %v2199_v34 = vpop.permute.xlu1 %2198  ;;  %v2396_v40 = vld [vmem:[#allocation4 + $0x228] sm:$0xff] }
 0x567   :  { %2193 = vst.msk [vmem:[#allocation4 + $0x2c8] sm:$0xff] %vm1923_vm15, %v2187_v7  ;;  %v2205_v5 = vsel %vm2202_vm12, %v2199_v34, %v5173_v53  ;;  %v2988_v6 = vpack.c.bf16 %v2396_v40, %v2391_v63  ;;  %v2953_v50 = vpack.c.bf16 %v2186_v51, %v2168_v41  ;;  %v2409_v49 = vld [vmem:[#allocation4 + $0x290] sm:$0xff] }
 0x568   :  { %2211 = vst.msk [vmem:[#allocation4 + $0x2f0] sm:$0xff] %vm1923_vm15, %v2205_v5 }
 0x569   :  { %2989 = vmatpush1.bf16.msra.mxu1 %v2988_v6  ;;  %v2197_v42 = vpop.permute.xlu0 %2196  ;;  %2954 = vmatprep.subr.bf16.mxu0 %v2953_v50 }
 0x56a   :  { %v2203_v30 = vsel %vm2202_vm12, %v4718_v33, %v2197_v42  ;;  %v2204_v1 = vsel %vm2202_vm12, %v2197_v42, %v2199_v34  ;;  %v2217_v37 = vpop.permute.xlu1 %2216  ;;  %2990 = vmatprep.subr.bf16.mxu1 %v5156_v46  ;;  %v2411_v57 = vld [vmem:[#allocation4 + $0x2a0] sm:$0xff]  ;;  %vm2703_vm12 = vcmask 1010688  }
 0x56b   :  { %2209 = vst.msk [vmem:[#allocation4 + $0x2e0] sm:$0xff] %vm1920_vm5, %v2203_v30  ;;  %v2222_v31 = vsel %vm5175_vm11, %v2217_v37, %v5174_v12  ;;  %v2414_v22 = vld [vmem:[#allocation4 + $0x2b8] sm:$0xff] }
 0x56c   :  { %2228 = vst.msk [vmem:[#allocation4 + $0x318] sm:$0xff] %vm1923_vm15, %v2222_v31  ;;  %v2955_v35 = vpack.c.bf16 %v2414_v22, %v2409_v49  ;;  %v3081_v49 = vld [vmem:[%s4930_s6] sm:$0xff]  ;;  %v5184_v22 = vmov 0.0  }
 0x56d   :  { %2992 = vmatpush1.bf16.msra.mxu1 %v2991_v54  ;;  %v2215_v33 = vpop.permute.xlu0 %2214 }
 0x56e   :  { %v2220_v24 = vsel %vm5176_vm2, %v4657_v39, %v2215_v33  ;;  %v2221_v27 = vsel %vm5177_vm1, %v2215_v33, %v2217_v37  ;;  %v2242_v25 = vpop.permute.xlu1 %2241  ;;  %2993 = vmatprep.subr.bf16.mxu1 %v5156_v46  ;;  %v2416_v47 = vld [vmem:[#allocation4 + $0x2c8] sm:$0xff]  ;;  %2956 = vmatpush1.bf16.msra.mxu0 %v2955_v35 }
 0x56f   :  { %2226 = vst.msk [vmem:[#allocation4 + $0x308] sm:$0xff] %vm1920_vm5, %v2220_v24  ;;  %v2248_v9 = vsel %vm2245_vm9, %v2242_v25, %v5178_v60  ;;  %v2994_v14 = vpack.c.bf16 %v2416_v47, %v2411_v57  ;;  %v2957_v23 = vpack.c.bf16 %v2221_v27, %v2204_v1  ;;  %v2421_v2 = vld [vmem:[#allocation4 + $0x2f0] sm:$0xff] }
 0x570   :  { %2254 = vst.msk [vmem:[#allocation4 + $0x340] sm:$0xff] %vm1923_vm15, %v2248_v9 }
 0x571   :  { %2995 = vmatpush1.bf16.msra.mxu1 %v2994_v14  ;;  %v2240_v39 = vpop.permute.xlu0 %2239  ;;  %2958 = vmatprep.subr.bf16.mxu0 %v2957_v23 }
 0x572   :  { %v2246_v20 = vsel %vm2245_vm9, %v4734_v26, %v2240_v39  ;;  %v2247_v28 = vsel %vm2245_vm9, %v2240_v39, %v2242_v25  ;;  %v2260_v62 = vpop.permute.xlu1 %2259  ;;  %2996 = vmatprep.subr.bf16.mxu1 %v5156_v46  ;;  %v2419_v55 = vld [vmem:[#allocation4 + $0x2e0] sm:$0xff] }
 0x573   :  { %2252 = vst.msk [vmem:[#allocation4 + $0x330] sm:$0xff] %vm1920_vm5, %v2246_v20  ;;  %v2266_v48 = vsel %vm2263_vm3, %v2260_v62, %v5179_v16  ;;  %v2426_v17 = vld [vmem:[#allocation4 + $0x318] sm:$0xff] }
 0x574   :  { %2272 = vst.msk [vmem:[#allocation4 + $0x368] sm:$0xff] %vm1923_vm15, %v2266_v48  ;;  %v2997_v38 = vpack.c.bf16 %v2426_v17, %v2421_v2 }
 0x575   :  { %v2258_v4 = vpop.permute.xlu0 %2257 }
 0x576   :  { %v2264_v26 = vsel %vm2263_vm3, %v4678_v56, %v2258_v4  ;;  %v2265_v59 = vsel %vm2263_vm3, %v2258_v4, %v2260_v62  ;;  %v2278_v61 = vpop.permute.xlu1 %2277  ;;  %2998 = vmatpush1.bf16.msra.mxu1 %v2997_v38  ;;  %v2424_v32 = vld [vmem:[#allocation4 + $0x308] sm:$0xff] }
 0x577   :  { %2270 = vst.msk [vmem:[#allocation4 + $0x358] sm:$0xff] %vm1920_vm5, %v2264_v26  ;;  %v2284_v43 = vsel %vm2281_vm8, %v2278_v61, %v5180_v36  ;;  %v2959_v0 = vpack.c.bf16 %v2424_v32, %v2419_v55  ;;  %2999 = vmatprep.subr.bf16.mxu1 %v5156_v46  ;;  %v2961_v18 = vpack.c.bf16 %v2265_v59, %v2247_v28  ;;  %v2431_v45 = vld [vmem:[#allocation4 + $0x340] sm:$0xff] }
 0x578   :  { %2290 = vst.msk [vmem:[#allocation4 + $0x390] sm:$0xff] %vm1923_vm15, %v2284_v43 }
 0x579   :  { %v2276_v11 = vpop.permute.xlu0 %2275  ;;  %2960 = vmatpush1.bf16.msra.mxu0 %v2959_v0 }
 0x57a   :  { %v2282_v56 = vsel %vm2281_vm8, %v4746_v15, %v2276_v11  ;;  %v2283_v3 = vsel %vm2281_vm8, %v2276_v11, %v2278_v61  ;;  %v2296_v41 = vpop.permute.xlu1 %2295  ;;  %2962 = vmatprep.subr.bf16.mxu0 %v2961_v18  ;;  %v2429_v15 = vld [vmem:[#allocation4 + $0x330] sm:$0xff] }
 0x57b   :  { %2288 = vst.msk [vmem:[#allocation4 + $0x380] sm:$0xff] %vm1920_vm5, %v2282_v56  ;;  %v2436_v8 = vld [vmem:[#allocation4 + $0x368] sm:$0xff] }
 0x57c   :  { %v3000_v29 = vpack.c.bf16 %v2436_v8, %v2431_v45  ;;  %v2529_v58 = vpop.f32.mrb[6].mxu1 }
 0x57d   :  { %v2294_v44 = vpop.permute.xlu0 %2293  ;;  %v2531_v19 = vpop.f32.mrb[7].mxu1 }
 0x57e   :  { %v2300_v52 = vsel %vm2299_vm13, %v4711_v10, %v2294_v44  ;;  %v2301_v51 = vsel %vm2299_vm13, %v2294_v44, %v2296_v41  ;;  %v2312_v7 = vpop.permute.xlu1 %2311  ;;  %3001 = vmatpush1.bf16.msra.mxu1 %v3000_v29  ;;  %v2434_v34 = vld [vmem:[#allocation4 + $0x358] sm:$0xff] }
 0x57f   :  { %2306 = vst.msk [vmem:[#allocation4 + $0x3a8] sm:$0xff] %vm1920_vm5, %v2300_v52  ;;  %v2963_v63 = vpack.c.bf16 %v2434_v34, %v2429_v15  ;;  %v2965_v40 = vpack.c.bf16 %v2301_v51, %v2283_v3  ;;  %3002 = vmatprep.subr.bf16.mxu1 %v5156_v46  ;;  %v2441_v13 = vld [vmem:[#allocation4 + $0x390] sm:$0xff] }
 0x581   :  { %v2298_v53 = vpop.permute.xlu0 %2297  ;;  %2964 = vmatpush1.bf16.msra.mxu0 %v2963_v63 }
 0x582   :  { %v2302_v5 = vsel %vm2299_vm13, %v2296_v41, %v2298_v53  ;;  %v2310_v6 = vpop.permute.xlu1 %2309  ;;  %2966 = vmatprep.subr.bf16.mxu0 %v2965_v40  ;;  %v2439_v42 = vld [vmem:[#allocation4 + $0x380] sm:$0xff] }
 0x583   :  { %2308 = vst.msk [vmem:[#allocation4 + $0x3b8] sm:$0xff] %vm1923_vm15, %v2302_v5  ;;  %v2317_v10 = vsel %vm5181_vm14, %v2310_v6, %v2312_v7 }
 0x584   :  { %2323 = vst.msk [vmem:[#allocation4 + $0x3d0] sm:$0xff] %vm1920_vm5, %v2317_v10  ;;  %vm2699_vm5 = vcmask 1043968  }
 0x585   :  { %v2314_v50 = vpop.permute.xlu0 %2313 }
 0x586   :  { %v2318_v21 = vsel %vm5182_vm7, %v2312_v7, %v2314_v50  ;;  %v2444_v30 = vld [vmem:[#allocation4 + $0x3a8] sm:$0xff] }
 0x587   :  { %v2967_v1 = vpack.c.bf16 %v2444_v30, %v2439_v42 }
 0x589   :  { %v2316_v37 = vpop.permute.xlu0 %2315  ;;  %2968 = vmatpush1.bf16.msra.mxu0 %v2967_v1 }
 0x58a   :  { %v2319_v46 = vsel %vm5183_vm6, %v2314_v50, %v2316_v37  ;;  %v2446_v12 = vld [vmem:[#allocation4 + $0x3b8] sm:$0xff]  ;;  %2582 = vmatprep.subr.mxu0 %v2318_v21 }
 0x58b   :  { %2325 = vst.msk [vmem:[#allocation4 + $0x3e0] sm:$0xff] %vm1923_vm15, %v2319_v46  ;;  %v3003_v31 = vpack.c.bf16 %v2446_v12, %v2441_v13  ;;  %v2449_v54 = vld [vmem:[#allocation4 + $0x3d0] sm:$0xff]  ;;  %vm2700_vm15 = vcmask 1047556  }
 0x58c   :  { %vm2701_vm4 = vmor %vm2700_vm15, %vm2699_vm5 }
 0x58d   :  { %3004 = vmatpush1.bf16.msra.mxu1 %v3003_v31  ;;  %2583 = vmatpush1.msra.mxu0 %v2449_v54 }
 0x58e   :  { %2599 = vmatmul.mubr.f32.vlgmr.msra.gmra.mrb[10].mxu0 %v3081_v49  ;;  %2653 = vmatprep.subr.mxu1 %v5184_v22 }
 0x592   :  { %v2451_v35 = vld [vmem:[#allocation4 + $0x3e0] sm:$0xff] }
 0x593   :  { %v2456_v33 = vpop.permute.xlu1 %2455  ;;  %2654 = vmatpush1.msra.mxu1 %v2451_v35 }
 0x594   :  { %v2530_v24 = vadd.f32 %v2529_v58, %v2456_v33  ;;  %v2532_v27 = vadd.f32 %v2531_v19, %v2456_v33  ;;  %2670 = vmatmul.mubr.f32.vlgmr.msra.gmra.mrb[8].mxu1 %v3081_v49 }
 0x596   :  { %v2675_v25 = vmax.f32 %v2530_v24, 0.0  ;;  %v2676_v57 = vmax.f32 %v2532_v27, 0.0 }
 0x598   :  { %v2683_v47 = vcombine.low %v2675_v25, %v2676_v57 }
 0x59a   :  { %2685 = vst [vmem:[%s4932_s8] sm:$0xff] %v2683_v47 }
 0x661   :  { %v2600_v60 = vpop.f32.mrb[10].mxu0 }
 0x662   :  { %v2601_v9 = vadd.f32 %v2600_v60, %v2456_v33  ;;  %v2602_v14 = vpop.f32.mrb[11].mxu0 }
 0x663   :  { %v2603_v23 = vadd.f32 %v2602_v14, %v2456_v33 }
 0x664   :  { %v2677_v39 = vmax.f32 %v2601_v9, 0.0 }
 0x665   :  { %v2678_v20 = vmax.f32 %v2603_v23, 0.0 }
 0x666   :  { %2686 = vst.msk [vmem:[%s4932_s8 + $0x8] sm:$0xf] %vm39_vm0, %v2677_v39 }
 0x667   :  { %v2689_v28 = vcombine.low %v2677_v39, %v2678_v20  ;;  %v2671_v62 = vpop.f32.mrb[8].mxu1 }
 0x668   :  { %v2672_v16 = vadd.f32 %v2671_v62, %v2456_v33  ;;  %v2673_v48 = vpop.f32.mrb[9].mxu1 }
 0x669   :  { %2690 = vrot.lane.b32.xlu0 %v2689_v28, %s3139_s23 }
 0x66a   :  { %v2679_v2 = vmax.f32 %v2672_v16, 0.0 }
 0x66c   :  { %2692 = vrot.lane.b32.xlu1 %v2679_v2, %s3139_s23 }
 0x6db   :  { %v2691_v17 = vpop.permute.xlu0 %2690 }
 0x6dc   :  { %v2694_v38 = vrot.slane %v2691_v17, 4 }
 0x6de   :  { %v2693_v4 = vpop.permute.xlu1 %2692  ;;  %v2695_v26 = vsel %vm2075_vm10, %v2694_v38, %v2691_v17 }
 0x6df   :  { %v2696_v59 = vsel %vm2075_vm10, %v2694_v38, %v2693_v4  ;;  %2702 = vst.msk [vmem:[%s4932_s8 + $0x8] sm:$0xff] %vm2701_vm4, %v2695_v26 }
 0x6e0   :  { %2704 = vst.msk [vmem:[%s4932_s8 + $0x10] sm:$0xf] %vm2703_vm12, %v2696_v59 }

</bundles_post_ra>
